<compile_context>
chip_gen: v7x
topology: tpu7x:2x2x1
jax: 0.10.0
libtpu: 0.0.40
codegen_flags: <defaults>
</compile_context>

<pallas_src>
import jax
import jax.numpy as jnp
from jax import lax
from jax.experimental import pallas as pl
from jax.experimental.pallas import tpu as pltpu

# ---------------- configuration (small synthetic shapes) ----------------
BATCH = 2
SEQ = 8
HIDDEN = 32          # backbone.config.hidden_size
NUM_HEADS = 4
HEAD_DIM = HIDDEN // NUM_HEADS
FFN = 64
NUM_LAYERS = 2
VOCAB = 100
FC_DIMS = [64, 32]   # fc_dimensions
OUT_DIM = 4          # out_dimension
SOFTMAX_OUTPUTS = True
LN_EPS = 1e-12
TOKENS = BATCH * SEQ


# ---------------- in-kernel helpers ----------------
def _layernorm(x, gamma, beta, eps=LN_EPS):
    mu = jnp.mean(x, axis=-1, keepdims=True)
    var = jnp.mean((x - mu) ** 2, axis=-1, keepdims=True)
    return (x - mu) * lax.rsqrt(var + eps) * gamma + beta


# ---------------- fully fused forward kernel ----------------
def fused_forward_kernel(
    x_ref, mask_ref, emb_g_ref, emb_b_ref,
    wq_ref, bq_ref, wk_ref, bk_ref, wv_ref, bv_ref,
    wo_ref, bo_ref, ln1g_ref, ln1b_ref,
    w1_ref, b1_ref, w2_ref, b2_ref, ln2g_ref, ln2b_ref,
    hw0_ref, hb0_ref, hw1_ref, hb1_ref, hw2_ref, hb2_ref,
    out_ref):
    scale = 1.0 / (HEAD_DIM ** 0.5)

    # ---- embedding LayerNorm (folded into the kernel) ----
    x = _layernorm(x_ref[...].reshape(TOKENS, HIDDEN), emb_g_ref[...], emb_b_ref[...])

    # ---- additive attention bias built in-kernel from the 1/0 mask ----
    bias = ((1.0 - mask_ref[...]) * -1e9)[:, None, :]          # (B, 1, S)

    def layer_body(li, x):
        xb = x.astype(jnp.bfloat16)                            # (B*S, H)
        q = jnp.dot(xb, wq_ref[li], preferred_element_type=jnp.float32) + bq_ref[li]
        k = jnp.dot(xb, wk_ref[li], preferred_element_type=jnp.float32) + bk_ref[li]
        v = jnp.dot(xb, wv_ref[li], preferred_element_type=jnp.float32) + bv_ref[li]

        attn = jnp.zeros((TOKENS, HIDDEN), jnp.float32)
        for h in range(NUM_HEADS):                             # static unroll over heads
            lo, hi = h * HEAD_DIM, (h + 1) * HEAD_DIM
            qh = q[:, lo:hi].reshape(BATCH, SEQ, HEAD_DIM).astype(jnp.bfloat16)
            kh = k[:, lo:hi].reshape(BATCH, SEQ, HEAD_DIM).astype(jnp.bfloat16)
            vh = v[:, lo:hi].reshape(BATCH, SEQ, HEAD_DIM).astype(jnp.bfloat16)
            s = jnp.einsum("bqd,bkd->bqk", qh, kh,
                           preferred_element_type=jnp.float32) * scale + bias
            s = s - jnp.max(s, axis=-1, keepdims=True)
            p = jnp.exp(s)
            p = p * pl.reciprocal(jnp.sum(p, axis=-1, keepdims=True), approx=True)
            ctx = jnp.einsum("bqk,bkd->bqd", p.astype(jnp.bfloat16), vh,
                             preferred_element_type=jnp.float32)        # (B, S, HD)
            # Accumulate this head's output projection: ctx @ Wo[h*HD:(h+1)*HD, :]
            # (head-split Wo -> no lane-wise concatenate of head outputs).
            attn = attn + jnp.dot(
                ctx.reshape(TOKENS, HEAD_DIM).astype(jnp.bfloat16),
                wo_ref[li * NUM_HEADS + h],
                preferred_element_type=jnp.float32)
        attn = attn + bo_ref[li]

        x1 = _layernorm(x + attn, ln1g_ref[li], ln1b_ref[li])

        ff = jax.nn.gelu(
            jnp.dot(x1.astype(jnp.bfloat16), w1_ref[li],
                    preferred_element_type=jnp.float32) + b1_ref[li])
        ff = jnp.dot(ff.astype(jnp.bfloat16), w2_ref[li],
                     preferred_element_type=jnp.float32) + b2_ref[li]
        return _layernorm(x1 + ff, ln2g_ref[li], ln2b_ref[li])

    x = lax.fori_loop(0, NUM_LAYERS, layer_body, x, unroll=True)

    # ---- take_last_hidden_state_cls: outputs[0][:, 0, :] ----
    cls_vec = x.reshape(BATCH, SEQ, HIDDEN)[:, 0, :]           # (B, H)

    # ---- classification head: fc -> tanh -> fc -> tanh -> fc (-> softmax) ----
    h0 = jnp.tanh(jnp.dot(cls_vec.astype(jnp.bfloat16), hw0_ref[...],
                          preferred_element_type=jnp.float32) + hb0_ref[...])
    h1 = jnp.tanh(jnp.dot(h0.astype(jnp.bfloat16), hw1_ref[...],
                          preferred_element_type=jnp.float32) + hb1_ref[...])
    logits = jnp.dot(h1.astype(jnp.bfloat16), hw2_ref[...],
                     preferred_element_type=jnp.float32) + hb2_ref[...]
    if SOFTMAX_OUTPUTS:                                        # nn.Softmax(dim=1)
        m = jnp.max(logits, axis=-1, keepdims=True)
        e = jnp.exp(logits - m)
        out_ref[...] = e / jnp.sum(e, axis=-1, keepdims=True)  # exact division for module output
    else:
        out_ref[...] = logits


def fused_forward(x_emb, mask_f, p):
    vmem = pl.BlockSpec(memory_space=pltpu.MemorySpace.VMEM)
    args = (x_emb, mask_f, p["emb_ln_g"], p["emb_ln_b"],
            p["wq"], p["bq"], p["wk"], p["bk"], p["wv"], p["bv"],
            p["wo_heads"], p["bo"], p["ln1_g"], p["ln1_b"],
            p["w_ff1"], p["b_ff1"], p["w_ff2"], p["b_ff2"],
            p["ln2_g"], p["ln2_b"],
            p["hw0"], p["hb0"], p["hw1"], p["hb1"], p["hw2"], p["hb2"])
    return pl.pallas_call(
        fused_forward_kernel,
        out_shape=jax.ShapeDtypeStruct((BATCH, OUT_DIM), jnp.float32),
        in_specs=[vmem] * len(args),
        out_specs=vmem,
    )(*args)


# ---------------- parameter initialization (deterministic) ----------------
def init_params(key):
    def dense(k, fan_in, fan_out):
        w = (jax.random.normal(k, (fan_in, fan_out), jnp.float32)
             * (1.0 / jnp.sqrt(fan_in))).astype(jnp.bfloat16)   # bf16 matmul weights
        b = jnp.zeros((1, fan_out), jnp.float32)
        return w, b

    k_tok, k_pos, k_layers, k_head = jax.random.split(key, 4)
    params = {
        "tok_emb": jax.random.normal(k_tok, (VOCAB, HIDDEN), jnp.float32) * 0.02,
        "pos_emb": jax.random.normal(k_pos, (SEQ, HIDDEN), jnp.float32) * 0.02,
        "emb_ln_g": jnp.ones((1, HIDDEN), jnp.float32),
        "emb_ln_b": jnp.zeros((1, HIDDEN), jnp.float32),
    }

    names = ("wq", "bq", "wk", "bk", "wv", "bv", "wo", "bo",
             "ln1_g", "ln1_b", "w_ff1", "b_ff1", "w_ff2", "b_ff2",
             "ln2_g", "ln2_b")
    per_layer = {n: [] for n in names}
    for lk in jax.random.split(k_layers, NUM_LAYERS):
        ks = jax.random.split(lk, 6)
        for tag, kk in zip("qkvo", ks[:4]):
            w, b = dense(kk, HIDDEN, HIDDEN)
            per_layer["w" + tag].append(w)
            per_layer["b" + tag].append(b)
        w1, b1 = dense(ks[4], HIDDEN, FFN)
        w2, b2 = dense(ks[5], FFN, HIDDEN)
        per_layer["w_ff1"].append(w1); per_layer["b_ff1"].append(b1)
        per_layer["w_ff2"].append(w2); per_layer["b_ff2"].append(b2)
        per_layer["ln1_g"].append(jnp.ones((1, HIDDEN), jnp.float32))
        per_layer["ln1_b"].append(jnp.zeros((1, HIDDEN), jnp.float32))
        per_layer["ln2_g"].append(jnp.ones((1, HIDDEN), jnp.float32))
        per_layer["ln2_b"].append(jnp.zeros((1, HIDDEN), jnp.float32))

    stacked = {k: jnp.stack(v) for k, v in per_layer.items()}
    # head-split output projection: (L, H, H) -> (L*NUM_HEADS, HEAD_DIM, HIDDEN)
    stacked["wo_heads"] = stacked.pop("wo").reshape(
        NUM_LAYERS * NUM_HEADS, HEAD_DIM, HIDDEN)
    params.update(stacked)

    hk = jax.random.split(k_head, 3)
    params["hw0"], params["hb0"] = dense(hk[0], HIDDEN, FC_DIMS[0])
    params["hw1"], params["hb1"] = dense(hk[1], FC_DIMS[0], FC_DIMS[1])
    params["hw2"], params["hb2"] = dense(hk[2], FC_DIMS[1], OUT_DIM)
    return params


# ---------------- full forward (mirrors MLMForClassification.forward) ----------------
@jax.jit
def mlm_for_classification_forward(params, input_ids, attention_mask):
    # embedding gather + positional add (glue: data-dependent gather stays in XLA)
    x_emb = jnp.take(params["tok_emb"], input_ids, axis=0) + params["pos_emb"][None, :, :]
    mask_f = attention_mask.astype(jnp.float32)
    # everything else (emb LN, encoder layers, CLS slice, head, softmax) is one kernel
    return fused_forward(x_emb, mask_f, params)


if __name__ == "__main__":
    key = jax.random.PRNGKey(0)
    pkey, ikey = jax.random.split(key)
    params = init_params(pkey)

    input_ids = jax.random.randint(ikey, (BATCH, SEQ), 0, VOCAB, dtype=jnp.int32)
    attention_mask = jnp.array([[1, 1, 1, 1, 1, 1, 0, 0],
                                [1, 1, 1, 1, 1, 1, 1, 1]], dtype=jnp.int32)

    probs = mlm_for_classification_forward(params, input_ids, attention_mask)
    probs = jax.block_until_ready(probs)

    assert probs.shape == (BATCH, OUT_DIM)
    assert bool(jnp.all(jnp.isfinite(probs)))
    # softmax rows must sum to 1
    assert bool(jnp.all(jnp.abs(jnp.sum(probs, axis=1) - 1.0) < 1e-4))
    print("KERNEL_OK")
</pallas_src>

<mosaic_0001>
module attributes {stable_mosaic.version = 11 : i64} {
  func.func @fused_forward_kernel(%arg0: memref<2x8x32xf32, #tpu.memory_space<vmem>>, %arg1: memref<2x8xf32, #tpu.memory_space<vmem>>, %arg2: memref<1x32xf32, #tpu.memory_space<vmem>>, %arg3: memref<1x32xf32, #tpu.memory_space<vmem>>, %arg4: memref<2x32x32xbf16, #tpu.memory_space<vmem>>, %arg5: memref<2x1x32xf32, #tpu.memory_space<vmem>>, %arg6: memref<2x32x32xbf16, #tpu.memory_space<vmem>>, %arg7: memref<2x1x32xf32, #tpu.memory_space<vmem>>, %arg8: memref<2x32x32xbf16, #tpu.memory_space<vmem>>, %arg9: memref<2x1x32xf32, #tpu.memory_space<vmem>>, %arg10: memref<8x8x32xbf16, #tpu.memory_space<vmem>>, %arg11: memref<2x1x32xf32, #tpu.memory_space<vmem>>, %arg12: memref<2x1x32xf32, #tpu.memory_space<vmem>>, %arg13: memref<2x1x32xf32, #tpu.memory_space<vmem>>, %arg14: memref<2x32x64xbf16, #tpu.memory_space<vmem>>, %arg15: memref<2x1x64xf32, #tpu.memory_space<vmem>>, %arg16: memref<2x64x32xbf16, #tpu.memory_space<vmem>>, %arg17: memref<2x1x32xf32, #tpu.memory_space<vmem>>, %arg18: memref<2x1x32xf32, #tpu.memory_space<vmem>>, %arg19: memref<2x1x32xf32, #tpu.memory_space<vmem>>, %arg20: memref<32x64xbf16, #tpu.memory_space<vmem>>, %arg21: memref<1x64xf32, #tpu.memory_space<vmem>>, %arg22: memref<64x32xbf16, #tpu.memory_space<vmem>>, %arg23: memref<1x32xf32, #tpu.memory_space<vmem>>, %arg24: memref<32x4xbf16, #tpu.memory_space<vmem>>, %arg25: memref<1x4xf32, #tpu.memory_space<vmem>>, %arg26: memref<2x4xf32, #tpu.memory_space<vmem>>) attributes {dimension_semantics = [], scalar_prefetch = 0 : i64, scratch_operands = 0 : i64, tpu.core_type = #tpu.core_type<tc>} {
    %c0 = arith.constant 0 : index
    %c0_0 = arith.constant 0 : index
    %c0_1 = arith.constant 0 : index
    %0 = vector.load %arg0[%c0, %c0_0, %c0_1] : memref<2x8x32xf32, #tpu.memory_space<vmem>>, vector<2x8x32xf32>
    %1 = vector.shape_cast %0 : vector<2x8x32xf32> to vector<16x32xf32>
    %c0_2 = arith.constant 0 : index
    %c0_3 = arith.constant 0 : index
    %2 = vector.load %arg2[%c0_2, %c0_3] : memref<1x32xf32, #tpu.memory_space<vmem>>, vector<1x32xf32>
    %c0_4 = arith.constant 0 : index
    %c0_5 = arith.constant 0 : index
    %3 = vector.load %arg3[%c0_4, %c0_5] : memref<1x32xf32, #tpu.memory_space<vmem>>, vector<1x32xf32>
    %cst = arith.constant dense<0.000000e+00> : vector<16xf32>
    %4 = vector.multi_reduction <add>, %1, %cst [1] : vector<16x32xf32> to vector<16xf32>
    %5 = vector.shape_cast %4 : vector<16xf32> to vector<16x1xf32>
    %cst_6 = arith.constant 3.200000e+01 : f32
    %6 = vector.broadcast %cst_6 : f32 to vector<16x1xf32>
    %7 = arith.divf %5, %6 : vector<16x1xf32>
    %8 = vector.broadcast %7 : vector<16x1xf32> to vector<16x32xf32>
    %9 = arith.subf %1, %8 : vector<16x32xf32>
    %10 = arith.mulf %9, %9 : vector<16x32xf32>
    %cst_7 = arith.constant dense<0.000000e+00> : vector<16xf32>
    %11 = vector.multi_reduction <add>, %10, %cst_7 [1] : vector<16x32xf32> to vector<16xf32>
    %12 = vector.shape_cast %11 : vector<16xf32> to vector<16x1xf32>
    %cst_8 = arith.constant 3.200000e+01 : f32
    %13 = vector.broadcast %cst_8 : f32 to vector<16x1xf32>
    %14 = arith.divf %12, %13 : vector<16x1xf32>
    %15 = vector.broadcast %7 : vector<16x1xf32> to vector<16x32xf32>
    %16 = arith.subf %1, %15 : vector<16x32xf32>
    %cst_9 = arith.constant 9.99999996E-13 : f32
    %17 = vector.broadcast %cst_9 : f32 to vector<16x1xf32>
    %18 = arith.addf %14, %17 : vector<16x1xf32>
    %19 = math.rsqrt %18 : vector<16x1xf32>
    %20 = vector.broadcast %19 : vector<16x1xf32> to vector<16x32xf32>
    %21 = arith.mulf %16, %20 : vector<16x32xf32>
    %22 = vector.broadcast %2 : vector<1x32xf32> to vector<16x32xf32>
    %23 = arith.mulf %21, %22 : vector<16x32xf32>
    %24 = vector.broadcast %3 : vector<1x32xf32> to vector<16x32xf32>
    %25 = arith.addf %23, %24 : vector<16x32xf32>
    %c0_10 = arith.constant 0 : index
    %c0_11 = arith.constant 0 : index
    %26 = vector.load %arg1[%c0_10, %c0_11] : memref<2x8xf32, #tpu.memory_space<vmem>>, vector<2x8xf32>
    %cst_12 = arith.constant 1.000000e+00 : f32
    %27 = vector.broadcast %cst_12 : f32 to vector<2x8xf32>
    %28 = arith.subf %27, %26 : vector<2x8xf32>
    %cst_13 = arith.constant -1.000000e+09 : f32
    %29 = vector.broadcast %cst_13 : f32 to vector<2x8xf32>
    %30 = arith.mulf %28, %29 : vector<2x8xf32>
    %31 = vector.shape_cast %30 : vector<2x8xf32> to vector<2x1x8xf32>
    %c0_i32 = arith.constant 0 : i32
    %32 = arith.truncf %25 : vector<16x32xf32> to vector<16x32xbf16>
    %33 = arith.index_cast %c0_i32 : i32 to index
    %c0_14 = arith.constant 0 : index
    %c0_15 = arith.constant 0 : index
    %34 = vector.load %arg4[%33, %c0_14, %c0_15] : memref<2x32x32xbf16, #tpu.memory_space<vmem>>, vector<1x32x32xbf16>
    %35 = vector.shape_cast %34 : vector<1x32x32xbf16> to vector<32x32xbf16>
    %cst_16 = arith.constant dense<0.000000e+00> : vector<16x32xf32>
    %36 = tpu.matmul %32, %35, %cst_16 {dimension_numbers = #tpu.dot_dimension_numbers<[1], [0], [0], [1], [0, 0, 1, 1], [], []>} : vector<16x32xbf16>, vector<32x32xbf16>, vector<16x32xf32> -> vector<16x32xf32>
    %37 = arith.index_cast %c0_i32 : i32 to index
    %c0_17 = arith.constant 0 : index
    %c0_18 = arith.constant 0 : index
    %38 = vector.load %arg5[%37, %c0_17, %c0_18] : memref<2x1x32xf32, #tpu.memory_space<vmem>>, vector<1x1x32xf32>
    %39 = vector.shape_cast %38 : vector<1x1x32xf32> to vector<1x32xf32>
    %40 = vector.broadcast %39 : vector<1x32xf32> to vector<16x32xf32>
    %41 = arith.addf %36, %40 : vector<16x32xf32>
    %42 = arith.index_cast %c0_i32 : i32 to index
    %c0_19 = arith.constant 0 : index
    %c0_20 = arith.constant 0 : index
    %43 = vector.load %arg6[%42, %c0_19, %c0_20] : memref<2x32x32xbf16, #tpu.memory_space<vmem>>, vector<1x32x32xbf16>
    %44 = vector.shape_cast %43 : vector<1x32x32xbf16> to vector<32x32xbf16>
    %cst_21 = arith.constant dense<0.000000e+00> : vector<16x32xf32>
    %45 = tpu.matmul %32, %44, %cst_21 {dimension_numbers = #tpu.dot_dimension_numbers<[1], [0], [0], [1], [0, 0, 1, 1], [], []>} : vector<16x32xbf16>, vector<32x32xbf16>, vector<16x32xf32> -> vector<16x32xf32>
    %46 = arith.index_cast %c0_i32 : i32 to index
    %c0_22 = arith.constant 0 : index
    %c0_23 = arith.constant 0 : index
    %47 = vector.load %arg7[%46, %c0_22, %c0_23] : memref<2x1x32xf32, #tpu.memory_space<vmem>>, vector<1x1x32xf32>
    %48 = vector.shape_cast %47 : vector<1x1x32xf32> to vector<1x32xf32>
    %49 = vector.broadcast %48 : vector<1x32xf32> to vector<16x32xf32>
    %50 = arith.addf %45, %49 : vector<16x32xf32>
    %51 = arith.index_cast %c0_i32 : i32 to index
    %c0_24 = arith.constant 0 : index
    %c0_25 = arith.constant 0 : index
    %52 = vector.load %arg8[%51, %c0_24, %c0_25] : memref<2x32x32xbf16, #tpu.memory_space<vmem>>, vector<1x32x32xbf16>
    %53 = vector.shape_cast %52 : vector<1x32x32xbf16> to vector<32x32xbf16>
    %cst_26 = arith.constant dense<0.000000e+00> : vector<16x32xf32>
    %54 = tpu.matmul %32, %53, %cst_26 {dimension_numbers = #tpu.dot_dimension_numbers<[1], [0], [0], [1], [0, 0, 1, 1], [], []>} : vector<16x32xbf16>, vector<32x32xbf16>, vector<16x32xf32> -> vector<16x32xf32>
    %55 = arith.index_cast %c0_i32 : i32 to index
    %c0_27 = arith.constant 0 : index
    %c0_28 = arith.constant 0 : index
    %56 = vector.load %arg9[%55, %c0_27, %c0_28] : memref<2x1x32xf32, #tpu.memory_space<vmem>>, vector<1x1x32xf32>
    %57 = vector.shape_cast %56 : vector<1x1x32xf32> to vector<1x32xf32>
    %58 = vector.broadcast %57 : vector<1x32xf32> to vector<16x32xf32>
    %59 = arith.addf %54, %58 : vector<16x32xf32>
    %cst_29 = arith.constant 0.000000e+00 : f32
    %60 = vector.broadcast %cst_29 : f32 to vector<16x32xf32>
    %61 = vector.extract_strided_slice %41 {offsets = [0, 0], sizes = [16, 8], strides = [1, 1]} : vector<16x32xf32> to vector<16x8xf32>
    %62 = vector.shape_cast %61 : vector<16x8xf32> to vector<2x8x8xf32>
    %63 = arith.truncf %62 : vector<2x8x8xf32> to vector<2x8x8xbf16>
    %64 = vector.extract_strided_slice %50 {offsets = [0, 0], sizes = [16, 8], strides = [1, 1]} : vector<16x32xf32> to vector<16x8xf32>
    %65 = vector.shape_cast %64 : vector<16x8xf32> to vector<2x8x8xf32>
    %66 = arith.truncf %65 : vector<2x8x8xf32> to vector<2x8x8xbf16>
    %67 = vector.extract_strided_slice %59 {offsets = [0, 0], sizes = [16, 8], strides = [1, 1]} : vector<16x32xf32> to vector<16x8xf32>
    %68 = vector.shape_cast %67 : vector<16x8xf32> to vector<2x8x8xf32>
    %69 = arith.truncf %68 : vector<2x8x8xf32> to vector<2x8x8xbf16>
    "tpu.trace_start"() <{level = 10 : i32, message = "bqd,bkd->bqk"}> : () -> ()
    %cst_30 = arith.constant dense<0.000000e+00> : vector<2x8x8xf32>
    %70 = tpu.matmul %63, %66, %cst_30 {dimension_numbers = #tpu.dot_dimension_numbers<[2], [2], [1], [1], [0, 0, 0, 1, 1, 1], [0], [0]>} : vector<2x8x8xbf16>, vector<2x8x8xbf16>, vector<2x8x8xf32> -> vector<2x8x8xf32>
    "tpu.trace_stop"() : () -> ()
    %cst_31 = arith.constant 0.353553385 : f32
    %71 = vector.broadcast %cst_31 : f32 to vector<2x8x8xf32>
    %72 = arith.mulf %70, %71 : vector<2x8x8xf32>
    %73 = vector.broadcast %31 : vector<2x1x8xf32> to vector<2x8x8xf32>
    %74 = arith.addf %72, %73 : vector<2x8x8xf32>
    %cst_32 = arith.constant dense<0xFF800000> : vector<2x8xf32>
    %75 = vector.multi_reduction <maximumf>, %74, %cst_32 [2] : vector<2x8x8xf32> to vector<2x8xf32>
    %76 = vector.shape_cast %75 : vector<2x8xf32> to vector<2x8x1xf32>
    %77 = vector.broadcast %76 : vector<2x8x1xf32> to vector<2x8x8xf32>
    %78 = arith.subf %74, %77 : vector<2x8x8xf32>
    %79 = math.exp %78 : vector<2x8x8xf32>
    %cst_33 = arith.constant dense<0.000000e+00> : vector<2x8xf32>
    %80 = vector.multi_reduction <add>, %79, %cst_33 [2] : vector<2x8x8xf32> to vector<2x8xf32>
    %81 = vector.shape_cast %80 : vector<2x8xf32> to vector<2x8x1xf32>
    %82 = tpu.reciprocal %81 {approx = true} : vector<2x8x1xf32> -> vector<2x8x1xf32>
    %83 = vector.broadcast %82 : vector<2x8x1xf32> to vector<2x8x8xf32>
    %84 = arith.mulf %79, %83 : vector<2x8x8xf32>
    %85 = arith.truncf %84 : vector<2x8x8xf32> to vector<2x8x8xbf16>
    "tpu.trace_start"() <{level = 10 : i32, message = "bqk,bkd->bqd"}> : () -> ()
    %cst_34 = arith.constant dense<0.000000e+00> : vector<2x8x8xf32>
    %86 = tpu.matmul %85, %69, %cst_34 {dimension_numbers = #tpu.dot_dimension_numbers<[2], [1], [1], [2], [0, 0, 0, 1, 1, 2], [0], [0]>} : vector<2x8x8xbf16>, vector<2x8x8xbf16>, vector<2x8x8xf32> -> vector<2x8x8xf32>
    "tpu.trace_stop"() : () -> ()
    %87 = vector.shape_cast %86 : vector<2x8x8xf32> to vector<16x8xf32>
    %88 = arith.truncf %87 : vector<16x8xf32> to vector<16x8xbf16>
    %c4_i32 = arith.constant 4 : i32
    %89 = arith.muli %c0_i32, %c4_i32 : i32
    %c0_i32_35 = arith.constant 0 : i32
    %90 = arith.addi %89, %c0_i32_35 : i32
    %91 = arith.index_cast %90 : i32 to index
    %c0_36 = arith.constant 0 : index
    %c0_37 = arith.constant 0 : index
    %92 = vector.load %arg10[%91, %c0_36, %c0_37] : memref<8x8x32xbf16, #tpu.memory_space<vmem>>, vector<1x8x32xbf16>
    %93 = vector.shape_cast %92 : vector<1x8x32xbf16> to vector<8x32xbf16>
    %cst_38 = arith.constant dense<0.000000e+00> : vector<16x32xf32>
    %94 = tpu.matmul %88, %93, %cst_38 {dimension_numbers = #tpu.dot_dimension_numbers<[1], [0], [0], [1], [0, 0, 1, 1], [], []>} : vector<16x8xbf16>, vector<8x32xbf16>, vector<16x32xf32> -> vector<16x32xf32>
    %95 = arith.addf %60, %94 : vector<16x32xf32>
    %96 = vector.extract_strided_slice %41 {offsets = [0, 8], sizes = [16, 8], strides = [1, 1]} : vector<16x32xf32> to vector<16x8xf32>
    %97 = vector.shape_cast %96 : vector<16x8xf32> to vector<2x8x8xf32>
    %98 = arith.truncf %97 : vector<2x8x8xf32> to vector<2x8x8xbf16>
    %99 = vector.extract_strided_slice %50 {offsets = [0, 8], sizes = [16, 8], strides = [1, 1]} : vector<16x32xf32> to vector<16x8xf32>
    %100 = vector.shape_cast %99 : vector<16x8xf32> to vector<2x8x8xf32>
    %101 = arith.truncf %100 : vector<2x8x8xf32> to vector<2x8x8xbf16>
    %102 = vector.extract_strided_slice %59 {offsets = [0, 8], sizes = [16, 8], strides = [1, 1]} : vector<16x32xf32> to vector<16x8xf32>
    %103 = vector.shape_cast %102 : vector<16x8xf32> to vector<2x8x8xf32>
    %104 = arith.truncf %103 : vector<2x8x8xf32> to vector<2x8x8xbf16>
    "tpu.trace_start"() <{level = 10 : i32, message = "bqd,bkd->bqk"}> : () -> ()
    %cst_39 = arith.constant dense<0.000000e+00> : vector<2x8x8xf32>
    %105 = tpu.matmul %98, %101, %cst_39 {dimension_numbers = #tpu.dot_dimension_numbers<[2], [2], [1], [1], [0, 0, 0, 1, 1, 1], [0], [0]>} : vector<2x8x8xbf16>, vector<2x8x8xbf16>, vector<2x8x8xf32> -> vector<2x8x8xf32>
    "tpu.trace_stop"() : () -> ()
    %cst_40 = arith.constant 0.353553385 : f32
    %106 = vector.broadcast %cst_40 : f32 to vector<2x8x8xf32>
    %107 = arith.mulf %105, %106 : vector<2x8x8xf32>
    %108 = vector.broadcast %31 : vector<2x1x8xf32> to vector<2x8x8xf32>
    %109 = arith.addf %107, %108 : vector<2x8x8xf32>
    %cst_41 = arith.constant dense<0xFF800000> : vector<2x8xf32>
    %110 = vector.multi_reduction <maximumf>, %109, %cst_41 [2] : vector<2x8x8xf32> to vector<2x8xf32>
    %111 = vector.shape_cast %110 : vector<2x8xf32> to vector<2x8x1xf32>
    %112 = vector.broadcast %111 : vector<2x8x1xf32> to vector<2x8x8xf32>
    %113 = arith.subf %109, %112 : vector<2x8x8xf32>
    %114 = math.exp %113 : vector<2x8x8xf32>
    %cst_42 = arith.constant dense<0.000000e+00> : vector<2x8xf32>
    %115 = vector.multi_reduction <add>, %114, %cst_42 [2] : vector<2x8x8xf32> to vector<2x8xf32>
    %116 = vector.shape_cast %115 : vector<2x8xf32> to vector<2x8x1xf32>
    %117 = tpu.reciprocal %116 {approx = true} : vector<2x8x1xf32> -> vector<2x8x1xf32>
    %118 = vector.broadcast %117 : vector<2x8x1xf32> to vector<2x8x8xf32>
    %119 = arith.mulf %114, %118 : vector<2x8x8xf32>
    %120 = arith.truncf %119 : vector<2x8x8xf32> to vector<2x8x8xbf16>
    "tpu.trace_start"() <{level = 10 : i32, message = "bqk,bkd->bqd"}> : () -> ()
    %cst_43 = arith.constant dense<0.000000e+00> : vector<2x8x8xf32>
    %121 = tpu.matmul %120, %104, %cst_43 {dimension_numbers = #tpu.dot_dimension_numbers<[2], [1], [1], [2], [0, 0, 0, 1, 1, 2], [0], [0]>} : vector<2x8x8xbf16>, vector<2x8x8xbf16>, vector<2x8x8xf32> -> vector<2x8x8xf32>
    "tpu.trace_stop"() : () -> ()
    %122 = vector.shape_cast %121 : vector<2x8x8xf32> to vector<16x8xf32>
    %123 = arith.truncf %122 : vector<16x8xf32> to vector<16x8xbf16>
    %c4_i32_44 = arith.constant 4 : i32
    %124 = arith.muli %c0_i32, %c4_i32_44 : i32
    %c1_i32 = arith.constant 1 : i32
    %125 = arith.addi %124, %c1_i32 : i32
    %126 = arith.index_cast %125 : i32 to index
    %c0_45 = arith.constant 0 : index
    %c0_46 = arith.constant 0 : index
    %127 = vector.load %arg10[%126, %c0_45, %c0_46] : memref<8x8x32xbf16, #tpu.memory_space<vmem>>, vector<1x8x32xbf16>
    %128 = vector.shape_cast %127 : vector<1x8x32xbf16> to vector<8x32xbf16>
    %cst_47 = arith.constant dense<0.000000e+00> : vector<16x32xf32>
    %129 = tpu.matmul %123, %128, %cst_47 {dimension_numbers = #tpu.dot_dimension_numbers<[1], [0], [0], [1], [0, 0, 1, 1], [], []>} : vector<16x8xbf16>, vector<8x32xbf16>, vector<16x32xf32> -> vector<16x32xf32>
    %130 = arith.addf %95, %129 : vector<16x32xf32>
    %131 = vector.extract_strided_slice %41 {offsets = [0, 16], sizes = [16, 8], strides = [1, 1]} : vector<16x32xf32> to vector<16x8xf32>
    %132 = vector.shape_cast %131 : vector<16x8xf32> to vector<2x8x8xf32>
    %133 = arith.truncf %132 : vector<2x8x8xf32> to vector<2x8x8xbf16>
    %134 = vector.extract_strided_slice %50 {offsets = [0, 16], sizes = [16, 8], strides = [1, 1]} : vector<16x32xf32> to vector<16x8xf32>
    %135 = vector.shape_cast %134 : vector<16x8xf32> to vector<2x8x8xf32>
    %136 = arith.truncf %135 : vector<2x8x8xf32> to vector<2x8x8xbf16>
    %137 = vector.extract_strided_slice %59 {offsets = [0, 16], sizes = [16, 8], strides = [1, 1]} : vector<16x32xf32> to vector<16x8xf32>
    %138 = vector.shape_cast %137 : vector<16x8xf32> to vector<2x8x8xf32>
    %139 = arith.truncf %138 : vector<2x8x8xf32> to vector<2x8x8xbf16>
    "tpu.trace_start"() <{level = 10 : i32, message = "bqd,bkd->bqk"}> : () -> ()
    %cst_48 = arith.constant dense<0.000000e+00> : vector<2x8x8xf32>
    %140 = tpu.matmul %133, %136, %cst_48 {dimension_numbers = #tpu.dot_dimension_numbers<[2], [2], [1], [1], [0, 0, 0, 1, 1, 1], [0], [0]>} : vector<2x8x8xbf16>, vector<2x8x8xbf16>, vector<2x8x8xf32> -> vector<2x8x8xf32>
    "tpu.trace_stop"() : () -> ()
    %cst_49 = arith.constant 0.353553385 : f32
    %141 = vector.broadcast %cst_49 : f32 to vector<2x8x8xf32>
    %142 = arith.mulf %140, %141 : vector<2x8x8xf32>
    %143 = vector.broadcast %31 : vector<2x1x8xf32> to vector<2x8x8xf32>
    %144 = arith.addf %142, %143 : vector<2x8x8xf32>
    %cst_50 = arith.constant dense<0xFF800000> : vector<2x8xf32>
    %145 = vector.multi_reduction <maximumf>, %144, %cst_50 [2] : vector<2x8x8xf32> to vector<2x8xf32>
    %146 = vector.shape_cast %145 : vector<2x8xf32> to vector<2x8x1xf32>
    %147 = vector.broadcast %146 : vector<2x8x1xf32> to vector<2x8x8xf32>
    %148 = arith.subf %144, %147 : vector<2x8x8xf32>
    %149 = math.exp %148 : vector<2x8x8xf32>
    %cst_51 = arith.constant dense<0.000000e+00> : vector<2x8xf32>
    %150 = vector.multi_reduction <add>, %149, %cst_51 [2] : vector<2x8x8xf32> to vector<2x8xf32>
    %151 = vector.shape_cast %150 : vector<2x8xf32> to vector<2x8x1xf32>
    %152 = tpu.reciprocal %151 {approx = true} : vector<2x8x1xf32> -> vector<2x8x1xf32>
    %153 = vector.broadcast %152 : vector<2x8x1xf32> to vector<2x8x8xf32>
    %154 = arith.mulf %149, %153 : vector<2x8x8xf32>
    %155 = arith.truncf %154 : vector<2x8x8xf32> to vector<2x8x8xbf16>
    "tpu.trace_start"() <{level = 10 : i32, message = "bqk,bkd->bqd"}> : () -> ()
    %cst_52 = arith.constant dense<0.000000e+00> : vector<2x8x8xf32>
    %156 = tpu.matmul %155, %139, %cst_52 {dimension_numbers = #tpu.dot_dimension_numbers<[2], [1], [1], [2], [0, 0, 0, 1, 1, 2], [0], [0]>} : vector<2x8x8xbf16>, vector<2x8x8xbf16>, vector<2x8x8xf32> -> vector<2x8x8xf32>
    "tpu.trace_stop"() : () -> ()
    %157 = vector.shape_cast %156 : vector<2x8x8xf32> to vector<16x8xf32>
    %158 = arith.truncf %157 : vector<16x8xf32> to vector<16x8xbf16>
    %c4_i32_53 = arith.constant 4 : i32
    %159 = arith.muli %c0_i32, %c4_i32_53 : i32
    %c2_i32 = arith.constant 2 : i32
    %160 = arith.addi %159, %c2_i32 : i32
    %161 = arith.index_cast %160 : i32 to index
    %c0_54 = arith.constant 0 : index
    %c0_55 = arith.constant 0 : index
    %162 = vector.load %arg10[%161, %c0_54, %c0_55] : memref<8x8x32xbf16, #tpu.memory_space<vmem>>, vector<1x8x32xbf16>
    %163 = vector.shape_cast %162 : vector<1x8x32xbf16> to vector<8x32xbf16>
    %cst_56 = arith.constant dense<0.000000e+00> : vector<16x32xf32>
    %164 = tpu.matmul %158, %163, %cst_56 {dimension_numbers = #tpu.dot_dimension_numbers<[1], [0], [0], [1], [0, 0, 1, 1], [], []>} : vector<16x8xbf16>, vector<8x32xbf16>, vector<16x32xf32> -> vector<16x32xf32>
    %165 = arith.addf %130, %164 : vector<16x32xf32>
    %166 = vector.extract_strided_slice %41 {offsets = [0, 24], sizes = [16, 8], strides = [1, 1]} : vector<16x32xf32> to vector<16x8xf32>
    %167 = vector.shape_cast %166 : vector<16x8xf32> to vector<2x8x8xf32>
    %168 = arith.truncf %167 : vector<2x8x8xf32> to vector<2x8x8xbf16>
    %169 = vector.extract_strided_slice %50 {offsets = [0, 24], sizes = [16, 8], strides = [1, 1]} : vector<16x32xf32> to vector<16x8xf32>
    %170 = vector.shape_cast %169 : vector<16x8xf32> to vector<2x8x8xf32>
    %171 = arith.truncf %170 : vector<2x8x8xf32> to vector<2x8x8xbf16>
    %172 = vector.extract_strided_slice %59 {offsets = [0, 24], sizes = [16, 8], strides = [1, 1]} : vector<16x32xf32> to vector<16x8xf32>
    %173 = vector.shape_cast %172 : vector<16x8xf32> to vector<2x8x8xf32>
    %174 = arith.truncf %173 : vector<2x8x8xf32> to vector<2x8x8xbf16>
    "tpu.trace_start"() <{level = 10 : i32, message = "bqd,bkd->bqk"}> : () -> ()
    %cst_57 = arith.constant dense<0.000000e+00> : vector<2x8x8xf32>
    %175 = tpu.matmul %168, %171, %cst_57 {dimension_numbers = #tpu.dot_dimension_numbers<[2], [2], [1], [1], [0, 0, 0, 1, 1, 1], [0], [0]>} : vector<2x8x8xbf16>, vector<2x8x8xbf16>, vector<2x8x8xf32> -> vector<2x8x8xf32>
    "tpu.trace_stop"() : () -> ()
    %cst_58 = arith.constant 0.353553385 : f32
    %176 = vector.broadcast %cst_58 : f32 to vector<2x8x8xf32>
    %177 = arith.mulf %175, %176 : vector<2x8x8xf32>
    %178 = vector.broadcast %31 : vector<2x1x8xf32> to vector<2x8x8xf32>
    %179 = arith.addf %177, %178 : vector<2x8x8xf32>
    %cst_59 = arith.constant dense<0xFF800000> : vector<2x8xf32>
    %180 = vector.multi_reduction <maximumf>, %179, %cst_59 [2] : vector<2x8x8xf32> to vector<2x8xf32>
    %181 = vector.shape_cast %180 : vector<2x8xf32> to vector<2x8x1xf32>
    %182 = vector.broadcast %181 : vector<2x8x1xf32> to vector<2x8x8xf32>
    %183 = arith.subf %179, %182 : vector<2x8x8xf32>
    %184 = math.exp %183 : vector<2x8x8xf32>
    %cst_60 = arith.constant dense<0.000000e+00> : vector<2x8xf32>
    %185 = vector.multi_reduction <add>, %184, %cst_60 [2] : vector<2x8x8xf32> to vector<2x8xf32>
    %186 = vector.shape_cast %185 : vector<2x8xf32> to vector<2x8x1xf32>
    %187 = tpu.reciprocal %186 {approx = true} : vector<2x8x1xf32> -> vector<2x8x1xf32>
    %188 = vector.broadcast %187 : vector<2x8x1xf32> to vector<2x8x8xf32>
    %189 = arith.mulf %184, %188 : vector<2x8x8xf32>
    %190 = arith.truncf %189 : vector<2x8x8xf32> to vector<2x8x8xbf16>
    "tpu.trace_start"() <{level = 10 : i32, message = "bqk,bkd->bqd"}> : () -> ()
    %cst_61 = arith.constant dense<0.000000e+00> : vector<2x8x8xf32>
    %191 = tpu.matmul %190, %174, %cst_61 {dimension_numbers = #tpu.dot_dimension_numbers<[2], [1], [1], [2], [0, 0, 0, 1, 1, 2], [0], [0]>} : vector<2x8x8xbf16>, vector<2x8x8xbf16>, vector<2x8x8xf32> -> vector<2x8x8xf32>
    "tpu.trace_stop"() : () -> ()
    %192 = vector.shape_cast %191 : vector<2x8x8xf32> to vector<16x8xf32>
    %193 = arith.truncf %192 : vector<16x8xf32> to vector<16x8xbf16>
    %c4_i32_62 = arith.constant 4 : i32
    %194 = arith.muli %c0_i32, %c4_i32_62 : i32
    %c3_i32 = arith.constant 3 : i32
    %195 = arith.addi %194, %c3_i32 : i32
    %196 = arith.index_cast %195 : i32 to index
    %c0_63 = arith.constant 0 : index
    %c0_64 = arith.constant 0 : index
    %197 = vector.load %arg10[%196, %c0_63, %c0_64] : memref<8x8x32xbf16, #tpu.memory_space<vmem>>, vector<1x8x32xbf16>
    %198 = vector.shape_cast %197 : vector<1x8x32xbf16> to vector<8x32xbf16>
    %cst_65 = arith.constant dense<0.000000e+00> : vector<16x32xf32>
    %199 = tpu.matmul %193, %198, %cst_65 {dimension_numbers = #tpu.dot_dimension_numbers<[1], [0], [0], [1], [0, 0, 1, 1], [], []>} : vector<16x8xbf16>, vector<8x32xbf16>, vector<16x32xf32> -> vector<16x32xf32>
    %200 = arith.addf %165, %199 : vector<16x32xf32>
    %201 = arith.index_cast %c0_i32 : i32 to index
    %c0_66 = arith.constant 0 : index
    %c0_67 = arith.constant 0 : index
    %202 = vector.load %arg11[%201, %c0_66, %c0_67] : memref<2x1x32xf32, #tpu.memory_space<vmem>>, vector<1x1x32xf32>
    %203 = vector.shape_cast %202 : vector<1x1x32xf32> to vector<1x32xf32>
    %204 = vector.broadcast %203 : vector<1x32xf32> to vector<16x32xf32>
    %205 = arith.addf %200, %204 : vector<16x32xf32>
    %206 = arith.addf %25, %205 : vector<16x32xf32>
    %207 = arith.index_cast %c0_i32 : i32 to index
    %c0_68 = arith.constant 0 : index
    %c0_69 = arith.constant 0 : index
    %208 = vector.load %arg12[%207, %c0_68, %c0_69] : memref<2x1x32xf32, #tpu.memory_space<vmem>>, vector<1x1x32xf32>
    %209 = vector.shape_cast %208 : vector<1x1x32xf32> to vector<1x32xf32>
    %210 = arith.index_cast %c0_i32 : i32 to index
    %c0_70 = arith.constant 0 : index
    %c0_71 = arith.constant 0 : index
    %211 = vector.load %arg13[%210, %c0_70, %c0_71] : memref<2x1x32xf32, #tpu.memory_space<vmem>>, vector<1x1x32xf32>
    %212 = vector.shape_cast %211 : vector<1x1x32xf32> to vector<1x32xf32>
    %cst_72 = arith.constant dense<0.000000e+00> : vector<16xf32>
    %213 = vector.multi_reduction <add>, %206, %cst_72 [1] : vector<16x32xf32> to vector<16xf32>
    %214 = vector.shape_cast %213 : vector<16xf32> to vector<16x1xf32>
    %cst_73 = arith.constant 3.200000e+01 : f32
    %215 = vector.broadcast %cst_73 : f32 to vector<16x1xf32>
    %216 = arith.divf %214, %215 : vector<16x1xf32>
    %217 = vector.broadcast %216 : vector<16x1xf32> to vector<16x32xf32>
    %218 = arith.subf %206, %217 : vector<16x32xf32>
    %219 = arith.mulf %218, %218 : vector<16x32xf32>
    %cst_74 = arith.constant dense<0.000000e+00> : vector<16xf32>
    %220 = vector.multi_reduction <add>, %219, %cst_74 [1] : vector<16x32xf32> to vector<16xf32>
    %221 = vector.shape_cast %220 : vector<16xf32> to vector<16x1xf32>
    %cst_75 = arith.constant 3.200000e+01 : f32
    %222 = vector.broadcast %cst_75 : f32 to vector<16x1xf32>
    %223 = arith.divf %221, %222 : vector<16x1xf32>
    %224 = vector.broadcast %216 : vector<16x1xf32> to vector<16x32xf32>
    %225 = arith.subf %206, %224 : vector<16x32xf32>
    %cst_76 = arith.constant 9.99999996E-13 : f32
    %226 = vector.broadcast %cst_76 : f32 to vector<16x1xf32>
    %227 = arith.addf %223, %226 : vector<16x1xf32>
    %228 = math.rsqrt %227 : vector<16x1xf32>
    %229 = vector.broadcast %228 : vector<16x1xf32> to vector<16x32xf32>
    %230 = arith.mulf %225, %229 : vector<16x32xf32>
    %231 = vector.broadcast %209 : vector<1x32xf32> to vector<16x32xf32>
    %232 = arith.mulf %230, %231 : vector<16x32xf32>
    %233 = vector.broadcast %212 : vector<1x32xf32> to vector<16x32xf32>
    %234 = arith.addf %232, %233 : vector<16x32xf32>
    %235 = arith.truncf %234 : vector<16x32xf32> to vector<16x32xbf16>
    %236 = arith.index_cast %c0_i32 : i32 to index
    %c0_77 = arith.constant 0 : index
    %c0_78 = arith.constant 0 : index
    %237 = vector.load %arg14[%236, %c0_77, %c0_78] : memref<2x32x64xbf16, #tpu.memory_space<vmem>>, vector<1x32x64xbf16>
    %238 = vector.shape_cast %237 : vector<1x32x64xbf16> to vector<32x64xbf16>
    %cst_79 = arith.constant dense<0.000000e+00> : vector<16x64xf32>
    %239 = tpu.matmul %235, %238, %cst_79 {dimension_numbers = #tpu.dot_dimension_numbers<[1], [0], [0], [1], [0, 0, 1, 1], [], []>} : vector<16x32xbf16>, vector<32x64xbf16>, vector<16x64xf32> -> vector<16x64xf32>
    %240 = arith.index_cast %c0_i32 : i32 to index
    %c0_80 = arith.constant 0 : index
    %c0_81 = arith.constant 0 : index
    %241 = vector.load %arg15[%240, %c0_80, %c0_81] : memref<2x1x64xf32, #tpu.memory_space<vmem>>, vector<1x1x64xf32>
    %242 = vector.shape_cast %241 : vector<1x1x64xf32> to vector<1x64xf32>
    %243 = vector.broadcast %242 : vector<1x64xf32> to vector<16x64xf32>
    %244 = arith.addf %239, %243 : vector<16x64xf32>
    %245 = arith.mulf %244, %244 : vector<16x64xf32>
    %246 = arith.mulf %244, %245 : vector<16x64xf32>
    %cst_82 = arith.constant 4.471500e-02 : f32
    %247 = vector.broadcast %cst_82 : f32 to vector<16x64xf32>
    %248 = arith.mulf %247, %246 : vector<16x64xf32>
    %249 = arith.addf %244, %248 : vector<16x64xf32>
    %cst_83 = arith.constant 0.797884583 : f32
    %250 = vector.broadcast %cst_83 : f32 to vector<16x64xf32>
    %251 = arith.mulf %250, %249 : vector<16x64xf32>
    %252 = math.tanh %251 : vector<16x64xf32>
    %cst_84 = arith.constant 1.000000e+00 : f32
    %253 = vector.broadcast %cst_84 : f32 to vector<16x64xf32>
    %254 = arith.addf %253, %252 : vector<16x64xf32>
    %cst_85 = arith.constant 5.000000e-01 : f32
    %255 = vector.broadcast %cst_85 : f32 to vector<16x64xf32>
    %256 = arith.mulf %255, %254 : vector<16x64xf32>
    %257 = arith.mulf %244, %256 : vector<16x64xf32>
    %258 = arith.truncf %257 : vector<16x64xf32> to vector<16x64xbf16>
    %259 = arith.index_cast %c0_i32 : i32 to index
    %c0_86 = arith.constant 0 : index
    %c0_87 = arith.constant 0 : index
    %260 = vector.load %arg16[%259, %c0_86, %c0_87] : memref<2x64x32xbf16, #tpu.memory_space<vmem>>, vector<1x64x32xbf16>
    %261 = vector.shape_cast %260 : vector<1x64x32xbf16> to vector<64x32xbf16>
    %cst_88 = arith.constant dense<0.000000e+00> : vector<16x32xf32>
    %262 = tpu.matmul %258, %261, %cst_88 {dimension_numbers = #tpu.dot_dimension_numbers<[1], [0], [0], [1], [0, 0, 1, 1], [], []>} : vector<16x64xbf16>, vector<64x32xbf16>, vector<16x32xf32> -> vector<16x32xf32>
    %263 = arith.index_cast %c0_i32 : i32 to index
    %c0_89 = arith.constant 0 : index
    %c0_90 = arith.constant 0 : index
    %264 = vector.load %arg17[%263, %c0_89, %c0_90] : memref<2x1x32xf32, #tpu.memory_space<vmem>>, vector<1x1x32xf32>
    %265 = vector.shape_cast %264 : vector<1x1x32xf32> to vector<1x32xf32>
    %266 = vector.broadcast %265 : vector<1x32xf32> to vector<16x32xf32>
    %267 = arith.addf %262, %266 : vector<16x32xf32>
    %268 = arith.addf %234, %267 : vector<16x32xf32>
    %269 = arith.index_cast %c0_i32 : i32 to index
    %c0_91 = arith.constant 0 : index
    %c0_92 = arith.constant 0 : index
    %270 = vector.load %arg18[%269, %c0_91, %c0_92] : memref<2x1x32xf32, #tpu.memory_space<vmem>>, vector<1x1x32xf32>
    %271 = vector.shape_cast %270 : vector<1x1x32xf32> to vector<1x32xf32>
    %272 = arith.index_cast %c0_i32 : i32 to index
    %c0_93 = arith.constant 0 : index
    %c0_94 = arith.constant 0 : index
    %273 = vector.load %arg19[%272, %c0_93, %c0_94] : memref<2x1x32xf32, #tpu.memory_space<vmem>>, vector<1x1x32xf32>
    %274 = vector.shape_cast %273 : vector<1x1x32xf32> to vector<1x32xf32>
    %cst_95 = arith.constant dense<0.000000e+00> : vector<16xf32>
    %275 = vector.multi_reduction <add>, %268, %cst_95 [1] : vector<16x32xf32> to vector<16xf32>
    %276 = vector.shape_cast %275 : vector<16xf32> to vector<16x1xf32>
    %cst_96 = arith.constant 3.200000e+01 : f32
    %277 = vector.broadcast %cst_96 : f32 to vector<16x1xf32>
    %278 = arith.divf %276, %277 : vector<16x1xf32>
    %279 = vector.broadcast %278 : vector<16x1xf32> to vector<16x32xf32>
    %280 = arith.subf %268, %279 : vector<16x32xf32>
    %281 = arith.mulf %280, %280 : vector<16x32xf32>
    %cst_97 = arith.constant dense<0.000000e+00> : vector<16xf32>
    %282 = vector.multi_reduction <add>, %281, %cst_97 [1] : vector<16x32xf32> to vector<16xf32>
    %283 = vector.shape_cast %282 : vector<16xf32> to vector<16x1xf32>
    %cst_98 = arith.constant 3.200000e+01 : f32
    %284 = vector.broadcast %cst_98 : f32 to vector<16x1xf32>
    %285 = arith.divf %283, %284 : vector<16x1xf32>
    %286 = vector.broadcast %278 : vector<16x1xf32> to vector<16x32xf32>
    %287 = arith.subf %268, %286 : vector<16x32xf32>
    %cst_99 = arith.constant 9.99999996E-13 : f32
    %288 = vector.broadcast %cst_99 : f32 to vector<16x1xf32>
    %289 = arith.addf %285, %288 : vector<16x1xf32>
    %290 = math.rsqrt %289 : vector<16x1xf32>
    %291 = vector.broadcast %290 : vector<16x1xf32> to vector<16x32xf32>
    %292 = arith.mulf %287, %291 : vector<16x32xf32>
    %293 = vector.broadcast %271 : vector<1x32xf32> to vector<16x32xf32>
    %294 = arith.mulf %292, %293 : vector<16x32xf32>
    %295 = vector.broadcast %274 : vector<1x32xf32> to vector<16x32xf32>
    %296 = arith.addf %294, %295 : vector<16x32xf32>
    %c1_i32_100 = arith.constant 1 : i32
    %297 = arith.truncf %296 : vector<16x32xf32> to vector<16x32xbf16>
    %298 = arith.index_cast %c1_i32_100 : i32 to index
    %c0_101 = arith.constant 0 : index
    %c0_102 = arith.constant 0 : index
    %299 = vector.load %arg4[%298, %c0_101, %c0_102] : memref<2x32x32xbf16, #tpu.memory_space<vmem>>, vector<1x32x32xbf16>
    %300 = vector.shape_cast %299 : vector<1x32x32xbf16> to vector<32x32xbf16>
    %cst_103 = arith.constant dense<0.000000e+00> : vector<16x32xf32>
    %301 = tpu.matmul %297, %300, %cst_103 {dimension_numbers = #tpu.dot_dimension_numbers<[1], [0], [0], [1], [0, 0, 1, 1], [], []>} : vector<16x32xbf16>, vector<32x32xbf16>, vector<16x32xf32> -> vector<16x32xf32>
    %302 = arith.index_cast %c1_i32_100 : i32 to index
    %c0_104 = arith.constant 0 : index
    %c0_105 = arith.constant 0 : index
    %303 = vector.load %arg5[%302, %c0_104, %c0_105] : memref<2x1x32xf32, #tpu.memory_space<vmem>>, vector<1x1x32xf32>
    %304 = vector.shape_cast %303 : vector<1x1x32xf32> to vector<1x32xf32>
    %305 = vector.broadcast %304 : vector<1x32xf32> to vector<16x32xf32>
    %306 = arith.addf %301, %305 : vector<16x32xf32>
    %307 = arith.index_cast %c1_i32_100 : i32 to index
    %c0_106 = arith.constant 0 : index
    %c0_107 = arith.constant 0 : index
    %308 = vector.load %arg6[%307, %c0_106, %c0_107] : memref<2x32x32xbf16, #tpu.memory_space<vmem>>, vector<1x32x32xbf16>
    %309 = vector.shape_cast %308 : vector<1x32x32xbf16> to vector<32x32xbf16>
    %cst_108 = arith.constant dense<0.000000e+00> : vector<16x32xf32>
    %310 = tpu.matmul %297, %309, %cst_108 {dimension_numbers = #tpu.dot_dimension_numbers<[1], [0], [0], [1], [0, 0, 1, 1], [], []>} : vector<16x32xbf16>, vector<32x32xbf16>, vector<16x32xf32> -> vector<16x32xf32>
    %311 = arith.index_cast %c1_i32_100 : i32 to index
    %c0_109 = arith.constant 0 : index
    %c0_110 = arith.constant 0 : index
    %312 = vector.load %arg7[%311, %c0_109, %c0_110] : memref<2x1x32xf32, #tpu.memory_space<vmem>>, vector<1x1x32xf32>
    %313 = vector.shape_cast %312 : vector<1x1x32xf32> to vector<1x32xf32>
    %314 = vector.broadcast %313 : vector<1x32xf32> to vector<16x32xf32>
    %315 = arith.addf %310, %314 : vector<16x32xf32>
    %316 = arith.index_cast %c1_i32_100 : i32 to index
    %c0_111 = arith.constant 0 : index
    %c0_112 = arith.constant 0 : index
    %317 = vector.load %arg8[%316, %c0_111, %c0_112] : memref<2x32x32xbf16, #tpu.memory_space<vmem>>, vector<1x32x32xbf16>
    %318 = vector.shape_cast %317 : vector<1x32x32xbf16> to vector<32x32xbf16>
    %cst_113 = arith.constant dense<0.000000e+00> : vector<16x32xf32>
    %319 = tpu.matmul %297, %318, %cst_113 {dimension_numbers = #tpu.dot_dimension_numbers<[1], [0], [0], [1], [0, 0, 1, 1], [], []>} : vector<16x32xbf16>, vector<32x32xbf16>, vector<16x32xf32> -> vector<16x32xf32>
    %320 = arith.index_cast %c1_i32_100 : i32 to index
    %c0_114 = arith.constant 0 : index
    %c0_115 = arith.constant 0 : index
    %321 = vector.load %arg9[%320, %c0_114, %c0_115] : memref<2x1x32xf32, #tpu.memory_space<vmem>>, vector<1x1x32xf32>
    %322 = vector.shape_cast %321 : vector<1x1x32xf32> to vector<1x32xf32>
    %323 = vector.broadcast %322 : vector<1x32xf32> to vector<16x32xf32>
    %324 = arith.addf %319, %323 : vector<16x32xf32>
    %cst_116 = arith.constant 0.000000e+00 : f32
    %325 = vector.broadcast %cst_116 : f32 to vector<16x32xf32>
    %326 = vector.extract_strided_slice %306 {offsets = [0, 0], sizes = [16, 8], strides = [1, 1]} : vector<16x32xf32> to vector<16x8xf32>
    %327 = vector.shape_cast %326 : vector<16x8xf32> to vector<2x8x8xf32>
    %328 = arith.truncf %327 : vector<2x8x8xf32> to vector<2x8x8xbf16>
    %329 = vector.extract_strided_slice %315 {offsets = [0, 0], sizes = [16, 8], strides = [1, 1]} : vector<16x32xf32> to vector<16x8xf32>
    %330 = vector.shape_cast %329 : vector<16x8xf32> to vector<2x8x8xf32>
    %331 = arith.truncf %330 : vector<2x8x8xf32> to vector<2x8x8xbf16>
    %332 = vector.extract_strided_slice %324 {offsets = [0, 0], sizes = [16, 8], strides = [1, 1]} : vector<16x32xf32> to vector<16x8xf32>
    %333 = vector.shape_cast %332 : vector<16x8xf32> to vector<2x8x8xf32>
    %334 = arith.truncf %333 : vector<2x8x8xf32> to vector<2x8x8xbf16>
    "tpu.trace_start"() <{level = 10 : i32, message = "bqd,bkd->bqk"}> : () -> ()
    %cst_117 = arith.constant dense<0.000000e+00> : vector<2x8x8xf32>
    %335 = tpu.matmul %328, %331, %cst_117 {dimension_numbers = #tpu.dot_dimension_numbers<[2], [2], [1], [1], [0, 0, 0, 1, 1, 1], [0], [0]>} : vector<2x8x8xbf16>, vector<2x8x8xbf16>, vector<2x8x8xf32> -> vector<2x8x8xf32>
    "tpu.trace_stop"() : () -> ()
    %cst_118 = arith.constant 0.353553385 : f32
    %336 = vector.broadcast %cst_118 : f32 to vector<2x8x8xf32>
    %337 = arith.mulf %335, %336 : vector<2x8x8xf32>
    %338 = vector.broadcast %31 : vector<2x1x8xf32> to vector<2x8x8xf32>
    %339 = arith.addf %337, %338 : vector<2x8x8xf32>
    %cst_119 = arith.constant dense<0xFF800000> : vector<2x8xf32>
    %340 = vector.multi_reduction <maximumf>, %339, %cst_119 [2] : vector<2x8x8xf32> to vector<2x8xf32>
    %341 = vector.shape_cast %340 : vector<2x8xf32> to vector<2x8x1xf32>
    %342 = vector.broadcast %341 : vector<2x8x1xf32> to vector<2x8x8xf32>
    %343 = arith.subf %339, %342 : vector<2x8x8xf32>
    %344 = math.exp %343 : vector<2x8x8xf32>
    %cst_120 = arith.constant dense<0.000000e+00> : vector<2x8xf32>
    %345 = vector.multi_reduction <add>, %344, %cst_120 [2] : vector<2x8x8xf32> to vector<2x8xf32>
    %346 = vector.shape_cast %345 : vector<2x8xf32> to vector<2x8x1xf32>
    %347 = tpu.reciprocal %346 {approx = true} : vector<2x8x1xf32> -> vector<2x8x1xf32>
    %348 = vector.broadcast %347 : vector<2x8x1xf32> to vector<2x8x8xf32>
    %349 = arith.mulf %344, %348 : vector<2x8x8xf32>
    %350 = arith.truncf %349 : vector<2x8x8xf32> to vector<2x8x8xbf16>
    "tpu.trace_start"() <{level = 10 : i32, message = "bqk,bkd->bqd"}> : () -> ()
    %cst_121 = arith.constant dense<0.000000e+00> : vector<2x8x8xf32>
    %351 = tpu.matmul %350, %334, %cst_121 {dimension_numbers = #tpu.dot_dimension_numbers<[2], [1], [1], [2], [0, 0, 0, 1, 1, 2], [0], [0]>} : vector<2x8x8xbf16>, vector<2x8x8xbf16>, vector<2x8x8xf32> -> vector<2x8x8xf32>
    "tpu.trace_stop"() : () -> ()
    %352 = vector.shape_cast %351 : vector<2x8x8xf32> to vector<16x8xf32>
    %353 = arith.truncf %352 : vector<16x8xf32> to vector<16x8xbf16>
    %c4_i32_122 = arith.constant 4 : i32
    %354 = arith.muli %c1_i32_100, %c4_i32_122 : i32
    %c0_i32_123 = arith.constant 0 : i32
    %355 = arith.addi %354, %c0_i32_123 : i32
    %356 = arith.index_cast %355 : i32 to index
    %c0_124 = arith.constant 0 : index
    %c0_125 = arith.constant 0 : index
    %357 = vector.load %arg10[%356, %c0_124, %c0_125] : memref<8x8x32xbf16, #tpu.memory_space<vmem>>, vector<1x8x32xbf16>
    %358 = vector.shape_cast %357 : vector<1x8x32xbf16> to vector<8x32xbf16>
    %cst_126 = arith.constant dense<0.000000e+00> : vector<16x32xf32>
    %359 = tpu.matmul %353, %358, %cst_126 {dimension_numbers = #tpu.dot_dimension_numbers<[1], [0], [0], [1], [0, 0, 1, 1], [], []>} : vector<16x8xbf16>, vector<8x32xbf16>, vector<16x32xf32> -> vector<16x32xf32>
    %360 = arith.addf %325, %359 : vector<16x32xf32>
    %361 = vector.extract_strided_slice %306 {offsets = [0, 8], sizes = [16, 8], strides = [1, 1]} : vector<16x32xf32> to vector<16x8xf32>
    %362 = vector.shape_cast %361 : vector<16x8xf32> to vector<2x8x8xf32>
    %363 = arith.truncf %362 : vector<2x8x8xf32> to vector<2x8x8xbf16>
    %364 = vector.extract_strided_slice %315 {offsets = [0, 8], sizes = [16, 8], strides = [1, 1]} : vector<16x32xf32> to vector<16x8xf32>
    %365 = vector.shape_cast %364 : vector<16x8xf32> to vector<2x8x8xf32>
    %366 = arith.truncf %365 : vector<2x8x8xf32> to vector<2x8x8xbf16>
    %367 = vector.extract_strided_slice %324 {offsets = [0, 8], sizes = [16, 8], strides = [1, 1]} : vector<16x32xf32> to vector<16x8xf32>
    %368 = vector.shape_cast %367 : vector<16x8xf32> to vector<2x8x8xf32>
    %369 = arith.truncf %368 : vector<2x8x8xf32> to vector<2x8x8xbf16>
    "tpu.trace_start"() <{level = 10 : i32, message = "bqd,bkd->bqk"}> : () -> ()
    %cst_127 = arith.constant dense<0.000000e+00> : vector<2x8x8xf32>
    %370 = tpu.matmul %363, %366, %cst_127 {dimension_numbers = #tpu.dot_dimension_numbers<[2], [2], [1], [1], [0, 0, 0, 1, 1, 1], [0], [0]>} : vector<2x8x8xbf16>, vector<2x8x8xbf16>, vector<2x8x8xf32> -> vector<2x8x8xf32>
    "tpu.trace_stop"() : () -> ()
    %cst_128 = arith.constant 0.353553385 : f32
    %371 = vector.broadcast %cst_128 : f32 to vector<2x8x8xf32>
    %372 = arith.mulf %370, %371 : vector<2x8x8xf32>
    %373 = vector.broadcast %31 : vector<2x1x8xf32> to vector<2x8x8xf32>
    %374 = arith.addf %372, %373 : vector<2x8x8xf32>
    %cst_129 = arith.constant dense<0xFF800000> : vector<2x8xf32>
    %375 = vector.multi_reduction <maximumf>, %374, %cst_129 [2] : vector<2x8x8xf32> to vector<2x8xf32>
    %376 = vector.shape_cast %375 : vector<2x8xf32> to vector<2x8x1xf32>
    %377 = vector.broadcast %376 : vector<2x8x1xf32> to vector<2x8x8xf32>
    %378 = arith.subf %374, %377 : vector<2x8x8xf32>
    %379 = math.exp %378 : vector<2x8x8xf32>
    %cst_130 = arith.constant dense<0.000000e+00> : vector<2x8xf32>
    %380 = vector.multi_reduction <add>, %379, %cst_130 [2] : vector<2x8x8xf32> to vector<2x8xf32>
    %381 = vector.shape_cast %380 : vector<2x8xf32> to vector<2x8x1xf32>
    %382 = tpu.reciprocal %381 {approx = true} : vector<2x8x1xf32> -> vector<2x8x1xf32>
    %383 = vector.broadcast %382 : vector<2x8x1xf32> to vector<2x8x8xf32>
    %384 = arith.mulf %379, %383 : vector<2x8x8xf32>
    %385 = arith.truncf %384 : vector<2x8x8xf32> to vector<2x8x8xbf16>
    "tpu.trace_start"() <{level = 10 : i32, message = "bqk,bkd->bqd"}> : () -> ()
    %cst_131 = arith.constant dense<0.000000e+00> : vector<2x8x8xf32>
    %386 = tpu.matmul %385, %369, %cst_131 {dimension_numbers = #tpu.dot_dimension_numbers<[2], [1], [1], [2], [0, 0, 0, 1, 1, 2], [0], [0]>} : vector<2x8x8xbf16>, vector<2x8x8xbf16>, vector<2x8x8xf32> -> vector<2x8x8xf32>
    "tpu.trace_stop"() : () -> ()
    %387 = vector.shape_cast %386 : vector<2x8x8xf32> to vector<16x8xf32>
    %388 = arith.truncf %387 : vector<16x8xf32> to vector<16x8xbf16>
    %c4_i32_132 = arith.constant 4 : i32
    %389 = arith.muli %c1_i32_100, %c4_i32_132 : i32
    %c1_i32_133 = arith.constant 1 : i32
    %390 = arith.addi %389, %c1_i32_133 : i32
    %391 = arith.index_cast %390 : i32 to index
    %c0_134 = arith.constant 0 : index
    %c0_135 = arith.constant 0 : index
    %392 = vector.load %arg10[%391, %c0_134, %c0_135] : memref<8x8x32xbf16, #tpu.memory_space<vmem>>, vector<1x8x32xbf16>
    %393 = vector.shape_cast %392 : vector<1x8x32xbf16> to vector<8x32xbf16>
    %cst_136 = arith.constant dense<0.000000e+00> : vector<16x32xf32>
    %394 = tpu.matmul %388, %393, %cst_136 {dimension_numbers = #tpu.dot_dimension_numbers<[1], [0], [0], [1], [0, 0, 1, 1], [], []>} : vector<16x8xbf16>, vector<8x32xbf16>, vector<16x32xf32> -> vector<16x32xf32>
    %395 = arith.addf %360, %394 : vector<16x32xf32>
    %396 = vector.extract_strided_slice %306 {offsets = [0, 16], sizes = [16, 8], strides = [1, 1]} : vector<16x32xf32> to vector<16x8xf32>
    %397 = vector.shape_cast %396 : vector<16x8xf32> to vector<2x8x8xf32>
    %398 = arith.truncf %397 : vector<2x8x8xf32> to vector<2x8x8xbf16>
    %399 = vector.extract_strided_slice %315 {offsets = [0, 16], sizes = [16, 8], strides = [1, 1]} : vector<16x32xf32> to vector<16x8xf32>
    %400 = vector.shape_cast %399 : vector<16x8xf32> to vector<2x8x8xf32>
    %401 = arith.truncf %400 : vector<2x8x8xf32> to vector<2x8x8xbf16>
    %402 = vector.extract_strided_slice %324 {offsets = [0, 16], sizes = [16, 8], strides = [1, 1]} : vector<16x32xf32> to vector<16x8xf32>
    %403 = vector.shape_cast %402 : vector<16x8xf32> to vector<2x8x8xf32>
    %404 = arith.truncf %403 : vector<2x8x8xf32> to vector<2x8x8xbf16>
    "tpu.trace_start"() <{level = 10 : i32, message = "bqd,bkd->bqk"}> : () -> ()
    %cst_137 = arith.constant dense<0.000000e+00> : vector<2x8x8xf32>
    %405 = tpu.matmul %398, %401, %cst_137 {dimension_numbers = #tpu.dot_dimension_numbers<[2], [2], [1], [1], [0, 0, 0, 1, 1, 1], [0], [0]>} : vector<2x8x8xbf16>, vector<2x8x8xbf16>, vector<2x8x8xf32> -> vector<2x8x8xf32>
    "tpu.trace_stop"() : () -> ()
    %cst_138 = arith.constant 0.353553385 : f32
    %406 = vector.broadcast %cst_138 : f32 to vector<2x8x8xf32>
    %407 = arith.mulf %405, %406 : vector<2x8x8xf32>
    %408 = vector.broadcast %31 : vector<2x1x8xf32> to vector<2x8x8xf32>
    %409 = arith.addf %407, %408 : vector<2x8x8xf32>
    %cst_139 = arith.constant dense<0xFF800000> : vector<2x8xf32>
    %410 = vector.multi_reduction <maximumf>, %409, %cst_139 [2] : vector<2x8x8xf32> to vector<2x8xf32>
    %411 = vector.shape_cast %410 : vector<2x8xf32> to vector<2x8x1xf32>
    %412 = vector.broadcast %411 : vector<2x8x1xf32> to vector<2x8x8xf32>
    %413 = arith.subf %409, %412 : vector<2x8x8xf32>
    %414 = math.exp %413 : vector<2x8x8xf32>
    %cst_140 = arith.constant dense<0.000000e+00> : vector<2x8xf32>
    %415 = vector.multi_reduction <add>, %414, %cst_140 [2] : vector<2x8x8xf32> to vector<2x8xf32>
    %416 = vector.shape_cast %415 : vector<2x8xf32> to vector<2x8x1xf32>
    %417 = tpu.reciprocal %416 {approx = true} : vector<2x8x1xf32> -> vector<2x8x1xf32>
    %418 = vector.broadcast %417 : vector<2x8x1xf32> to vector<2x8x8xf32>
    %419 = arith.mulf %414, %418 : vector<2x8x8xf32>
    %420 = arith.truncf %419 : vector<2x8x8xf32> to vector<2x8x8xbf16>
    "tpu.trace_start"() <{level = 10 : i32, message = "bqk,bkd->bqd"}> : () -> ()
    %cst_141 = arith.constant dense<0.000000e+00> : vector<2x8x8xf32>
    %421 = tpu.matmul %420, %404, %cst_141 {dimension_numbers = #tpu.dot_dimension_numbers<[2], [1], [1], [2], [0, 0, 0, 1, 1, 2], [0], [0]>} : vector<2x8x8xbf16>, vector<2x8x8xbf16>, vector<2x8x8xf32> -> vector<2x8x8xf32>
    "tpu.trace_stop"() : () -> ()
    %422 = vector.shape_cast %421 : vector<2x8x8xf32> to vector<16x8xf32>
    %423 = arith.truncf %422 : vector<16x8xf32> to vector<16x8xbf16>
    %c4_i32_142 = arith.constant 4 : i32
    %424 = arith.muli %c1_i32_100, %c4_i32_142 : i32
    %c2_i32_143 = arith.constant 2 : i32
    %425 = arith.addi %424, %c2_i32_143 : i32
    %426 = arith.index_cast %425 : i32 to index
    %c0_144 = arith.constant 0 : index
    %c0_145 = arith.constant 0 : index
    %427 = vector.load %arg10[%426, %c0_144, %c0_145] : memref<8x8x32xbf16, #tpu.memory_space<vmem>>, vector<1x8x32xbf16>
    %428 = vector.shape_cast %427 : vector<1x8x32xbf16> to vector<8x32xbf16>
    %cst_146 = arith.constant dense<0.000000e+00> : vector<16x32xf32>
    %429 = tpu.matmul %423, %428, %cst_146 {dimension_numbers = #tpu.dot_dimension_numbers<[1], [0], [0], [1], [0, 0, 1, 1], [], []>} : vector<16x8xbf16>, vector<8x32xbf16>, vector<16x32xf32> -> vector<16x32xf32>
    %430 = arith.addf %395, %429 : vector<16x32xf32>
    %431 = vector.extract_strided_slice %306 {offsets = [0, 24], sizes = [16, 8], strides = [1, 1]} : vector<16x32xf32> to vector<16x8xf32>
    %432 = vector.shape_cast %431 : vector<16x8xf32> to vector<2x8x8xf32>
    %433 = arith.truncf %432 : vector<2x8x8xf32> to vector<2x8x8xbf16>
    %434 = vector.extract_strided_slice %315 {offsets = [0, 24], sizes = [16, 8], strides = [1, 1]} : vector<16x32xf32> to vector<16x8xf32>
    %435 = vector.shape_cast %434 : vector<16x8xf32> to vector<2x8x8xf32>
    %436 = arith.truncf %435 : vector<2x8x8xf32> to vector<2x8x8xbf16>
    %437 = vector.extract_strided_slice %324 {offsets = [0, 24], sizes = [16, 8], strides = [1, 1]} : vector<16x32xf32> to vector<16x8xf32>
    %438 = vector.shape_cast %437 : vector<16x8xf32> to vector<2x8x8xf32>
    %439 = arith.truncf %438 : vector<2x8x8xf32> to vector<2x8x8xbf16>
    "tpu.trace_start"() <{level = 10 : i32, message = "bqd,bkd->bqk"}> : () -> ()
    %cst_147 = arith.constant dense<0.000000e+00> : vector<2x8x8xf32>
    %440 = tpu.matmul %433, %436, %cst_147 {dimension_numbers = #tpu.dot_dimension_numbers<[2], [2], [1], [1], [0, 0, 0, 1, 1, 1], [0], [0]>} : vector<2x8x8xbf16>, vector<2x8x8xbf16>, vector<2x8x8xf32> -> vector<2x8x8xf32>
    "tpu.trace_stop"() : () -> ()
    %cst_148 = arith.constant 0.353553385 : f32
    %441 = vector.broadcast %cst_148 : f32 to vector<2x8x8xf32>
    %442 = arith.mulf %440, %441 : vector<2x8x8xf32>
    %443 = vector.broadcast %31 : vector<2x1x8xf32> to vector<2x8x8xf32>
    %444 = arith.addf %442, %443 : vector<2x8x8xf32>
    %cst_149 = arith.constant dense<0xFF800000> : vector<2x8xf32>
    %445 = vector.multi_reduction <maximumf>, %444, %cst_149 [2] : vector<2x8x8xf32> to vector<2x8xf32>
    %446 = vector.shape_cast %445 : vector<2x8xf32> to vector<2x8x1xf32>
    %447 = vector.broadcast %446 : vector<2x8x1xf32> to vector<2x8x8xf32>
    %448 = arith.subf %444, %447 : vector<2x8x8xf32>
    %449 = math.exp %448 : vector<2x8x8xf32>
    %cst_150 = arith.constant dense<0.000000e+00> : vector<2x8xf32>
    %450 = vector.multi_reduction <add>, %449, %cst_150 [2] : vector<2x8x8xf32> to vector<2x8xf32>
    %451 = vector.shape_cast %450 : vector<2x8xf32> to vector<2x8x1xf32>
    %452 = tpu.reciprocal %451 {approx = true} : vector<2x8x1xf32> -> vector<2x8x1xf32>
    %453 = vector.broadcast %452 : vector<2x8x1xf32> to vector<2x8x8xf32>
    %454 = arith.mulf %449, %453 : vector<2x8x8xf32>
    %455 = arith.truncf %454 : vector<2x8x8xf32> to vector<2x8x8xbf16>
    "tpu.trace_start"() <{level = 10 : i32, message = "bqk,bkd->bqd"}> : () -> ()
    %cst_151 = arith.constant dense<0.000000e+00> : vector<2x8x8xf32>
    %456 = tpu.matmul %455, %439, %cst_151 {dimension_numbers = #tpu.dot_dimension_numbers<[2], [1], [1], [2], [0, 0, 0, 1, 1, 2], [0], [0]>} : vector<2x8x8xbf16>, vector<2x8x8xbf16>, vector<2x8x8xf32> -> vector<2x8x8xf32>
    "tpu.trace_stop"() : () -> ()
    %457 = vector.shape_cast %456 : vector<2x8x8xf32> to vector<16x8xf32>
    %458 = arith.truncf %457 : vector<16x8xf32> to vector<16x8xbf16>
    %c4_i32_152 = arith.constant 4 : i32
    %459 = arith.muli %c1_i32_100, %c4_i32_152 : i32
    %c3_i32_153 = arith.constant 3 : i32
    %460 = arith.addi %459, %c3_i32_153 : i32
    %461 = arith.index_cast %460 : i32 to index
    %c0_154 = arith.constant 0 : index
    %c0_155 = arith.constant 0 : index
    %462 = vector.load %arg10[%461, %c0_154, %c0_155] : memref<8x8x32xbf16, #tpu.memory_space<vmem>>, vector<1x8x32xbf16>
    %463 = vector.shape_cast %462 : vector<1x8x32xbf16> to vector<8x32xbf16>
    %cst_156 = arith.constant dense<0.000000e+00> : vector<16x32xf32>
    %464 = tpu.matmul %458, %463, %cst_156 {dimension_numbers = #tpu.dot_dimension_numbers<[1], [0], [0], [1], [0, 0, 1, 1], [], []>} : vector<16x8xbf16>, vector<8x32xbf16>, vector<16x32xf32> -> vector<16x32xf32>
    %465 = arith.addf %430, %464 : vector<16x32xf32>
    %466 = arith.index_cast %c1_i32_100 : i32 to index
    %c0_157 = arith.constant 0 : index
    %c0_158 = arith.constant 0 : index
    %467 = vector.load %arg11[%466, %c0_157, %c0_158] : memref<2x1x32xf32, #tpu.memory_space<vmem>>, vector<1x1x32xf32>
    %468 = vector.shape_cast %467 : vector<1x1x32xf32> to vector<1x32xf32>
    %469 = vector.broadcast %468 : vector<1x32xf32> to vector<16x32xf32>
    %470 = arith.addf %465, %469 : vector<16x32xf32>
    %471 = arith.addf %296, %470 : vector<16x32xf32>
    %472 = arith.index_cast %c1_i32_100 : i32 to index
    %c0_159 = arith.constant 0 : index
    %c0_160 = arith.constant 0 : index
    %473 = vector.load %arg12[%472, %c0_159, %c0_160] : memref<2x1x32xf32, #tpu.memory_space<vmem>>, vector<1x1x32xf32>
    %474 = vector.shape_cast %473 : vector<1x1x32xf32> to vector<1x32xf32>
    %475 = arith.index_cast %c1_i32_100 : i32 to index
    %c0_161 = arith.constant 0 : index
    %c0_162 = arith.constant 0 : index
    %476 = vector.load %arg13[%475, %c0_161, %c0_162] : memref<2x1x32xf32, #tpu.memory_space<vmem>>, vector<1x1x32xf32>
    %477 = vector.shape_cast %476 : vector<1x1x32xf32> to vector<1x32xf32>
    %cst_163 = arith.constant dense<0.000000e+00> : vector<16xf32>
    %478 = vector.multi_reduction <add>, %471, %cst_163 [1] : vector<16x32xf32> to vector<16xf32>
    %479 = vector.shape_cast %478 : vector<16xf32> to vector<16x1xf32>
    %cst_164 = arith.constant 3.200000e+01 : f32
    %480 = vector.broadcast %cst_164 : f32 to vector<16x1xf32>
    %481 = arith.divf %479, %480 : vector<16x1xf32>
    %482 = vector.broadcast %481 : vector<16x1xf32> to vector<16x32xf32>
    %483 = arith.subf %471, %482 : vector<16x32xf32>
    %484 = arith.mulf %483, %483 : vector<16x32xf32>
    %cst_165 = arith.constant dense<0.000000e+00> : vector<16xf32>
    %485 = vector.multi_reduction <add>, %484, %cst_165 [1] : vector<16x32xf32> to vector<16xf32>
    %486 = vector.shape_cast %485 : vector<16xf32> to vector<16x1xf32>
    %cst_166 = arith.constant 3.200000e+01 : f32
    %487 = vector.broadcast %cst_166 : f32 to vector<16x1xf32>
    %488 = arith.divf %486, %487 : vector<16x1xf32>
    %489 = vector.broadcast %481 : vector<16x1xf32> to vector<16x32xf32>
    %490 = arith.subf %471, %489 : vector<16x32xf32>
    %cst_167 = arith.constant 9.99999996E-13 : f32
    %491 = vector.broadcast %cst_167 : f32 to vector<16x1xf32>
    %492 = arith.addf %488, %491 : vector<16x1xf32>
    %493 = math.rsqrt %492 : vector<16x1xf32>
    %494 = vector.broadcast %493 : vector<16x1xf32> to vector<16x32xf32>
    %495 = arith.mulf %490, %494 : vector<16x32xf32>
    %496 = vector.broadcast %474 : vector<1x32xf32> to vector<16x32xf32>
    %497 = arith.mulf %495, %496 : vector<16x32xf32>
    %498 = vector.broadcast %477 : vector<1x32xf32> to vector<16x32xf32>
    %499 = arith.addf %497, %498 : vector<16x32xf32>
    %500 = arith.truncf %499 : vector<16x32xf32> to vector<16x32xbf16>
    %501 = arith.index_cast %c1_i32_100 : i32 to index
    %c0_168 = arith.constant 0 : index
    %c0_169 = arith.constant 0 : index
    %502 = vector.load %arg14[%501, %c0_168, %c0_169] : memref<2x32x64xbf16, #tpu.memory_space<vmem>>, vector<1x32x64xbf16>
    %503 = vector.shape_cast %502 : vector<1x32x64xbf16> to vector<32x64xbf16>
    %cst_170 = arith.constant dense<0.000000e+00> : vector<16x64xf32>
    %504 = tpu.matmul %500, %503, %cst_170 {dimension_numbers = #tpu.dot_dimension_numbers<[1], [0], [0], [1], [0, 0, 1, 1], [], []>} : vector<16x32xbf16>, vector<32x64xbf16>, vector<16x64xf32> -> vector<16x64xf32>
    %505 = arith.index_cast %c1_i32_100 : i32 to index
    %c0_171 = arith.constant 0 : index
    %c0_172 = arith.constant 0 : index
    %506 = vector.load %arg15[%505, %c0_171, %c0_172] : memref<2x1x64xf32, #tpu.memory_space<vmem>>, vector<1x1x64xf32>
    %507 = vector.shape_cast %506 : vector<1x1x64xf32> to vector<1x64xf32>
    %508 = vector.broadcast %507 : vector<1x64xf32> to vector<16x64xf32>
    %509 = arith.addf %504, %508 : vector<16x64xf32>
    %510 = arith.mulf %509, %509 : vector<16x64xf32>
    %511 = arith.mulf %509, %510 : vector<16x64xf32>
    %cst_173 = arith.constant 4.471500e-02 : f32
    %512 = vector.broadcast %cst_173 : f32 to vector<16x64xf32>
    %513 = arith.mulf %512, %511 : vector<16x64xf32>
    %514 = arith.addf %509, %513 : vector<16x64xf32>
    %cst_174 = arith.constant 0.797884583 : f32
    %515 = vector.broadcast %cst_174 : f32 to vector<16x64xf32>
    %516 = arith.mulf %515, %514 : vector<16x64xf32>
    %517 = math.tanh %516 : vector<16x64xf32>
    %cst_175 = arith.constant 1.000000e+00 : f32
    %518 = vector.broadcast %cst_175 : f32 to vector<16x64xf32>
    %519 = arith.addf %518, %517 : vector<16x64xf32>
    %cst_176 = arith.constant 5.000000e-01 : f32
    %520 = vector.broadcast %cst_176 : f32 to vector<16x64xf32>
    %521 = arith.mulf %520, %519 : vector<16x64xf32>
    %522 = arith.mulf %509, %521 : vector<16x64xf32>
    %523 = arith.truncf %522 : vector<16x64xf32> to vector<16x64xbf16>
    %524 = arith.index_cast %c1_i32_100 : i32 to index
    %c0_177 = arith.constant 0 : index
    %c0_178 = arith.constant 0 : index
    %525 = vector.load %arg16[%524, %c0_177, %c0_178] : memref<2x64x32xbf16, #tpu.memory_space<vmem>>, vector<1x64x32xbf16>
    %526 = vector.shape_cast %525 : vector<1x64x32xbf16> to vector<64x32xbf16>
    %cst_179 = arith.constant dense<0.000000e+00> : vector<16x32xf32>
    %527 = tpu.matmul %523, %526, %cst_179 {dimension_numbers = #tpu.dot_dimension_numbers<[1], [0], [0], [1], [0, 0, 1, 1], [], []>} : vector<16x64xbf16>, vector<64x32xbf16>, vector<16x32xf32> -> vector<16x32xf32>
    %528 = arith.index_cast %c1_i32_100 : i32 to index
    %c0_180 = arith.constant 0 : index
    %c0_181 = arith.constant 0 : index
    %529 = vector.load %arg17[%528, %c0_180, %c0_181] : memref<2x1x32xf32, #tpu.memory_space<vmem>>, vector<1x1x32xf32>
    %530 = vector.shape_cast %529 : vector<1x1x32xf32> to vector<1x32xf32>
    %531 = vector.broadcast %530 : vector<1x32xf32> to vector<16x32xf32>
    %532 = arith.addf %527, %531 : vector<16x32xf32>
    %533 = arith.addf %499, %532 : vector<16x32xf32>
    %534 = arith.index_cast %c1_i32_100 : i32 to index
    %c0_182 = arith.constant 0 : index
    %c0_183 = arith.constant 0 : index
    %535 = vector.load %arg18[%534, %c0_182, %c0_183] : memref<2x1x32xf32, #tpu.memory_space<vmem>>, vector<1x1x32xf32>
    %536 = vector.shape_cast %535 : vector<1x1x32xf32> to vector<1x32xf32>
    %537 = arith.index_cast %c1_i32_100 : i32 to index
    %c0_184 = arith.constant 0 : index
    %c0_185 = arith.constant 0 : index
    %538 = vector.load %arg19[%537, %c0_184, %c0_185] : memref<2x1x32xf32, #tpu.memory_space<vmem>>, vector<1x1x32xf32>
    %539 = vector.shape_cast %538 : vector<1x1x32xf32> to vector<1x32xf32>
    %cst_186 = arith.constant dense<0.000000e+00> : vector<16xf32>
    %540 = vector.multi_reduction <add>, %533, %cst_186 [1] : vector<16x32xf32> to vector<16xf32>
    %541 = vector.shape_cast %540 : vector<16xf32> to vector<16x1xf32>
    %cst_187 = arith.constant 3.200000e+01 : f32
    %542 = vector.broadcast %cst_187 : f32 to vector<16x1xf32>
    %543 = arith.divf %541, %542 : vector<16x1xf32>
    %544 = vector.broadcast %543 : vector<16x1xf32> to vector<16x32xf32>
    %545 = arith.subf %533, %544 : vector<16x32xf32>
    %546 = arith.mulf %545, %545 : vector<16x32xf32>
    %cst_188 = arith.constant dense<0.000000e+00> : vector<16xf32>
    %547 = vector.multi_reduction <add>, %546, %cst_188 [1] : vector<16x32xf32> to vector<16xf32>
    %548 = vector.shape_cast %547 : vector<16xf32> to vector<16x1xf32>
    %cst_189 = arith.constant 3.200000e+01 : f32
    %549 = vector.broadcast %cst_189 : f32 to vector<16x1xf32>
    %550 = arith.divf %548, %549 : vector<16x1xf32>
    %551 = vector.broadcast %543 : vector<16x1xf32> to vector<16x32xf32>
    %552 = arith.subf %533, %551 : vector<16x32xf32>
    %cst_190 = arith.constant 9.99999996E-13 : f32
    %553 = vector.broadcast %cst_190 : f32 to vector<16x1xf32>
    %554 = arith.addf %550, %553 : vector<16x1xf32>
    %555 = math.rsqrt %554 : vector<16x1xf32>
    %556 = vector.broadcast %555 : vector<16x1xf32> to vector<16x32xf32>
    %557 = arith.mulf %552, %556 : vector<16x32xf32>
    %558 = vector.broadcast %536 : vector<1x32xf32> to vector<16x32xf32>
    %559 = arith.mulf %557, %558 : vector<16x32xf32>
    %560 = vector.broadcast %539 : vector<1x32xf32> to vector<16x32xf32>
    %561 = arith.addf %559, %560 : vector<16x32xf32>
    %c2_i32_191 = arith.constant 2 : i32
    %562 = vector.shape_cast %561 : vector<16x32xf32> to vector<2x8x32xf32>
    %563 = vector.extract_strided_slice %562 {offsets = [0, 0, 0], sizes = [2, 1, 32], strides = [1, 1, 1]} : vector<2x8x32xf32> to vector<2x1x32xf32>
    %564 = vector.shape_cast %563 : vector<2x1x32xf32> to vector<2x32xf32>
    %565 = arith.truncf %564 : vector<2x32xf32> to vector<2x32xbf16>
    %c0_192 = arith.constant 0 : index
    %c0_193 = arith.constant 0 : index
    %566 = vector.load %arg20[%c0_192, %c0_193] : memref<32x64xbf16, #tpu.memory_space<vmem>>, vector<32x64xbf16>
    %cst_194 = arith.constant dense<0.000000e+00> : vector<2x64xf32>
    %567 = tpu.matmul %565, %566, %cst_194 {dimension_numbers = #tpu.dot_dimension_numbers<[1], [0], [0], [1], [0, 0, 1, 1], [], []>} : vector<2x32xbf16>, vector<32x64xbf16>, vector<2x64xf32> -> vector<2x64xf32>
    %c0_195 = arith.constant 0 : index
    %c0_196 = arith.constant 0 : index
    %568 = vector.load %arg21[%c0_195, %c0_196] : memref<1x64xf32, #tpu.memory_space<vmem>>, vector<1x64xf32>
    %569 = vector.broadcast %568 : vector<1x64xf32> to vector<2x64xf32>
    %570 = arith.addf %567, %569 : vector<2x64xf32>
    %571 = math.tanh %570 : vector<2x64xf32>
    %572 = arith.truncf %571 : vector<2x64xf32> to vector<2x64xbf16>
    %c0_197 = arith.constant 0 : index
    %c0_198 = arith.constant 0 : index
    %573 = vector.load %arg22[%c0_197, %c0_198] : memref<64x32xbf16, #tpu.memory_space<vmem>>, vector<64x32xbf16>
    %cst_199 = arith.constant dense<0.000000e+00> : vector<2x32xf32>
    %574 = tpu.matmul %572, %573, %cst_199 {dimension_numbers = #tpu.dot_dimension_numbers<[1], [0], [0], [1], [0, 0, 1, 1], [], []>} : vector<2x64xbf16>, vector<64x32xbf16>, vector<2x32xf32> -> vector<2x32xf32>
    %c0_200 = arith.constant 0 : index
    %c0_201 = arith.constant 0 : index
    %575 = vector.load %arg23[%c0_200, %c0_201] : memref<1x32xf32, #tpu.memory_space<vmem>>, vector<1x32xf32>
    %576 = vector.broadcast %575 : vector<1x32xf32> to vector<2x32xf32>
    %577 = arith.addf %574, %576 : vector<2x32xf32>
    %578 = math.tanh %577 : vector<2x32xf32>
    %579 = arith.truncf %578 : vector<2x32xf32> to vector<2x32xbf16>
    %c0_202 = arith.constant 0 : index
    %c0_203 = arith.constant 0 : index
    %580 = vector.load %arg24[%c0_202, %c0_203] : memref<32x4xbf16, #tpu.memory_space<vmem>>, vector<32x4xbf16>
    %cst_204 = arith.constant dense<0.000000e+00> : vector<2x4xf32>
    %581 = tpu.matmul %579, %580, %cst_204 {dimension_numbers = #tpu.dot_dimension_numbers<[1], [0], [0], [1], [0, 0, 1, 1], [], []>} : vector<2x32xbf16>, vector<32x4xbf16>, vector<2x4xf32> -> vector<2x4xf32>
    %c0_205 = arith.constant 0 : index
    %c0_206 = arith.constant 0 : index
    %582 = vector.load %arg25[%c0_205, %c0_206] : memref<1x4xf32, #tpu.memory_space<vmem>>, vector<1x4xf32>
    %583 = vector.broadcast %582 : vector<1x4xf32> to vector<2x4xf32>
    %584 = arith.addf %581, %583 : vector<2x4xf32>
    %cst_207 = arith.constant dense<0xFF800000> : vector<2xf32>
    %585 = vector.multi_reduction <maximumf>, %584, %cst_207 [1] : vector<2x4xf32> to vector<2xf32>
    %586 = vector.shape_cast %585 : vector<2xf32> to vector<2x1xf32>
    %587 = vector.broadcast %586 : vector<2x1xf32> to vector<2x4xf32>
    %588 = arith.subf %584, %587 : vector<2x4xf32>
    %589 = math.exp %588 : vector<2x4xf32>
    %cst_208 = arith.constant dense<0.000000e+00> : vector<2xf32>
    %590 = vector.multi_reduction <add>, %589, %cst_208 [1] : vector<2x4xf32> to vector<2xf32>
    %591 = vector.shape_cast %590 : vector<2xf32> to vector<2x1xf32>
    %592 = vector.broadcast %591 : vector<2x1xf32> to vector<2x4xf32>
    %593 = arith.divf %589, %592 : vector<2x4xf32>
    %c0_209 = arith.constant 0 : index
    %c0_210 = arith.constant 0 : index
    %594 = vector.load %arg26[%c0_209, %c0_210] : memref<2x4xf32, #tpu.memory_space<vmem>>, vector<2x4xf32>
    tpu.vector_store %arg26[%c0_209, %c0_210], %593 {strides = array<i32>} : memref<2x4xf32, #tpu.memory_space<vmem>>, vector<2x4xf32>,
    return
  }
}

</mosaic_0001>

<bundles_post_ra>
// kernel: mlm_for_classification_forward.1
= control target key start
LH: loop header
LB: loop body
LE: loop exit
PB: predicated region body
PF: predicated region fallthrough
CT: control target
= control target key end

     0   :  { %s5228_s0 = inlined_call_operand.vmem [shape: f32[2,8,32], index: 0, kind: input, shape index: {}]   ;;  %s5229_s1 = inlined_call_operand.vmem [shape: f32[2,8], index: 1, kind: input, shape index: {}]   ;;  %s5230_s2 = inlined_call_operand.vmem [shape: f32[1,32], index: 2, kind: input, shape index: {}]   ;;  %s5231_s3 = inlined_call_operand.vmem [shape: f32[1,32], index: 3, kind: input, shape index: {}]   ;;  %s5232_s4 = inlined_call_operand.vmem [shape: bf16[2,32,32], index: 4, kind: input, shape index: {}]   ;;  %s5233_s5 = inlined_call_operand.vmem [shape: f32[2,1,32], index: 5, kind: input, shape index: {}]   ;;  %s5234_s6 = inlined_call_operand.vmem [shape: bf16[2,32,32], index: 6, kind: input, shape index: {}]   ;;  %s5235_s7 = inlined_call_operand.vmem [shape: f32[2,1,32], index: 7, kind: input, shape index: {}]   ;;  %s5236_s8 = inlined_call_operand.vmem [shape: bf16[2,32,32], index: 8, kind: input, shape index: {}]   ;;  %s5237_s9 = inlined_call_operand.vmem [shape: f32[2,1,32], index: 9, kind: input, shape index: {}]   ;;  %s5238_s10 = inlined_call_operand.vmem [shape: bf16[8,8,32], index: 10, kind: input, shape index: {}]   ;;  %s5239_s11 = inlined_call_operand.vmem [shape: f32[2,1,32], index: 11, kind: input, shape index: {}]   ;;  %s5240_s12 = inlined_call_operand.vmem [shape: f32[2,1,32], index: 12, kind: input, shape index: {}]   ;;  %s5241_s13 = inlined_call_operand.vmem [shape: f32[2,1,32], index: 13, kind: input, shape index: {}]   ;;  %s5242_s14 = inlined_call_operand.vmem [shape: bf16[2,32,64], index: 14, kind: input, shape index: {}]   ;;  %s5243_s15 = inlined_call_operand.vmem [shape: f32[2,1,64], index: 15, kind: input, shape index: {}]   ;;  %s5244_s16 = inlined_call_operand.vmem [shape: bf16[2,64,32], index: 16, kind: input, shape index: {}]   ;;  %s5245_s17 = inlined_call_operand.vmem [shape: f32[2,1,32], index: 17, kind: input, shape index: {}]   ;;  %s5246_s18 = inlined_call_operand.vmem [shape: f32[2,1,32], index: 18, kind: input, shape index: {}]   ;;  %s5247_s19 = inlined_call_operand.vmem [shape: f32[2,1,32], index: 19, kind: input, shape index: {}]   ;;  %s5248_s20 = inlined_call_operand.vmem [shape: bf16[32,64], index: 20, kind: input, shape index: {}]   ;;  %s5249_s21 = inlined_call_operand.vmem [shape: f32[1,64], index: 21, kind: input, shape index: {}]   ;;  %s5250_s22 = inlined_call_operand.vmem [shape: bf16[64,32], index: 22, kind: input, shape index: {}]   ;;  %s5251_s23 = inlined_call_operand.vmem [shape: f32[1,32], index: 23, kind: input, shape index: {}]   ;;  %s5252_s24 = inlined_call_operand.vmem [shape: bf16[32,4], index: 24, kind: input, shape index: {}]   ;;  %s5253_s25 = inlined_call_operand.vmem [shape: f32[1,4], index: 25, kind: input, shape index: {}]   ;;  %s5254_s26 = inlined_call_operand.hbm [shape: f32[2,4], index: 26, kind: output, shape index: {}]  }
   0x1   :  { %5269 = sst [smem:[#allocation5_spill]] %s5228_s0 }
   0x2   :  { %5270 = sst [smem:[#allocation6_spill]] %s5229_s1 }
   0x3   :  { %5271 = sst [smem:[#allocation7_spill]] %s5230_s2 }
   0x4   :  { %5272 = sst [smem:[#allocation8_spill]] %s5231_s3 }
   0x5   :  { %5273 = sst [smem:[#allocation9_spill]] %s5232_s4 }
   0x6   :  { %5274 = sst [smem:[#allocation10_spill]] %s5233_s5 }
   0x7   :  { %5275 = sst [smem:[#allocation11_spill]] %s5234_s6 }
   0x8   :  { %5276 = sst [smem:[#allocation12_spill]] %s5235_s7 }
   0x9   :  { %5277 = sst [smem:[#allocation13_spill]] %s5236_s8 }
   0xa   :  { %5278 = sst [smem:[#allocation14_spill]] %s5237_s9 }
   0xb   :  { %5279 = sst [smem:[#allocation15_spill]] %s5238_s10 }
   0xc   :  { %s5280_s7 = sld [smem:[#allocation5_spill]]  ;;  %vm89_vm0 = vcmask 261120  }
  0x12   :  { %v85_v0 = vld [vmem:[%s5280_s7] sm:$0xff]  ;;  %v86_v1 = vld [vmem:[%s5280_s7 + $0x8] sm:$0xff] }
  0x13   :  { %v90_v2 = vsel %vm89_vm0, %v85_v0, 0.0  ;;  %v93_v3 = vsel %vm89_vm0, %v86_v1, 0.0 }
  0x14   :  { %91 = vadd.xlane.f32.xlu0 %v90_v2 }
  0x18   :  { %94 = vadd.xlane.f32.xlu0 %v93_v3 }
  0x19   :  { %31 = vsyncpa [#allocation3], 0  ;;  %s5281_s0 = sld [smem:[#allocation9_spill]]  ;;  %s5282_s2 = sld [smem:[#allocation11_spill]]  ;;  %v4370_v16 = vmov 0.0   ;;  %vm4371_vm1 = vmmov 0  }
  0x1a   :  { %3851 = vmatprep.subr.bf16.mxu0 %v4370_v16  ;;  %3859 = vmatprep.subr.bf16.mxu1 %v4370_v16  ;;  %s5283_s7 = sld [smem:[#allocation7_spill]]  ;;  %s5284_s4 = sld [smem:[#allocation8_spill]]  ;;  %vm361_vm2 = vcmask 64512   ;;  %vm495_vm3 = vcmask 1043456   ;;  %vm1647_vm4 = vcmask 523264   ;;  %vm3338_vm5 = vcmask 1041409  }
  0x1b   :  { %3855 = vmatprep.mubr.msk.bf16.mxu0 %vm4371_vm1, %v4370_v16  ;;  %3863 = vmatprep.mubr.msk.bf16.mxu1 %vm4371_vm1, %v4370_v16  ;;  %s5285_s30 = sld [smem:[#allocation13_spill]]  ;;  %s5286_s27 = sld [smem:[#allocation12_spill]]  ;;  %vm3548_vm6 = vcmask 25600  }
  0x1c   :  { %s5287_s28 = sld [smem:[#allocation10_spill]]  ;;  %s5288_s29 = sld [smem:[#allocation14_spill]] }
  0x1d   :  { %s5289_s10 = sld [smem:[#allocation6_spill]]  ;;  %s5267_s6 = smov 120  }
  0x1e   :  { %s5265_s1 = smov 112   ;;  %s5290_s8 = sld [smem:[#allocation15_spill]] }
  0x1f   :  { %v4214_v14 = vld [vmem:[%s5281_s0] sm:$0xff]   ;;  %v4216_v17 = vld [vmem:[%s5281_s0 + $0x8] sm:$0xff]   ;;  %s5263_s5 = smov 104  }
  0x20   :  { %v4215_v15 = vld [vmem:[%s5282_s2] sm:$0xff]   ;;  %3852 = vmatpush3.bf16.msra.mxu0 %v4214_v14  ;;  %v4217_v18 = vld [vmem:[%s5282_s2 + $0x8] sm:$0xff]  }
  0x21   :  { %3860 = vmatpush3.bf16.msra.mxu1 %v4215_v15  ;;  %3853 = vmatprep.subr.bf16.mxu0 %v4370_v16  ;;  %v3575_v27 = vld [vmem:[%s5283_s7] ss:$0 sm:$0xff]  ;;  %v4219_v37 = vld [vmem:[%s5285_s30 + $0x8] sm:$0xff]  }
  0x22   :  { %3861 = vmatprep.subr.bf16.mxu1 %v4370_v16  ;;  %v3576_v31 = vld [vmem:[%s5284_s4] ss:$0 sm:$0xff] }
  0x23   :  { %v4218_v35 = vld [vmem:[%s5285_s30] sm:$0xff]  }
  0x24   :  { %3854 = vmatpush3.bf16.msra.mxu0 %v4216_v17  ;;  %v3581_v38 = vld [vmem:[%s5286_s27] ss:$0 sm:$0xff] }
  0x25   :  { %3862 = vmatpush3.bf16.msra.mxu1 %v4217_v18  ;;  %3867 = vmatprep.subr.bf16.mxu0 %v4370_v16  ;;  %v3577_v50 = vld [vmem:[%s5287_s28] ss:$0 sm:$0xff] }
  0x26   :  { %3875 = vmatprep.subr.bf16.mxu1 %v4370_v16  ;;  %v3585_v53 = vld [vmem:[%s5288_s29] ss:$0 sm:$0xff] }
  0xa1   :  { %v92_v4 = vpop.xlane.xlu0 %91 }
  0xa2   :  { %v97_v5 = vmul.f32 0.03125, %v92_v4 }
  0xa4   :  { %v99_v6 = vsub.f32 %v85_v0, %v97_v5  ;;  %v4372_v5 = vmov 1966171168  }
  0xa5   :  { %v95_v7 = vpop.xlane.xlu0 %94 }
  0xa6   :  { %v98_v8 = vmul.f32 0.03125, %v95_v7  ;;  %v101_v9 = vmul.f32 %v99_v6, %v99_v6  ;;  %v140_v7 = vlaneseq }
  0xa8   :  { %v100_v10 = vsub.f32 %v86_v1, %v98_v8  ;;  %v103_v11 = vsel %vm89_vm0, %v101_v9, 0.0  ;;  %v133_v8 = vld [vmem:[%s5289_s10] sm:$0x3]  ;;  %s5293_s10 = smov 104  }
  0xa9   :  { %104 = vadd.xlane.f32.xlu1 %v103_v11  ;;  %v134_v9 = vsub.f32 1.0, %v133_v8  ;;  %v141_v11 = vshrl.u32 %v140_v7, 7 }
  0xaa   :  { %v102_v12 = vmul.f32 %v100_v10, %v100_v10 }
  0xab   :  { %v458_v18 = vsub.s32 0, %v141_v11 }
  0xac   :  { %v106_v13 = vsel %vm89_vm0, %v102_v12, 0.0  ;;  %v135_v12 = vmul.f32 -1e+09, %v134_v9 }
  0xad   :  { %107 = vadd.xlane.f32.xlu1 %v106_v13 }
 0x136   :  { %v105_v19 = vpop.xlane.xlu1 %104 }
 0x137   :  { %v109_v20 = vmul.f32 0.03125, %v105_v19 }
 0x139   :  { %v111_v21 = vadd.f32 1e-12, %v109_v20 }
 0x13a   :  { %v108_v22 = vpop.xlane.xlu1 %107 }
 0x13b   :  { %4246 = vrsqrt.f32 %v111_v21  ;;  %v110_v23 = vmul.f32 0.03125, %v108_v22 }
 0x13d   :  { %v112_v24 = vadd.f32 1e-12, %v110_v23 }
 0x13f   :  { %4248 = vrsqrt.f32 %v112_v24 }
 0x145   :  { %v4247_v25 = vpop.eup %4246 }
 0x146   :  { %v115_v26 = vmul.f32 %v4247_v25, %v99_v6  ;;  %v138_v6 = vunpack.c.l.s4 %v4372_v5 }
 0x148   :  { %v123_v30 = vmul.f32 %v3575_v27, %v115_v26 }
 0x149   :  { %v4249_v28 = vpop.eup %4248 }
 0x14a   :  { %v116_v29 = vmul.f32 %v4249_v28, %v100_v10  ;;  %v4550_v33 = vadd.f32 %v3576_v31, %v123_v30  ;;  %v139_v10 = vunpack.c.0.s8 %v138_v6 }
 0x14c   :  { %v124_v32 = vmul.f32 %v3575_v27, %v116_v29  ;;  %v142_v13 = vsub.s32 %v139_v10, %v141_v11 }
 0x14e   :  { %v4552_v34 = vadd.f32 %v3576_v31, %v124_v32  ;;  %v143_v14 = vrot.slane %v135_v12, %v142_v13 }
 0x150   :  { %v159_v36 = vpack.c.bf16 %v4552_v34, %v4550_v33  ;;  %v144_v15 = vcombine.high %v143_v14, %v143_v14  ;;  %v151_v17 = vrot.slane %v143_v14, %v142_v13 }
 0x152   :  { %3856 = vmatmul.mubr.msk.bf16.vlgmr.msra.gmra.mrb[0].mxu0 %vm89_vm0, %v159_v36  ;;  %3864 = vmatmul.mubr.msk.bf16.vlgmr.msra.gmra.mrb[0].mxu1 %vm89_vm0, %v159_v36  ;;  %v158_v19 = vrot.slane %v144_v15, %v142_v13  ;;  %v4617_v20 = vrot.slane %v151_v17, %v458_v18 }
 0x153   :  { %3868 = vmatpush3.bf16.msra.mxu0 %v4218_v35  ;;  %3871 = vmatprep.mubr.msk.bf16.mxu0 %vm4371_vm1, %v4370_v16 }
 0x154   :  { %3869 = vmatprep.subr.bf16.mxu0 %v4370_v16  ;;  %3877 = vmatprep.mubr.msk.bf16.mxu1 %vm4371_vm1, %v4370_v16  ;;  %v4619_v24 = vrot.slane %v158_v19, %v458_v18 }
 0x157   :  { %3870 = vmatpush3.bf16.msra.mxu0 %v4219_v37 }
 0x158   :  { %3881 = vmatprep.subr.bf16.mxu0 %v4370_v16 }
 0x15a   :  { %3872 = vmatmul.mubr.msk.bf16.vlgmr.msra.gmra.mrb[4].mxu0 %vm89_vm0, %v159_v36 }
 0x15b   :  { %3883 = vmatprep.mubr.msk.bf16.mxu0 %vm4371_vm1, %v4370_v16 }
 0x225   :  { %v220_v39 = vpop.f32.mrb[0].mxu0  ;;  %v284_v40 = vpop.f32.mrb[0].mxu1 }
 0x226   :  { %v285_v41 = vadd.f32 %v3581_v38, %v284_v40  ;;  %v3857_v42 = vpop.f32.mrb[1].mxu0  ;;  %v3865_v43 = vpop.f32.mrb[1].mxu1  ;;  %v221_v54 = vadd.f32 %v3577_v50, %v220_v39 }
 0x227   :  { %v223_v44 = vpop.f32.mrb[2].mxu0  ;;  %v287_v45 = vpop.f32.mrb[2].mxu1 }
 0x228   :  { %v4576_v46 = vpack.c.bf16 %v285_v41, %v285_v41  ;;  %v288_v47 = vadd.f32 %v3581_v38, %v287_v45  ;;  %v3858_v48 = vpop.f32.mrb[3].mxu0  ;;  %v3866_v49 = vpop.f32.mrb[3].mxu1  ;;  %v224_v57 = vadd.f32 %v3577_v50, %v223_v44  ;;  %v4592_v61 = vpack.c.bf16 %v221_v54, %v221_v54 }
 0x22a   :  { %v4581_v51 = vpack.c.bf16 %v288_v47, %v288_v47  ;;  %v366_v52 = vsel %vm361_vm2, %v4576_v46, 0  ;;  %v4596_v1 = vpack.c.bf16 %v224_v57, %v224_v57 }
 0x22b   :  { %3876 = vmatpush3.bf16.xpose.msra.mxu1 %v366_v52 }
 0x22c   :  { %v412_v55 = vsel %vm361_vm2, %v4581_v51, 0  ;;  %3887 = vmatprep.subr.bf16.mxu1 %v4370_v16 }
 0x22d   :  { %v348_v56 = vpop.f32.mrb[4].mxu0  ;;  %3882 = vmatpush3.bf16.xpose.msra.mxu0 %v412_v55 }
 0x22e   :  { %v349_v58 = vadd.f32 %v3585_v53, %v348_v56  ;;  %v3873_v59 = vpop.f32.mrb[5].mxu0  ;;  %3893 = vmatprep.subr.bf16.mxu0 %v4370_v16 }
 0x22f   :  { %v351_v60 = vpop.f32.mrb[6].mxu0 }
 0x230   :  { %v4594_v62 = vpack.c.bf16 %v349_v58, %v349_v58  ;;  %v352_v63 = vadd.f32 %v3585_v53, %v351_v60  ;;  %v3874_v0 = vpop.f32.mrb[7].mxu0 }
 0x232   :  { %v4598_v2 = vpack.c.bf16 %v352_v63, %v352_v63  ;;  %3878 = vmatmul.mubr.msk.bf16.vlgmr.msra.gmra.mrb[4].mxu1 %vm361_vm2, %v4592_v61  ;;  %v497_v3 = vsel %vm495_vm3, %v4594_v62, 0 }
 0x233   :  { %3888 = vmatpush3.bf16.msra.mxu1 %v497_v3  ;;  %3889 = vmatprep.mubr.msk.bf16.mxu1 %vm4371_vm1, %v4370_v16 }
 0x234   :  { %3884 = vmatmul.mubr.msk.bf16.vlgmr.msra.gmra.mrb[8].mxu0 %vm361_vm2, %v4596_v1  ;;  %v543_v4 = vsel %vm495_vm3, %v4598_v2, 0  ;;  %3899 = vmatprep.subr.bf16.mxu1 %v4370_v16 }
 0x235   :  { %3894 = vmatpush3.bf16.msra.mxu0 %v543_v4  ;;  %3895 = vmatprep.mubr.msk.bf16.mxu0 %vm4371_vm1, %v4370_v16 }
 0x236   :  { %3905 = vmatprep.subr.bf16.mxu0 %v4370_v16 }
 0x305   :  { %v402_v21 = vpop.f32.mrb[4].mxu1 }
 0x306   :  { %v454_v22 = vmul.f32 0.35355338, %v402_v21  ;;  %v3879_v23 = vpop.f32.mrb[5].mxu1 }
 0x307   :  { %v405_v25 = vpop.f32.mrb[6].mxu1  ;;  %v448_v26 = vpop.f32.mrb[8].mxu0 }
 0x308   :  { %v455_v27 = vmul.f32 0.35355338, %v448_v26  ;;  %v3880_v28 = vpop.f32.mrb[7].mxu1  ;;  %v3885_v29 = vpop.f32.mrb[9].mxu0  ;;  %v466_v30 = vadd.f32 %v4617_v20, %v454_v22 }
 0x309   :  { %v451_v31 = vpop.f32.mrb[10].mxu0 }
 0x30a   :  { %v3886_v32 = vpop.f32.mrb[11].mxu0  ;;  %v468_v35 = vsel %vm361_vm2, %v466_v30, -inf  ;;  %v467_v36 = vadd.f32 %v4619_v24, %v455_v27 }
 0x30b   :  { %469 = vmax.xlane.f32.xlu0 %v468_v35 }
 0x30c   :  { %v471_v37 = vsel %vm361_vm2, %v467_v36, -inf }
 0x30d   :  { %472 = vmax.xlane.f32.xlu1 %v471_v37 }
 0x31e   :  { %643 = vrot.lane.b32.xlu1 %v4581_v51, %s5267_s6 }
 0x398   :  { %v470_v38 = vpop.xlane.xlu0 %469 }
 0x399   :  { %v474_v39 = vsub.f32 %v466_v30, %v470_v38 }
 0x39a   :  { %v473_v40 = vpop.xlane.xlu1 %472 }
 0x39b   :  { %v476_v41 = vmul.f32 1.442695, %v474_v39  ;;  %v475_v42 = vsub.f32 %v467_v36, %v473_v40 }
 0x39d   :  { %4250 = vpow2.f32 %v476_v41  ;;  %v478_v43 = vmul.f32 1.442695, %v475_v42 }
 0x39e   :  { %v644_v49 = vpop.permute.xlu1 %643 }
 0x39f   :  { %4252 = vpow2.f32 %v478_v43  ;;  %v649_v63 = vsel %vm361_vm2, %v644_v49, 0 }
 0x3a7   :  { %v4251_v44 = vpop.eup %4250 }
 0x3a8   :  { %v480_v45 = vsel %vm361_vm2, %v4251_v44, 0.0 }
 0x3a9   :  { %v4253_v47 = vpop.eup %4252  ;;  %481 = vadd.xlane.f32.xlu0 %v480_v45 }
 0x3aa   :  { %v483_v48 = vsel %vm361_vm2, %v4253_v47, 0.0 }
 0x3ab   :  { %484 = vadd.xlane.f32.xlu1 %v483_v48 }
 0x3bc   :  { %588 = vrot.lane.b32.xlu1 %v4592_v61, %s5267_s6 }
 0x3bf   :  { %591 = vrot.lane.b32.xlu0 %v4576_v46, %s5267_s6 }
 0x3c0   :  { %640 = vrot.lane.b32.xlu1 %v4596_v1, %s5267_s6 }
 0x436   :  { %v482_v50 = vpop.xlane.xlu0 %481 }
 0x437   :  { %4254 = vrcp.f32 %v482_v50  ;;  %v3597_v50 = vld [vmem:[%s5290_s8 + $0x4] sm:$0xf] }
 0x438   :  { %v485_v52 = vpop.xlane.xlu1 %484 }
 0x439   :  { %4256 = vrcp.f32 %v485_v52 }
 0x43a   :  { %v592_v56 = vpop.permute.xlu0 %591 }
 0x43b   :  { %v597_v59 = vsel %vm361_vm2, %v592_v56, 0  ;;  %v586_v56 = vld [vmem:[%s5290_s8] sm:$0xf] }
 0x43c   :  { %v589_v0 = vpop.permute.xlu1 %588 }
 0x440   :  { %v641_v3 = vpop.permute.xlu1 %640 }
 0x441   :  { %v4255_v53 = vpop.eup %4254 }
 0x442   :  { %v488_v54 = vmul.f32 %v4255_v53, %v4251_v44 }
 0x443   :  { %v4257_v55 = vpop.eup %4256 }
 0x444   :  { %v489_v57 = vmul.f32 %v4257_v55, %v4253_v47  ;;  %v490_v58 = vpack.c.bf16 %v488_v54, %v488_v54  ;;  %v824_v54 = vsel %vm495_vm3, %v3597_v50, 0 }
 0x446   :  { %3890 = vmatmul.mubr.msk.bf16.vlgmr.msra.gmra.mrb[8].mxu1 %vm361_vm2, %v490_v58  ;;  %v491_v60 = vpack.c.bf16 %v489_v57, %v489_v57 }
 0x447   :  { %3900 = vmatpush3.bf16.xpose.msra.mxu1 %v597_v59  ;;  %3901 = vmatprep.mubr.msk.bf16.mxu1 %vm4371_vm1, %v4370_v16  ;;  %v871_v59 = vsel %vm495_vm3, %v586_v56, 0 }
 0x448   :  { %3896 = vmatmul.mubr.msk.bf16.vlgmr.msra.gmra.mrb[12].mxu0 %vm361_vm2, %v491_v60  ;;  %3911 = vmatprep.subr.bf16.mxu1 %v4370_v16 }
 0x449   :  { %3906 = vmatpush3.bf16.xpose.msra.mxu0 %v649_v63  ;;  %3907 = vmatprep.mubr.msk.bf16.mxu0 %vm4371_vm1, %v4370_v16 }
 0x44a   :  { %3917 = vmatprep.subr.bf16.mxu0 %v4370_v16 }
 0x44e   :  { %3902 = vmatmul.mubr.msk.bf16.vlgmr.msra.gmra.mrb[12].mxu1 %vm361_vm2, %v589_v0 }
 0x44f   :  { %3913 = vmatprep.mubr.msk.bf16.mxu1 %vm4371_vm1, %v4370_v16 }
 0x450   :  { %3908 = vmatmul.mubr.msk.bf16.vlgmr.msra.gmra.mrb[16].mxu0 %vm361_vm2, %v641_v3 }
 0x451   :  { %3919 = vmatprep.mubr.msk.bf16.mxu0 %vm4371_vm1, %v4370_v16 }
 0x519   :  { %v4651_v4 = vpop.f32.mrb[8].mxu1 }
 0x51a   :  { %v3891_v5 = vpop.f32.mrb[9].mxu1 }
 0x51b   :  { %v536_v6 = vpop.f32.mrb[10].mxu1  ;;  %v4653_v7 = vpop.f32.mrb[12].mxu0 }
 0x51c   :  { %v585_v8 = vpack.c.bf16 %v4653_v7, %v4651_v4  ;;  %v3892_v9 = vpop.f32.mrb[11].mxu1  ;;  %v3897_v10 = vpop.f32.mrb[13].mxu0 }
 0x51d   :  { %v582_v11 = vpop.f32.mrb[14].mxu0 }
 0x51e   :  { %v3898_v12 = vpop.f32.mrb[15].mxu0 }
 0x521   :  { %v633_v13 = vpop.f32.mrb[12].mxu1 }
 0x522   :  { %v691_v14 = vmul.f32 0.35355338, %v633_v13  ;;  %v3903_v15 = vpop.f32.mrb[13].mxu1 }
 0x523   :  { %v636_v17 = vpop.f32.mrb[14].mxu1  ;;  %v685_v18 = vpop.f32.mrb[16].mxu0 }
 0x524   :  { %v692_v19 = vmul.f32 0.35355338, %v685_v18  ;;  %v3904_v21 = vpop.f32.mrb[15].mxu1  ;;  %v3909_v22 = vpop.f32.mrb[17].mxu0  ;;  %v693_v23 = vadd.f32 %v691_v14, %v4617_v20 }
 0x525   :  { %v688_v25 = vpop.f32.mrb[18].mxu0 }
 0x526   :  { %v3910_v26 = vpop.f32.mrb[19].mxu0  ;;  %v695_v27 = vsel %vm361_vm2, %v693_v23, -inf  ;;  %v694_v28 = vadd.f32 %v692_v19, %v4619_v24 }
 0x527   :  { %696 = vmax.xlane.f32.xlu0 %v695_v27 }
 0x528   :  { %v698_v29 = vsel %vm361_vm2, %v694_v28, -inf }
 0x529   :  { %699 = vmax.xlane.f32.xlu1 %v698_v29 }
 0x53a   :  { %769 = vrot.lane.b32.xlu1 %v4598_v2, %s5267_s6 }
 0x53e   :  { %916 = vrot.lane.b32.xlu1 %v4576_v46, %s5265_s1 }
 0x542   :  { %966 = vrot.lane.b32.xlu1 %v4581_v51, %s5265_s1 }
 0x546   :  { %964 = vrot.lane.b32.xlu1 %v4596_v1, %s5265_s1 }
 0x5b4   :  { %v697_v30 = vpop.xlane.xlu0 %696 }
 0x5b5   :  { %v701_v31 = vsub.f32 %v693_v23, %v697_v30 }
 0x5b6   :  { %v700_v32 = vpop.xlane.xlu1 %699 }
 0x5b7   :  { %v703_v35 = vmul.f32 1.442695, %v701_v31  ;;  %v702_v36 = vsub.f32 %v694_v28, %v700_v32 }
 0x5b9   :  { %4258 = vpow2.f32 %v703_v35  ;;  %v705_v37 = vmul.f32 1.442695, %v702_v36 }
 0x5ba   :  { %v770_v38 = vpop.permute.xlu1 %769 }
 0x5bb   :  { %4260 = vpow2.f32 %v705_v37  ;;  %v775_v39 = vsel %vm495_vm3, %v770_v38, 0 }
 0x5bc   :  { %3918 = vmatpush3.bf16.msra.mxu0 %v775_v39 }
 0x5bd   :  { %3929 = vmatprep.subr.bf16.mxu0 %v4370_v16 }
 0x5be   :  { %v917_v60 = vpop.permute.xlu1 %916 }
 0x5bf   :  { %v922_v12 = vsel %vm361_vm2, %v917_v60, 0 }
 0x5c2   :  { %v967_v63 = vpop.permute.xlu1 %966 }
 0x5c3   :  { %v4259_v40 = vpop.eup %4258  ;;  %v972_v0 = vsel %vm361_vm2, %v967_v63, 0 }
 0x5c4   :  { %v707_v41 = vsel %vm361_vm2, %v4259_v40, 0.0 }
 0x5c5   :  { %v4261_v42 = vpop.eup %4260  ;;  %708 = vadd.xlane.f32.xlu0 %v707_v41 }
 0x5c6   :  { %v710_v43 = vsel %vm361_vm2, %v4261_v42, 0.0  ;;  %v965_v3 = vpop.permute.xlu1 %964 }
 0x5c9   :  { %711 = vadd.xlane.f32.xlu0 %v710_v43 }
 0x5df   :  { %720 = vrot.lane.b32.xlu0 %v4594_v62, %s5267_s6 }
 0x5e3   :  { %914 = vrot.lane.b32.xlu0 %v4592_v61, %s5265_s1 }
 0x652   :  { %v709_v44 = vpop.xlane.xlu0 %708 }
 0x653   :  { %4262 = vrcp.f32 %v709_v44 }
 0x656   :  { %v712_v45 = vpop.xlane.xlu0 %711 }
 0x657   :  { %4264 = vrcp.f32 %v712_v45 }
 0x65a   :  { %v721_v47 = vpop.permute.xlu0 %720 }
 0x65b   :  { %v726_v48 = vsel %vm495_vm3, %v721_v47, 0 }
 0x65c   :  { %3912 = vmatpush3.bf16.msra.mxu1 %v726_v48 }
 0x65d   :  { %v4263_v49 = vpop.eup %4262  ;;  %3923 = vmatprep.subr.bf16.mxu1 %v4370_v16 }
 0x65e   :  { %v715_v52 = vmul.f32 %v4263_v49, %v4259_v40  ;;  %v915_v17 = vpop.permute.xlu0 %914 }
 0x660   :  { %v717_v53 = vpack.c.bf16 %v715_v52, %v715_v52 }
 0x661   :  { %v4265_v55 = vpop.eup %4264 }
 0x662   :  { %v716_v57 = vmul.f32 %v4265_v55, %v4261_v42  ;;  %3914 = vmatmul.mubr.msk.bf16.vlgmr.msra.gmra.mrb[16].mxu1 %vm361_vm2, %v717_v53 }
 0x663   :  { %3924 = vmatpush3.bf16.msra.mxu1 %v824_v54  ;;  %3925 = vmatprep.mubr.msk.bf16.mxu1 %vm4371_vm1, %v4370_v16 }
 0x664   :  { %v718_v58 = vpack.c.bf16 %v716_v57, %v716_v57  ;;  %3935 = vmatprep.subr.bf16.mxu1 %v4370_v16 }
 0x666   :  { %3920 = vmatmul.mubr.msk.bf16.vlgmr.msra.gmra.mrb[20].mxu0 %vm361_vm2, %v718_v58 }
 0x667   :  { %3930 = vmatpush3.bf16.msra.mxu0 %v871_v59  ;;  %3931 = vmatprep.mubr.msk.bf16.mxu0 %vm4371_vm1, %v4370_v16 }
 0x668   :  { %3941 = vmatprep.subr.bf16.mxu0 %v4370_v16 }
 0x66e   :  { %3932 = vmatmul.mubr.msk.bf16.vlgmr.msra.gmra.mrb[24].mxu0 %vm361_vm2, %v585_v8 }
 0x66f   :  { %3943 = vmatprep.mubr.msk.bf16.mxu0 %vm4371_vm1, %v4370_v16 }
 0x670   :  { %3942 = vmatpush3.bf16.xpose.msra.mxu0 %v972_v0 }
 0x671   :  { %3953 = vmatprep.subr.bf16.mxu0 %v4370_v16 }
 0x677   :  { %3944 = vmatmul.mubr.msk.bf16.vlgmr.msra.gmra.mrb[28].mxu0 %vm361_vm2, %v965_v3 }
 0x678   :  { %3955 = vmatprep.mubr.msk.bf16.mxu0 %vm4371_vm1, %v4370_v16 }
 0x735   :  { %v762_v5 = vpop.f32.mrb[16].mxu1 }
 0x736   :  { %v3915_v6 = vpop.f32.mrb[17].mxu1 }
 0x737   :  { %v765_v9 = vpop.f32.mrb[18].mxu1 }
 0x738   :  { %v3916_v4 = vpop.f32.mrb[19].mxu1 }
 0x739   :  { %v811_v7 = vpop.f32.mrb[20].mxu0 }
 0x73a   :  { %v817_v8 = vpack.c.bf16 %v811_v7, %v762_v5  ;;  %v3921_v10 = vpop.f32.mrb[21].mxu0 }
 0x73b   :  { %v814_v11 = vpop.f32.mrb[22].mxu0 }
 0x73c   :  { %v3922_v13 = vpop.f32.mrb[23].mxu0  ;;  %3926 = vmatmul.mubr.msk.bf16.vlgmr.msra.gmra.mrb[20].mxu1 %vm361_vm2, %v817_v8  ;;  %v3604_v11 = vld [vmem:[%s5290_s8 + $0x8] sm:$0xf] }
 0x73d   :  { %3936 = vmatpush3.bf16.xpose.msra.mxu1 %v922_v12  ;;  %3937 = vmatprep.mubr.msk.bf16.mxu1 %vm4371_vm1, %v4370_v16  ;;  %v1145_v12 = vsel %vm495_vm3, %v3604_v11, 0 }
 0x73e   :  { %3947 = vmatprep.subr.bf16.mxu1 %v4370_v16 }
 0x741   :  { %v907_v14 = vpop.f32.mrb[24].mxu0 }
 0x742   :  { %v3933_v15 = vpop.f32.mrb[25].mxu0 }
 0x743   :  { %v910_v18 = vpop.f32.mrb[26].mxu0 }
 0x744   :  { %v3934_v19 = vpop.f32.mrb[27].mxu0  ;;  %3938 = vmatmul.mubr.msk.bf16.vlgmr.msra.gmra.mrb[24].mxu1 %vm361_vm2, %v915_v17 }
 0x745   :  { %3949 = vmatprep.mubr.msk.bf16.mxu1 %vm4371_vm1, %v4370_v16 }
 0x74a   :  { %v1008_v21 = vpop.f32.mrb[28].mxu0 }
 0x74b   :  { %v1015_v22 = vmul.f32 0.35355338, %v1008_v21  ;;  %v3945_v23 = vpop.f32.mrb[29].mxu0 }
 0x74c   :  { %v1011_v25 = vpop.f32.mrb[30].mxu0 }
 0x74d   :  { %v3946_v26 = vpop.f32.mrb[31].mxu0  ;;  %v1017_v27 = vadd.f32 %v1015_v22, %v4619_v24 }
 0x74f   :  { %v1021_v28 = vsel %vm361_vm2, %v1017_v27, -inf }
 0x750   :  { %1022 = vmax.xlane.f32.xlu1 %v1021_v28 }
 0x761   :  { %1090 = vrot.lane.b32.xlu1 %v4598_v2, %s5265_s1 }
 0x765   :  { %1192 = vrot.lane.b32.xlu1 %v4576_v46, %s5263_s5 }
 0x769   :  { %1242 = vrot.lane.b32.xlu1 %v4581_v51, %s5263_s5 }
 0x76d   :  { %1240 = vrot.lane.b32.xlu1 %v4596_v1, %s5263_s5 }
 0x7dd   :  { %v1023_v29 = vpop.xlane.xlu1 %1022 }
 0x7de   :  { %v1025_v32 = vsub.f32 %v1017_v27, %v1023_v29 }
 0x7e0   :  { %v1028_v35 = vmul.f32 1.442695, %v1025_v32 }
 0x7e1   :  { %v1091_v30 = vpop.permute.xlu1 %1090 }
 0x7e2   :  { %v1096_v31 = vsel %vm495_vm3, %v1091_v30, 0  ;;  %4266 = vpow2.f32 %v1028_v35 }
 0x7e3   :  { %3954 = vmatpush3.bf16.msra.mxu0 %v1096_v31 }
 0x7e4   :  { %3965 = vmatprep.subr.bf16.mxu0 %v4370_v16 }
 0x7e5   :  { %v1193_v58 = vpop.permute.xlu1 %1192 }
 0x7e6   :  { %v1198_v60 = vsel %vm361_vm2, %v1193_v58, 0 }
 0x7e9   :  { %v1243_v22 = vpop.permute.xlu1 %1242 }
 0x7ea   :  { %v1248_v28 = vsel %vm361_vm2, %v1243_v22, 0 }
 0x7ec   :  { %v4267_v47 = vpop.eup %4266 }
 0x7ed   :  { %v1033_v48 = vsel %vm361_vm2, %v4267_v47, 0.0  ;;  %v1241_v30 = vpop.permute.xlu1 %1240 }
 0x80f   :  { %v860_v36 = vpop.f32.mrb[20].mxu1 }
 0x810   :  { %v4726_v37 = vadd.f32 %v907_v14, %v860_v36  ;;  %v3927_v38 = vpop.f32.mrb[21].mxu1 }
 0x811   :  { %v863_v46 = vpop.f32.mrb[22].mxu1 }
 0x812   :  { %v4728_v39 = vadd.f32 %v910_v18, %v863_v46  ;;  %v3928_v51 = vpop.f32.mrb[23].mxu1 }
 0x817   :  { %v958_v40 = vpop.f32.mrb[24].mxu1 }
 0x818   :  { %v1014_v1 = vmul.f32 0.35355338, %v958_v40  ;;  %v3939_v41 = vpop.f32.mrb[25].mxu1 }
 0x819   :  { %v961_v42 = vpop.f32.mrb[26].mxu1 }
 0x81a   :  { %v3940_v43 = vpop.f32.mrb[27].mxu1  ;;  %v1016_v44 = vadd.f32 %v1014_v1, %v4617_v20 }
 0x81c   :  { %v1018_v45 = vsel %vm361_vm2, %v1016_v44, -inf }
 0x81d   :  { %1019 = vmax.xlane.f32.xlu0 %v1018_v45 }
 0x821   :  { %1034 = vadd.xlane.f32.xlu0 %v1033_v48 }
 0x8aa   :  { %v1020_v49 = vpop.xlane.xlu0 %1019 }
 0x8ab   :  { %v1024_v50 = vsub.f32 %v1016_v44, %v1020_v49 }
 0x8ad   :  { %v1026_v52 = vmul.f32 1.442695, %v1024_v50 }
 0x8ae   :  { %v1035_v53 = vpop.xlane.xlu0 %1034 }
 0x8af   :  { %4268 = vpow2.f32 %v1026_v52 }
 0x8b0   :  { %4270 = vrcp.f32 %v1035_v53 }
 0x8b9   :  { %v4269_v54 = vpop.eup %4268 }
 0x8ba   :  { %v4271_v55 = vpop.eup %4270  ;;  %v1030_v56 = vsel %vm361_vm2, %v4269_v54, 0.0 }
 0x8bb   :  { %v1039_v57 = vmul.f32 %v4271_v55, %v4267_v47  ;;  %1031 = vadd.xlane.f32.xlu0 %v1030_v56 }
 0x8bd   :  { %v1041_v59 = vpack.c.bf16 %v1039_v57, %v1039_v57 }
 0x8bf   :  { %3956 = vmatmul.mubr.msk.bf16.vlgmr.msra.gmra.mrb[32].mxu0 %vm361_vm2, %v1041_v59 }
 0x8c0   :  { %3966 = vmatpush3.bf16.xpose.msra.mxu0 %v1198_v60  ;;  %3967 = vmatprep.mubr.msk.bf16.mxu0 %vm4371_vm1, %v4370_v16 }
 0x8c1   :  { %3977 = vmatprep.subr.bf16.mxu0 %v4370_v16 }
 0x8d1   :  { %1042 = vrot.lane.b32.xlu0 %v4594_v62, %s5265_s1 }
 0x8d5   :  { %1190 = vrot.lane.b32.xlu0 %v4592_v61, %s5263_s5 }
 0x948   :  { %v1032_v63 = vpop.xlane.xlu0 %1031 }
 0x949   :  { %4272 = vrcp.f32 %v1032_v63 }
 0x94c   :  { %v1043_v0 = vpop.permute.xlu0 %1042 }
 0x94d   :  { %v1048_v3 = vsel %vm495_vm3, %v1043_v0, 0 }
 0x94e   :  { %3948 = vmatpush3.bf16.msra.mxu1 %v1048_v3 }
 0x94f   :  { %3959 = vmatprep.subr.bf16.mxu1 %v4370_v16 }
 0x950   :  { %v1191_v5 = vpop.permute.xlu0 %1190 }
 0x951   :  { %3968 = vmatmul.mubr.msk.bf16.vlgmr.msra.gmra.mrb[36].mxu0 %vm361_vm2, %v1191_v5 }
 0x952   :  { %3979 = vmatprep.mubr.msk.bf16.mxu0 %vm4371_vm1, %v4370_v16 }
 0x953   :  { %v4273_v6 = vpop.eup %4272 }
 0x954   :  { %v1038_v9 = vmul.f32 %v4273_v6, %v4269_v54  ;;  %v3610_v6 = vld [vmem:[%s5290_s8 + $0xc] sm:$0xf] }
 0x956   :  { %v1040_v4 = vpack.c.bf16 %v1038_v9, %v1038_v9  ;;  %v1421_v9 = vsel %vm495_vm3, %v3610_v6, 0 }
 0x958   :  { %3950 = vmatmul.mubr.msk.bf16.vlgmr.msra.gmra.mrb[28].mxu1 %vm361_vm2, %v1040_v4 }
 0x959   :  { %3961 = vmatprep.mubr.msk.bf16.mxu1 %vm4371_vm1, %v4370_v16  ;;  %3960 = vmatpush3.bf16.msra.mxu1 %v1145_v12 }
 0x95a   :  { %3971 = vmatprep.subr.bf16.mxu1 %v4370_v16 }
 0x992   :  { %v1132_v61 = vpop.f32.mrb[32].mxu0 }
 0x993   :  { %v3957_v7 = vpop.f32.mrb[33].mxu0 }
 0x994   :  { %v1135_v8 = vpop.f32.mrb[34].mxu0 }
 0x995   :  { %v3958_v10 = vpop.f32.mrb[35].mxu0 }
 0xa24   :  { %v1234_v13 = vpop.f32.mrb[36].mxu0 }
 0xa25   :  { %v1290_v14 = vmul.f32 0.35355338, %v1234_v13  ;;  %v3969_v15 = vpop.f32.mrb[37].mxu0 }
 0xa26   :  { %v1237_v17 = vpop.f32.mrb[38].mxu0 }
 0xa27   :  { %v3970_v18 = vpop.f32.mrb[39].mxu0  ;;  %v1292_v19 = vadd.f32 %v1290_v14, %v4617_v20  ;;  %v3612_v17 = vld [vmem:[%s5239_s11] ss:$0 sm:$0xff] }
 0xa29   :  { %v1294_v21 = vsel %vm361_vm2, %v1292_v19, -inf }
 0xa2a   :  { %1295 = vmax.xlane.f32.xlu0 %v1294_v21 }
 0xa2b   :  { %v1084_v23 = vpop.f32.mrb[28].mxu1 }
 0xa2c   :  { %v1138_v25 = vpack.c.bf16 %v1132_v61, %v1084_v23  ;;  %v3951_v26 = vpop.f32.mrb[29].mxu1 }
 0xa2d   :  { %v1087_v27 = vpop.f32.mrb[30].mxu1 }
 0xa2e   :  { %v3952_v29 = vpop.f32.mrb[31].mxu1  ;;  %3962 = vmatmul.mubr.msk.bf16.vlgmr.msra.gmra.mrb[32].mxu1 %vm361_vm2, %v1138_v25 }
 0xa2f   :  { %3972 = vmatpush3.bf16.xpose.msra.mxu1 %v1248_v28  ;;  %3973 = vmatprep.mubr.msk.bf16.mxu1 %vm4371_vm1, %v4370_v16 }
 0xa30   :  { %3983 = vmatprep.subr.bf16.mxu1 %v4370_v16 }
 0xa36   :  { %3974 = vmatmul.mubr.msk.bf16.vlgmr.msra.gmra.mrb[36].mxu1 %vm361_vm2, %v1241_v30 }
 0xa37   :  { %3985 = vmatprep.mubr.msk.bf16.mxu1 %vm4371_vm1, %v4370_v16 }
 0xab7   :  { %v1296_v31 = vpop.xlane.xlu0 %1295 }
 0xab8   :  { %v1300_v32 = vsub.f32 %v1292_v19, %v1296_v31 }
 0xaba   :  { %v1302_v35 = vmul.f32 1.442695, %v1300_v32 }
 0xabc   :  { %4274 = vpow2.f32 %v1302_v35 }
 0xac6   :  { %v4275_v36 = vpop.eup %4274 }
 0xac7   :  { %v1306_v38 = vsel %vm361_vm2, %v4275_v36, 0.0 }
 0xac8   :  { %1307 = vadd.xlane.f32.xlu0 %v1306_v38 }
 0xb01   :  { %v1181_v46 = vpop.f32.mrb[32].mxu1 }
 0xb02   :  { %v1188_v51 = vadd.f32 %v1181_v46, %v4726_v37  ;;  %v3963_v40 = vpop.f32.mrb[33].mxu1 }
 0xb03   :  { %v1184_v1 = vpop.f32.mrb[34].mxu1 }
 0xb04   :  { %v1189_v41 = vadd.f32 %v1184_v1, %v4728_v39  ;;  %v3964_v42 = vpop.f32.mrb[35].mxu1 }
 0xb09   :  { %v1284_v43 = vpop.f32.mrb[36].mxu1 }
 0xb0a   :  { %v1291_v44 = vmul.f32 0.35355338, %v1284_v43  ;;  %v3975_v45 = vpop.f32.mrb[37].mxu1 }
 0xb0b   :  { %v1287_v47 = vpop.f32.mrb[38].mxu1 }
 0xb0c   :  { %v3976_v48 = vpop.f32.mrb[39].mxu1  ;;  %v1293_v49 = vadd.f32 %v1291_v44, %v4619_v24 }
 0xb0e   :  { %v1297_v50 = vsel %vm361_vm2, %v1293_v49, -inf }
 0xb0f   :  { %1298 = vmax.xlane.f32.xlu1 %v1297_v50  ;;  %v3613_v50 = vld [vmem:[%s5240_s12] ss:$0 sm:$0xff] }
 0xb20   :  { %1366 = vrot.lane.b32.xlu1 %v4598_v2, %s5263_s5 }
 0xb55   :  { %v1308_v57 = vpop.xlane.xlu0 %1307 }
 0xb9c   :  { %v1299_v52 = vpop.xlane.xlu1 %1298 }
 0xb9d   :  { %v1301_v37 = vsub.f32 %v1293_v49, %v1299_v52 }
 0xb9f   :  { %v1304_v53 = vmul.f32 1.442695, %v1301_v37 }
 0xba0   :  { %v1367_v54 = vpop.permute.xlu1 %1366 }
 0xba1   :  { %4276 = vpow2.f32 %v1304_v53  ;;  %v1372_v39 = vsel %vm495_vm3, %v1367_v54, 0 }
 0xba2   :  { %3984 = vmatpush3.bf16.msra.mxu1 %v1372_v39  ;;  %4278 = vrcp.f32 %v1308_v57  ;;  %v3614_v39 = vld [vmem:[%s5241_s13] ss:$0 sm:$0xff] }
 0xba3   :  { %3995 = vmatprep.subr.bf16.mxu1 %v4370_v16 }
 0xbab   :  { %v4277_v55 = vpop.eup %4276 }
 0xbac   :  { %v1309_v56 = vsel %vm361_vm2, %v4277_v55, 0.0  ;;  %v4279_v2 = vpop.eup %4278 }
 0xbad   :  { %1310 = vadd.xlane.f32.xlu0 %v1309_v56  ;;  %v1314_v59 = vmul.f32 %v4279_v2, %v4275_v36 }
 0xbaf   :  { %v1316_v0 = vpack.c.bf16 %v1314_v59, %v1314_v59  ;;  %v4223_v59 = vld [vmem:[%s5244_s16 + $0x8] sm:$0xff]  }
 0xbc3   :  { %1318 = vrot.lane.b32.xlu0 %v4594_v62, %s5263_s5 }
 0xc3a   :  { %v1311_v58 = vpop.xlane.xlu0 %1310 }
 0xc3b   :  { %4280 = vrcp.f32 %v1311_v58  ;;  %v4222_v58 = vld [vmem:[%s5244_s16] sm:$0xff]  }
 0xc3e   :  { %v1319_v60 = vpop.permute.xlu0 %1318 }
 0xc3f   :  { %v1324_v63 = vsel %vm495_vm3, %v1319_v60, 0  ;;  %v4224_v60 = vld [vmem:[%s5244_s16 + $0x10] sm:$0xff]  }
 0xc40   :  { %3978 = vmatpush3.bf16.msra.mxu0 %v1324_v63  ;;  %v4225_v63 = vld [vmem:[%s5244_s16 + $0x18] sm:$0xff]  }
 0xc41   :  { %3989 = vmatprep.subr.bf16.mxu0 %v4370_v16 }
 0xc43   :  { %3980 = vmatmul.mubr.msk.bf16.vlgmr.msra.gmra.mrb[40].mxu0 %vm361_vm2, %v1316_v0  ;;  %v3615_v0 = vld [vmem:[%s5243_s15] ss:$0 sm:$0xff] }
 0xc44   :  { %3991 = vmatprep.mubr.msk.bf16.mxu0 %vm4371_vm1, %v4370_v16  ;;  %3990 = vmatpush3.bf16.msra.mxu0 %v1421_v9 }
 0xc45   :  { %v4281_v3 = vpop.eup %4280  ;;  %4003 = vmatprep.subr.bf16.mxu0 %v4370_v16 }
 0xc46   :  { %v1315_v62 = vmul.f32 %v4281_v3, %v4277_v55 }
 0xc48   :  { %v1317_v5 = vpack.c.bf16 %v1315_v62, %v1315_v62 }
 0xc4a   :  { %3986 = vmatmul.mubr.msk.bf16.vlgmr.msra.gmra.mrb[40].mxu1 %vm361_vm2, %v1317_v5 }
 0xc4b   :  { %3999 = vmatprep.mubr.msk.bf16.mxu1 %vm4371_vm1, %v4370_v16 }
 0xd16   :  { %v1360_v4 = vpop.f32.mrb[40].mxu0 }
 0xd17   :  { %v3981_v61 = vpop.f32.mrb[41].mxu0 }
 0xd18   :  { %v1363_v7 = vpop.f32.mrb[42].mxu0 }
 0xd19   :  { %v3982_v8 = vpop.f32.mrb[43].mxu0 }
 0xd1d   :  { %v1408_v10 = vpop.f32.mrb[40].mxu1 }
 0xd1e   :  { %v1414_v11 = vpack.c.bf16 %v1408_v10, %v1360_v4  ;;  %v3987_v12 = vpop.f32.mrb[41].mxu1 }
 0xd1f   :  { %v1411_v13 = vpop.f32.mrb[42].mxu1 }
 0xd20   :  { %v3988_v14 = vpop.f32.mrb[43].mxu1  ;;  %3992 = vmatmul.mubr.msk.bf16.vlgmr.msra.gmra.mrb[44].mxu0 %vm361_vm2, %v1414_v11 }
 0xd21   :  { %4011 = vmatprep.mubr.msk.bf16.mxu0 %vm4371_vm1, %v4370_v16  ;;  %4004 = vmatpush3.bf16.msra.mxu0 %v4222_v58 }
 0xd22   :  { %4005 = vmatprep.subr.bf16.mxu0 %v4370_v16 }
 0xd25   :  { %4006 = vmatpush3.bf16.msra.mxu0 %v4223_v59  ;;  %v3625_v59 = vld [vmem:[%s5246_s18] ss:$0 sm:$0xff] }
 0xd26   :  { %4007 = vmatprep.subr.bf16.mxu0 %v4370_v16 }
 0xd29   :  { %4008 = vmatpush3.bf16.msra.mxu0 %v4224_v60 }
 0xd2a   :  { %4009 = vmatprep.subr.bf16.mxu0 %v4370_v16 }
 0xd2d   :  { %4010 = vmatpush3.bf16.msra.mxu0 %v4225_v63 }
 0xd2e   :  { %4031 = vmatprep.subr.bf16.mxu0 %v4370_v16 }
 0xdf3   :  { %v1457_v15 = vpop.f32.mrb[44].mxu0 }
 0xdf4   :  { %v1464_v18 = vadd.f32 %v1457_v15, %v1188_v51  ;;  %v3993_v19 = vpop.f32.mrb[45].mxu0 }
 0xdf5   :  { %v1460_v21 = vpop.f32.mrb[46].mxu0 }
 0xdf6   :  { %v1473_v22 = vadd.f32 %v3612_v17, %v1464_v18  ;;  %v1465_v23 = vadd.f32 %v1460_v21, %v1189_v41  ;;  %v3994_v25 = vpop.f32.mrb[47].mxu0  ;;  %v4221_v41 = vld [vmem:[%s5242_s14 + $0x8] sm:$0xff]  }
 0xdf8   :  { %v1474_v26 = vadd.f32 %v3612_v17, %v1465_v23  ;;  %v1475_v27 = vadd.f32 %v1473_v22, %v4550_v33 }
 0xdfa   :  { %v1479_v28 = vsel %vm89_vm0, %v1475_v27, 0.0  ;;  %v1476_v29 = vadd.f32 %v1474_v26, %v4552_v34  ;;  %v4220_v34 = vld [vmem:[%s5242_s14] sm:$0xff]  }
 0xdfb   :  { %1480 = vadd.xlane.f32.xlu1 %v1479_v28  ;;  %3996 = vmatpush3.bf16.msra.mxu1 %v4220_v34 }
 0xdfc   :  { %v1482_v30 = vsel %vm89_vm0, %v1476_v29, 0.0  ;;  %3997 = vmatprep.subr.bf16.mxu1 %v4370_v16 }
 0xdfd   :  { %1483 = vadd.xlane.f32.xlu0 %v1482_v30 }
 0xdff   :  { %3998 = vmatpush3.bf16.msra.mxu1 %v4221_v41 }
 0xe00   :  { %4015 = vmatprep.subr.bf16.mxu1 %v4370_v16 }
 0xe88   :  { %v1481_v31 = vpop.xlane.xlu1 %1480 }
 0xe89   :  { %v1485_v32 = vmul.f32 0.03125, %v1481_v31 }
 0xe8a   :  { %v1484_v35 = vpop.xlane.xlu0 %1483 }
 0xe8b   :  { %v1487_v36 = vsub.f32 %v1475_v27, %v1485_v32  ;;  %v1486_v38 = vmul.f32 0.03125, %v1484_v35 }
 0xe8d   :  { %v1488_v46 = vsub.f32 %v1476_v29, %v1486_v38  ;;  %v1489_v51 = vmul.f32 %v1487_v36, %v1487_v36  ;;  %v3619_v29 = vld [vmem:[%s5245_s17] ss:$0 sm:$0xff] }
 0xe8f   :  { %v1491_v40 = vsel %vm89_vm0, %v1489_v51, 0.0  ;;  %v1490_v1 = vmul.f32 %v1488_v46, %v1488_v46 }
 0xe90   :  { %1492 = vadd.xlane.f32.xlu0 %v1491_v40 }
 0xe91   :  { %v1494_v33 = vsel %vm89_vm0, %v1490_v1, 0.0 }
 0xe92   :  { %1495 = vadd.xlane.f32.xlu1 %v1494_v33 }
 0xf1d   :  { %v1493_v42 = vpop.xlane.xlu0 %1492 }
 0xf1e   :  { %v1497_v43 = vmul.f32 0.03125, %v1493_v42 }
 0xf1f   :  { %v1496_v44 = vpop.xlane.xlu1 %1495 }
 0xf20   :  { %v1499_v45 = vadd.f32 1e-12, %v1497_v43  ;;  %v1498_v47 = vmul.f32 0.03125, %v1496_v44 }
 0xf22   :  { %4282 = vrsqrt.f32 %v1499_v45  ;;  %v1500_v48 = vadd.f32 1e-12, %v1498_v47 }
 0xf24   :  { %4284 = vrsqrt.f32 %v1500_v48 }
 0xf2c   :  { %v4283_v49 = vpop.eup %4282 }
 0xf2d   :  { %v1503_v52 = vmul.f32 %v4283_v49, %v1487_v36 }
 0xf2e   :  { %v4285_v37 = vpop.eup %4284 }
 0xf2f   :  { %v1511_v53 = vmul.f32 %v3613_v50, %v1503_v52  ;;  %v1504_v54 = vmul.f32 %v4285_v37, %v1488_v46  ;;  %v4227_v52 = vld [vmem:[%s5285_s30 + $0x10] sm:$0xff]   ;;  %v4228_v37 = vld [vmem:[%s5281_s0 + $0x18] sm:$0xff]  }
 0xf31   :  { %v1512_v55 = vmul.f32 %v3613_v50, %v1504_v54  ;;  %v1519_v56 = vadd.f32 %v3614_v39, %v1511_v53  ;;  %v4226_v50 = vld [vmem:[%s5281_s0 + $0x10] sm:$0xff]   ;;  %v4229_v53 = vld [vmem:[%s5285_s30 + $0x18] sm:$0xff]  }
 0xf33   :  { %v1520_v57 = vadd.f32 %v3614_v39, %v1512_v55 }
 0xf35   :  { %v1521_v2 = vpack.c.bf16 %v1520_v57, %v1519_v56 }
 0xf37   :  { %4000 = vmatmul.mubr.msk.bf16.vlgmr.msra.gmra.mrb[44].mxu1 %vm89_vm0, %v1521_v2 }
 0xf38   :  { %4019 = vmatprep.mubr.msk.bf16.mxu1 %vm4371_vm1, %v4370_v16  ;;  %4016 = vmatpush3.bf16.msra.mxu1 %v4226_v50 }
 0xf39   :  { %4017 = vmatprep.subr.bf16.mxu1 %v4370_v16 }
 0xf3c   :  { %4018 = vmatpush3.bf16.msra.mxu1 %v4228_v37 }
 0xf3d   :  { %4023 = vmatprep.subr.bf16.mxu1 %v4370_v16 }
0x100a   :  { %v1582_v3 = vpop.f32.mrb[44].mxu1 }
0x100b   :  { %v1583_v62 = vadd.f32 %v3615_v0, %v1582_v3  ;;  %v4001_v5 = vpop.f32.mrb[45].mxu1 }
0x100c   :  { %v1585_v6 = vpop.f32.mrb[46].mxu1 }
0x100d   :  { %v1589_v9 = vmul.f32 %v1583_v62, %v1583_v62  ;;  %v1586_v4 = vadd.f32 %v3615_v0, %v1585_v6  ;;  %v4002_v61 = vpop.f32.mrb[47].mxu1 }
0x100f   :  { %v1591_v7 = vmul.f32 %v1589_v9, %v1583_v62  ;;  %v1590_v8 = vmul.f32 %v1586_v4, %v1586_v4 }
0x1011   :  { %v1593_v10 = vmul.f32 0.044715, %v1591_v7  ;;  %v1592_v11 = vmul.f32 %v1590_v8, %v1586_v4  ;;  %v4231_v7 = vld [vmem:[%s5282_s2 + $0x18] sm:$0xff]  }
0x1013   :  { %v1595_v12 = vadd.f32 %v1593_v10, %v1583_v62  ;;  %v1594_v13 = vmul.f32 0.044715, %v1592_v11 }
0x1015   :  { %v1597_v14 = vmul.f32 0.7978846, %v1595_v12  ;;  %v1596_v15 = vadd.f32 %v1594_v13, %v1586_v4 }
0x1017   :  { %4286 = vtanh.f32 %v1597_v14  ;;  %v1598_v17 = vmul.f32 0.7978846, %v1596_v15 }
0x1019   :  { %4288 = vtanh.f32 %v1598_v17 }
0x1021   :  { %v4287_v18 = vpop.eup %4286 }
0x1022   :  { %v1601_v19 = vadd.f32 1.0, %v4287_v18  ;;  %v3641_v18 = vld [vmem:[%s5286_s27 + $0x1] ss:$0 sm:$0xff]  ;;  %s5291_s27 = smov 120  }
0x1023   :  { %v4289_v21 = vpop.eup %4288 }
0x1024   :  { %v1603_v22 = vmul.f32 0.5, %v1601_v19  ;;  %v1602_v23 = vadd.f32 1.0, %v4289_v21 }
0x1026   :  { %v1604_v25 = vmul.f32 0.5, %v1602_v23  ;;  %v1605_v26 = vmul.f32 %v1603_v22, %v1583_v62  ;;  %v3626_v62 = vld [vmem:[%s5247_s19] ss:$0 sm:$0xff]  ;;  %v3650_v23 = vld [vmem:[%s5288_s29 + $0x1] ss:$0 sm:$0xff] }
0x1028   :  { %v1606_v27 = vmul.f32 %v1604_v25, %v1586_v4  ;;  %v4230_v4 = vld [vmem:[%s5282_s2 + $0x10] sm:$0xff]  }
0x102a   :  { %v1607_v28 = vpack.c.bf16 %v1606_v27, %v1605_v26 }
0x102c   :  { %4012 = vmatmul.mubr.msk.bf16.vlgmr.msra.gmra.mrb[48].mxu0 %vm1647_vm4, %v1607_v28 }
0x102d   :  { %4035 = vmatprep.mubr.msk.bf16.mxu0 %vm4371_vm1, %v4370_v16  ;;  %4032 = vmatpush3.bf16.msra.mxu0 %v4227_v52 }
0x102e   :  { %4033 = vmatprep.subr.bf16.mxu0 %v4370_v16 }
0x1031   :  { %4034 = vmatpush3.bf16.msra.mxu0 %v4229_v53 }
0x1032   :  { %4045 = vmatprep.subr.bf16.mxu0 %v4370_v16 }
0x10ff   :  { %v1685_v30 = vpop.f32.mrb[48].mxu0 }
0x1100   :  { %v1686_v31 = vadd.f32 %v3619_v29, %v1685_v30  ;;  %v4013_v32 = vpop.f32.mrb[49].mxu0 }
0x1101   :  { %v1688_v35 = vpop.f32.mrb[50].mxu0 }
0x1102   :  { %v1689_v36 = vadd.f32 %v3619_v29, %v1688_v35  ;;  %v4014_v38 = vpop.f32.mrb[51].mxu0  ;;  %v1692_v46 = vadd.f32 %v1686_v31, %v1519_v56  ;;  %v3632_v29 = vld [vmem:[%s5287_s28 + $0x1] ss:$0 sm:$0xff]  ;;  %s5292_s28 = smov 112  }
0x1104   :  { %v1696_v51 = vsel %vm89_vm0, %v1692_v46, 0.0  ;;  %v1693_v40 = vadd.f32 %v1689_v36, %v1520_v57 }
0x1105   :  { %1697 = vadd.xlane.f32.xlu0 %v1696_v51 }
0x1106   :  { %v1699_v1 = vsel %vm89_vm0, %v1693_v40, 0.0 }
0x1107   :  { %1700 = vadd.xlane.f32.xlu1 %v1699_v1 }
0x1192   :  { %v1698_v33 = vpop.xlane.xlu0 %1697 }
0x1193   :  { %v1702_v34 = vmul.f32 0.03125, %v1698_v33 }
0x1194   :  { %v1701_v41 = vpop.xlane.xlu1 %1700 }
0x1195   :  { %v1704_v42 = vsub.f32 %v1692_v46, %v1702_v34  ;;  %v1703_v43 = vmul.f32 0.03125, %v1701_v41 }
0x1197   :  { %v1705_v44 = vsub.f32 %v1693_v40, %v1703_v43  ;;  %v1706_v45 = vmul.f32 %v1704_v42, %v1704_v42 }
0x1199   :  { %v1708_v47 = vsel %vm89_vm0, %v1706_v45, 0.0  ;;  %v1707_v48 = vmul.f32 %v1705_v44, %v1705_v44 }
0x119a   :  { %1709 = vadd.xlane.f32.xlu0 %v1708_v47 }
0x119b   :  { %v1711_v49 = vsel %vm89_vm0, %v1707_v48, 0.0 }
0x119c   :  { %1712 = vadd.xlane.f32.xlu1 %v1711_v49 }
0x1227   :  { %v1710_v54 = vpop.xlane.xlu0 %1709 }
0x1228   :  { %v1714_v39 = vmul.f32 0.03125, %v1710_v54 }
0x1229   :  { %v1713_v55 = vpop.xlane.xlu1 %1712 }
0x122a   :  { %v1716_v56 = vadd.f32 1e-12, %v1714_v39  ;;  %v1715_v57 = vmul.f32 0.03125, %v1713_v55 }
0x122c   :  { %4290 = vrsqrt.f32 %v1716_v56  ;;  %v1717_v2 = vadd.f32 1e-12, %v1715_v57 }
0x122e   :  { %4292 = vrsqrt.f32 %v1717_v2 }
0x1236   :  { %v4291_v58 = vpop.eup %4290 }
0x1237   :  { %v1720_v60 = vmul.f32 %v4291_v58, %v1704_v42 }
0x1238   :  { %v4293_v63 = vpop.eup %4292 }
0x1239   :  { %v1728_v0 = vmul.f32 %v3625_v59, %v1720_v60  ;;  %v1721_v3 = vmul.f32 %v4293_v63, %v1705_v44 }
0x123b   :  { %v1729_v5 = vmul.f32 %v3625_v59, %v1721_v3  ;;  %v4871_v6 = vadd.f32 %v3626_v62, %v1728_v0 }
0x123d   :  { %v4873_v9 = vadd.f32 %v3626_v62, %v1729_v5 }
0x123f   :  { %v1738_v61 = vpack.c.bf16 %v4873_v9, %v4871_v6 }
0x1241   :  { %4020 = vmatmul.mubr.msk.bf16.vlgmr.msra.gmra.mrb[48].mxu1 %vm89_vm0, %v1738_v61  ;;  %4036 = vmatmul.mubr.msk.bf16.vlgmr.msra.gmra.mrb[52].mxu0 %vm89_vm0, %v1738_v61 }
0x1242   :  { %4024 = vmatpush3.bf16.msra.mxu1 %v4230_v4  ;;  %4027 = vmatprep.mubr.msk.bf16.mxu1 %vm4371_vm1, %v4370_v16 }
0x1243   :  { %4025 = vmatprep.subr.bf16.mxu1 %v4370_v16  ;;  %4047 = vmatprep.mubr.msk.bf16.mxu0 %vm4371_vm1, %v4370_v16 }
0x1246   :  { %4026 = vmatpush3.bf16.msra.mxu1 %v4231_v7 }
0x1247   :  { %4039 = vmatprep.subr.bf16.mxu1 %v4370_v16 }
0x1249   :  { %4028 = vmatmul.mubr.msk.bf16.vlgmr.msra.gmra.mrb[52].mxu1 %vm89_vm0, %v1738_v61 }
0x124a   :  { %4041 = vmatprep.mubr.msk.bf16.mxu1 %vm4371_vm1, %v4370_v16 }
0x1314   :  { %v1801_v8 = vpop.f32.mrb[48].mxu1  ;;  %v1933_v10 = vpop.f32.mrb[52].mxu0 }
0x1315   :  { %v4021_v11 = vpop.f32.mrb[49].mxu1  ;;  %v4037_v12 = vpop.f32.mrb[53].mxu0  ;;  %v1934_v30 = vadd.f32 %v3650_v23, %v1933_v10  ;;  %v1802_v35 = vadd.f32 %v3632_v29, %v1801_v8 }
0x1316   :  { %v1804_v13 = vpop.f32.mrb[50].mxu1  ;;  %v1936_v14 = vpop.f32.mrb[54].mxu0 }
0x1317   :  { %v4022_v15 = vpop.f32.mrb[51].mxu1  ;;  %v4038_v17 = vpop.f32.mrb[55].mxu0  ;;  %v1937_v36 = vadd.f32 %v3650_v23, %v1936_v14  ;;  %v4912_v46 = vpack.c.bf16 %v1934_v30, %v1934_v30  ;;  %v1805_v51 = vadd.f32 %v3632_v29, %v1804_v13  ;;  %v4915_v40 = vpack.c.bf16 %v1802_v35, %v1802_v35 }
0x1319   :  { %v4917_v1 = vpack.c.bf16 %v1937_v36, %v1937_v36  ;;  %v4919_v33 = vpack.c.bf16 %v1805_v51, %v1805_v51  ;;  %v2070_v34 = vsel %vm495_vm3, %v4912_v46, 0 }
0x131b   :  { %v2116_v41 = vsel %vm495_vm3, %v4917_v1, 0 }
0x131c   :  { %v1867_v19 = vpop.f32.mrb[52].mxu1 }
0x131d   :  { %v1868_v21 = vadd.f32 %v3641_v18, %v1867_v19  ;;  %v4029_v22 = vpop.f32.mrb[53].mxu1 }
0x131e   :  { %v1870_v25 = vpop.f32.mrb[54].mxu1 }
0x131f   :  { %v4900_v26 = vpack.c.bf16 %v1868_v21, %v1868_v21  ;;  %v1871_v27 = vadd.f32 %v3641_v18, %v1870_v25  ;;  %v4030_v28 = vpop.f32.mrb[55].mxu1 }
0x1321   :  { %v4905_v31 = vpack.c.bf16 %v1871_v27, %v1871_v27  ;;  %v1950_v32 = vsel %vm361_vm2, %v4900_v26, 0 }
0x1322   :  { %4040 = vmatpush3.bf16.xpose.msra.mxu1 %v1950_v32 }
0x1323   :  { %v1996_v38 = vsel %vm361_vm2, %v4905_v31, 0  ;;  %4051 = vmatprep.subr.bf16.mxu1 %v4370_v16 }
0x1324   :  { %4046 = vmatpush3.bf16.xpose.msra.mxu0 %v1996_v38 }
0x1325   :  { %4057 = vmatprep.subr.bf16.mxu0 %v4370_v16 }
0x1329   :  { %4042 = vmatmul.mubr.msk.bf16.vlgmr.msra.gmra.mrb[56].mxu1 %vm361_vm2, %v4915_v40 }
0x132a   :  { %4052 = vmatpush3.bf16.msra.mxu1 %v2070_v34  ;;  %4053 = vmatprep.mubr.msk.bf16.mxu1 %vm4371_vm1, %v4370_v16 }
0x132b   :  { %4048 = vmatmul.mubr.msk.bf16.vlgmr.msra.gmra.mrb[56].mxu0 %vm361_vm2, %v4919_v33  ;;  %4063 = vmatprep.subr.bf16.mxu1 %v4370_v16 }
0x132c   :  { %4058 = vmatpush3.bf16.msra.mxu0 %v2116_v41  ;;  %4059 = vmatprep.mubr.msk.bf16.mxu0 %vm4371_vm1, %v4370_v16 }
0x132d   :  { %4069 = vmatprep.subr.bf16.mxu0 %v4370_v16 }
0x13fc   :  { %v1986_v42 = vpop.f32.mrb[56].mxu1 }
0x13fd   :  { %v2038_v43 = vmul.f32 0.35355338, %v1986_v42  ;;  %v4043_v44 = vpop.f32.mrb[57].mxu1 }
0x13fe   :  { %v1989_v45 = vpop.f32.mrb[58].mxu1  ;;  %v2032_v47 = vpop.f32.mrb[56].mxu0 }
0x13ff   :  { %v2039_v48 = vmul.f32 0.35355338, %v2032_v47  ;;  %v4044_v49 = vpop.f32.mrb[59].mxu1  ;;  %v4049_v50 = vpop.f32.mrb[57].mxu0  ;;  %v2040_v52 = vadd.f32 %v2038_v43, %v4617_v20 }
0x1400   :  { %v2035_v37 = vpop.f32.mrb[58].mxu0 }
0x1401   :  { %v4050_v53 = vpop.f32.mrb[59].mxu0  ;;  %v2042_v54 = vsel %vm361_vm2, %v2040_v52, -inf  ;;  %v2041_v39 = vadd.f32 %v2039_v48, %v4619_v24 }
0x1402   :  { %2043 = vmax.xlane.f32.xlu0 %v2042_v54 }
0x1403   :  { %v2045_v55 = vsel %vm361_vm2, %v2041_v39, -inf }
0x1404   :  { %2046 = vmax.xlane.f32.xlu1 %v2045_v55 }
0x1415   :  { %2217 = vrot.lane.b32.xlu1 %v4905_v31, %s5291_s27 }
0x148f   :  { %v2044_v56 = vpop.xlane.xlu0 %2043 }
0x1490   :  { %v2048_v57 = vsub.f32 %v2040_v52, %v2044_v56 }
0x1491   :  { %v2047_v2 = vpop.xlane.xlu1 %2046 }
0x1492   :  { %v2050_v58 = vmul.f32 1.442695, %v2048_v57  ;;  %v2049_v59 = vsub.f32 %v2041_v39, %v2047_v2 }
0x1494   :  { %4294 = vpow2.f32 %v2050_v58  ;;  %v2052_v60 = vmul.f32 1.442695, %v2049_v59 }
0x1495   :  { %v2218_v5 = vpop.permute.xlu1 %2217 }
0x1496   :  { %4296 = vpow2.f32 %v2052_v60  ;;  %v2223_v17 = vsel %vm361_vm2, %v2218_v5, 0 }
0x149e   :  { %v4295_v63 = vpop.eup %4294 }
0x149f   :  { %v2054_v0 = vsel %vm361_vm2, %v4295_v63, 0.0 }
0x14a0   :  { %v4297_v3 = vpop.eup %4296  ;;  %2055 = vadd.xlane.f32.xlu0 %v2054_v0 }
0x14a1   :  { %v2057_v62 = vsel %vm361_vm2, %v4297_v3, 0.0 }
0x14a2   :  { %2058 = vadd.xlane.f32.xlu1 %v2057_v62 }
0x14b3   :  { %2162 = vrot.lane.b32.xlu1 %v4915_v40, %s5291_s27 }
0x14b6   :  { %2165 = vrot.lane.b32.xlu0 %v4900_v26, %s5291_s27 }
0x14b7   :  { %2214 = vrot.lane.b32.xlu1 %v4919_v33, %s5291_s27 }
0x152d   :  { %v2056_v4 = vpop.xlane.xlu0 %2055 }
0x152e   :  { %4298 = vrcp.f32 %v2056_v4  ;;  %v3663_v4 = vld [vmem:[%s5290_s8 + $0x14] sm:$0xf] }
0x152f   :  { %v2059_v61 = vpop.xlane.xlu1 %2058 }
0x1530   :  { %4300 = vrcp.f32 %v2059_v61 }
0x1531   :  { %v2166_v11 = vpop.permute.xlu0 %2165 }
0x1532   :  { %v2171_v14 = vsel %vm361_vm2, %v2166_v11, 0  ;;  %v3658_v11 = vld [vmem:[%s5290_s8 + $0x10] sm:$0xf] }
0x1533   :  { %v2163_v18 = vpop.permute.xlu1 %2162 }
0x1537   :  { %v2215_v19 = vpop.permute.xlu1 %2214 }
0x1538   :  { %v4299_v7 = vpop.eup %4298 }
0x1539   :  { %v2062_v8 = vmul.f32 %v4299_v7, %v4295_v63 }
0x153a   :  { %v4301_v10 = vpop.eup %4300 }
0x153b   :  { %v2063_v12 = vmul.f32 %v4301_v10, %v4297_v3  ;;  %v2064_v13 = vpack.c.bf16 %v2062_v8, %v2062_v8  ;;  %v2398_v8 = vsel %vm495_vm3, %v3663_v4, 0 }
0x153d   :  { %4054 = vmatmul.mubr.msk.bf16.vlgmr.msra.gmra.mrb[60].mxu1 %vm361_vm2, %v2064_v13  ;;  %v2065_v15 = vpack.c.bf16 %v2063_v12, %v2063_v12 }
0x153e   :  { %4064 = vmatpush3.bf16.xpose.msra.mxu1 %v2171_v14  ;;  %4065 = vmatprep.mubr.msk.bf16.mxu1 %vm4371_vm1, %v4370_v16  ;;  %v2445_v14 = vsel %vm495_vm3, %v3658_v11, 0 }
0x153f   :  { %4060 = vmatmul.mubr.msk.bf16.vlgmr.msra.gmra.mrb[60].mxu0 %vm361_vm2, %v2065_v15  ;;  %4075 = vmatprep.subr.bf16.mxu1 %v4370_v16 }
0x1540   :  { %4070 = vmatpush3.bf16.xpose.msra.mxu0 %v2223_v17  ;;  %4071 = vmatprep.mubr.msk.bf16.mxu0 %vm4371_vm1, %v4370_v16 }
0x1541   :  { %4081 = vmatprep.subr.bf16.mxu0 %v4370_v16 }
0x1545   :  { %4066 = vmatmul.mubr.msk.bf16.vlgmr.msra.gmra.mrb[64].mxu1 %vm361_vm2, %v2163_v18 }
0x1546   :  { %4077 = vmatprep.mubr.msk.bf16.mxu1 %vm4371_vm1, %v4370_v16 }
0x1547   :  { %4072 = vmatmul.mubr.msk.bf16.vlgmr.msra.gmra.mrb[64].mxu0 %vm361_vm2, %v2215_v19 }
0x1548   :  { %4083 = vmatprep.mubr.msk.bf16.mxu0 %vm4371_vm1, %v4370_v16 }
0x1610   :  { %v4965_v21 = vpop.f32.mrb[60].mxu1 }
0x1611   :  { %v4055_v22 = vpop.f32.mrb[61].mxu1 }
0x1612   :  { %v2109_v23 = vpop.f32.mrb[62].mxu1  ;;  %v4967_v25 = vpop.f32.mrb[60].mxu0 }
0x1613   :  { %v2158_v27 = vpack.c.bf16 %v4967_v25, %v4965_v21  ;;  %v4056_v28 = vpop.f32.mrb[63].mxu1  ;;  %v4061_v29 = vpop.f32.mrb[61].mxu0 }
0x1614   :  { %v2155_v30 = vpop.f32.mrb[62].mxu0 }
0x1615   :  { %v4062_v32 = vpop.f32.mrb[63].mxu0 }
0x1618   :  { %v2207_v35 = vpop.f32.mrb[64].mxu1 }
0x1619   :  { %v2265_v36 = vmul.f32 0.35355338, %v2207_v35  ;;  %v4067_v38 = vpop.f32.mrb[65].mxu1 }
0x161a   :  { %v2210_v51 = vpop.f32.mrb[66].mxu1  ;;  %v2259_v34 = vpop.f32.mrb[64].mxu0 }
0x161b   :  { %v2266_v41 = vmul.f32 0.35355338, %v2259_v34  ;;  %v4068_v42 = vpop.f32.mrb[67].mxu1  ;;  %v4073_v43 = vpop.f32.mrb[65].mxu0  ;;  %v2267_v44 = vadd.f32 %v2265_v36, %v4617_v20 }
0x161c   :  { %v2262_v45 = vpop.f32.mrb[66].mxu0 }
0x161d   :  { %v4074_v47 = vpop.f32.mrb[67].mxu0  ;;  %v2269_v48 = vsel %vm361_vm2, %v2267_v44, -inf  ;;  %v2268_v49 = vadd.f32 %v2266_v41, %v4619_v24 }
0x161e   :  { %2270 = vmax.xlane.f32.xlu0 %v2269_v48 }
0x161f   :  { %v2272_v50 = vsel %vm361_vm2, %v2268_v49, -inf }
0x1620   :  { %2273 = vmax.xlane.f32.xlu1 %v2272_v50 }
0x1631   :  { %2343 = vrot.lane.b32.xlu1 %v4917_v1, %s5291_s27 }
0x1635   :  { %2490 = vrot.lane.b32.xlu1 %v4900_v26, %s5292_s28 }
0x1639   :  { %2540 = vrot.lane.b32.xlu1 %v4905_v31, %s5292_s28 }
0x163d   :  { %2538 = vrot.lane.b32.xlu1 %v4919_v33, %s5292_s28 }
0x16ab   :  { %v2271_v52 = vpop.xlane.xlu0 %2270 }
0x16ac   :  { %v2275_v37 = vsub.f32 %v2267_v44, %v2271_v52 }
0x16ad   :  { %v2274_v53 = vpop.xlane.xlu1 %2273 }
0x16ae   :  { %v2277_v54 = vmul.f32 1.442695, %v2275_v37  ;;  %v2276_v39 = vsub.f32 %v2268_v49, %v2274_v53 }
0x16b0   :  { %4302 = vpow2.f32 %v2277_v54  ;;  %v2279_v55 = vmul.f32 1.442695, %v2276_v39 }
0x16b1   :  { %v2344_v56 = vpop.permute.xlu1 %2343 }
0x16b2   :  { %4304 = vpow2.f32 %v2279_v55  ;;  %v2349_v57 = vsel %vm495_vm3, %v2344_v56, 0 }
0x16b3   :  { %4082 = vmatpush3.bf16.msra.mxu0 %v2349_v57 }
0x16b4   :  { %4093 = vmatprep.subr.bf16.mxu0 %v4370_v16 }
0x16b5   :  { %v2491_v15 = vpop.permute.xlu1 %2490 }
0x16b6   :  { %v2496_v32 = vsel %vm361_vm2, %v2491_v15, 0 }
0x16b9   :  { %v2541_v17 = vpop.permute.xlu1 %2540 }
0x16ba   :  { %v4303_v2 = vpop.eup %4302  ;;  %v2546_v18 = vsel %vm361_vm2, %v2541_v17, 0 }
0x16bb   :  { %v2281_v58 = vsel %vm361_vm2, %v4303_v2, 0.0 }
0x16bc   :  { %v4305_v59 = vpop.eup %4304  ;;  %2282 = vadd.xlane.f32.xlu0 %v2281_v58 }
0x16bd   :  { %v2284_v60 = vsel %vm361_vm2, %v4305_v59, 0.0  ;;  %v2539_v19 = vpop.permute.xlu1 %2538 }
0x16c0   :  { %2285 = vadd.xlane.f32.xlu0 %v2284_v60 }
0x16d6   :  { %2294 = vrot.lane.b32.xlu0 %v4912_v46, %s5291_s27 }
0x16da   :  { %2488 = vrot.lane.b32.xlu0 %v4915_v40, %s5292_s28 }
0x1749   :  { %v2283_v63 = vpop.xlane.xlu0 %2282 }
0x174a   :  { %4306 = vrcp.f32 %v2283_v63 }
0x174d   :  { %v2286_v0 = vpop.xlane.xlu0 %2285 }
0x174e   :  { %4308 = vrcp.f32 %v2286_v0 }
0x1751   :  { %v2295_v3 = vpop.permute.xlu0 %2294 }
0x1752   :  { %v2300_v62 = vsel %vm495_vm3, %v2295_v3, 0 }
0x1753   :  { %4076 = vmatpush3.bf16.msra.mxu1 %v2300_v62 }
0x1754   :  { %v4307_v5 = vpop.eup %4306  ;;  %4087 = vmatprep.subr.bf16.mxu1 %v4370_v16 }
0x1755   :  { %v2289_v61 = vmul.f32 %v4307_v5, %v4303_v2  ;;  %v2489_v51 = vpop.permute.xlu0 %2488 }
0x1757   :  { %v2291_v7 = vpack.c.bf16 %v2289_v61, %v2289_v61 }
0x1758   :  { %v4309_v10 = vpop.eup %4308 }
0x1759   :  { %v2290_v12 = vmul.f32 %v4309_v10, %v4305_v59  ;;  %4078 = vmatmul.mubr.msk.bf16.vlgmr.msra.gmra.mrb[68].mxu1 %vm361_vm2, %v2291_v7 }
0x175a   :  { %4088 = vmatpush3.bf16.msra.mxu1 %v2398_v8  ;;  %4089 = vmatprep.mubr.msk.bf16.mxu1 %vm4371_vm1, %v4370_v16 }
0x175b   :  { %v2292_v13 = vpack.c.bf16 %v2290_v12, %v2290_v12  ;;  %4099 = vmatprep.subr.bf16.mxu1 %v4370_v16 }
0x175d   :  { %4084 = vmatmul.mubr.msk.bf16.vlgmr.msra.gmra.mrb[68].mxu0 %vm361_vm2, %v2292_v13 }
0x175e   :  { %4094 = vmatpush3.bf16.msra.mxu0 %v2445_v14  ;;  %4095 = vmatprep.mubr.msk.bf16.mxu0 %vm4371_vm1, %v4370_v16 }
0x175f   :  { %4105 = vmatprep.subr.bf16.mxu0 %v4370_v16 }
0x1765   :  { %4096 = vmatmul.mubr.msk.bf16.vlgmr.msra.gmra.mrb[72].mxu0 %vm361_vm2, %v2158_v27 }
0x1766   :  { %4107 = vmatprep.mubr.msk.bf16.mxu0 %vm4371_vm1, %v4370_v16 }
0x1767   :  { %4106 = vmatpush3.bf16.xpose.msra.mxu0 %v2546_v18 }
0x1768   :  { %4117 = vmatprep.subr.bf16.mxu0 %v4370_v16 }
0x176e   :  { %4108 = vmatmul.mubr.msk.bf16.vlgmr.msra.gmra.mrb[76].mxu0 %vm361_vm2, %v2539_v19 }
0x176f   :  { %4119 = vmatprep.mubr.msk.bf16.mxu0 %vm4371_vm1, %v4370_v16 }
0x182c   :  { %v2336_v22 = vpop.f32.mrb[68].mxu1 }
0x182d   :  { %v4079_v23 = vpop.f32.mrb[69].mxu1 }
0x182e   :  { %v2339_v28 = vpop.f32.mrb[70].mxu1 }
0x182f   :  { %v4080_v21 = vpop.f32.mrb[71].mxu1 }
0x1830   :  { %v2385_v25 = vpop.f32.mrb[68].mxu0 }
0x1831   :  { %v2391_v27 = vpack.c.bf16 %v2385_v25, %v2336_v22  ;;  %v4085_v29 = vpop.f32.mrb[69].mxu0 }
0x1832   :  { %v2388_v30 = vpop.f32.mrb[70].mxu0 }
0x1833   :  { %v4086_v35 = vpop.f32.mrb[71].mxu0  ;;  %4090 = vmatmul.mubr.msk.bf16.vlgmr.msra.gmra.mrb[72].mxu1 %vm361_vm2, %v2391_v27  ;;  %v3670_v30 = vld [vmem:[%s5290_s8 + $0x18] sm:$0xf] }
0x1834   :  { %4100 = vmatpush3.bf16.xpose.msra.mxu1 %v2496_v32  ;;  %4101 = vmatprep.mubr.msk.bf16.mxu1 %vm4371_vm1, %v4370_v16  ;;  %v2719_v32 = vsel %vm495_vm3, %v3670_v30, 0 }
0x1835   :  { %4111 = vmatprep.subr.bf16.mxu1 %v4370_v16 }
0x1838   :  { %v2481_v36 = vpop.f32.mrb[72].mxu0 }
0x1839   :  { %v4097_v38 = vpop.f32.mrb[73].mxu0 }
0x183a   :  { %v2484_v34 = vpop.f32.mrb[74].mxu0 }
0x183b   :  { %v4098_v41 = vpop.f32.mrb[75].mxu0  ;;  %4102 = vmatmul.mubr.msk.bf16.vlgmr.msra.gmra.mrb[76].mxu1 %vm361_vm2, %v2489_v51 }
0x183c   :  { %4113 = vmatprep.mubr.msk.bf16.mxu1 %vm4371_vm1, %v4370_v16 }
0x1841   :  { %v2582_v42 = vpop.f32.mrb[76].mxu0 }
0x1842   :  { %v2589_v43 = vmul.f32 0.35355338, %v2582_v42  ;;  %v4109_v44 = vpop.f32.mrb[77].mxu0 }
0x1843   :  { %v2585_v45 = vpop.f32.mrb[78].mxu0 }
0x1844   :  { %v4110_v47 = vpop.f32.mrb[79].mxu0  ;;  %v2591_v48 = vadd.f32 %v2589_v43, %v4619_v24 }
0x1846   :  { %v2595_v49 = vsel %vm361_vm2, %v2591_v48, -inf }
0x1847   :  { %2596 = vmax.xlane.f32.xlu1 %v2595_v49 }
0x1858   :  { %2664 = vrot.lane.b32.xlu1 %v4917_v1, %s5292_s28 }
0x185c   :  { %2766 = vrot.lane.b32.xlu1 %v4900_v26, %s5293_s10 }
0x1860   :  { %2816 = vrot.lane.b32.xlu1 %v4905_v31, %s5293_s10 }
0x1864   :  { %2814 = vrot.lane.b32.xlu1 %v4919_v33, %s5293_s10 }
0x18d4   :  { %v2597_v50 = vpop.xlane.xlu1 %2596 }
0x18d5   :  { %v2599_v53 = vsub.f32 %v2591_v48, %v2597_v50 }
0x18d7   :  { %v2602_v54 = vmul.f32 1.442695, %v2599_v53 }
0x18d8   :  { %v2665_v52 = vpop.permute.xlu1 %2664 }
0x18d9   :  { %v2670_v37 = vsel %vm495_vm3, %v2665_v52, 0  ;;  %4310 = vpow2.f32 %v2602_v54 }
0x18da   :  { %4118 = vmatpush3.bf16.msra.mxu0 %v2670_v37 }
0x18db   :  { %4129 = vmatprep.subr.bf16.mxu0 %v4370_v16 }
0x18dc   :  { %v2767_v13 = vpop.permute.xlu1 %2766 }
0x18dd   :  { %v2772_v15 = vsel %vm361_vm2, %v2767_v13, 0 }
0x18e0   :  { %v2817_v43 = vpop.permute.xlu1 %2816 }
0x18e1   :  { %v2822_v49 = vsel %vm361_vm2, %v2817_v43, 0 }
0x18e3   :  { %v4311_v3 = vpop.eup %4310 }
0x18e4   :  { %v2607_v62 = vsel %vm361_vm2, %v4311_v3, 0.0 }
0x1906   :  { %v2434_v39 = vpop.f32.mrb[72].mxu1 }
0x1907   :  { %v5040_v55 = vadd.f32 %v2481_v36, %v2434_v39  ;;  %v4091_v56 = vpop.f32.mrb[73].mxu1 }
0x1908   :  { %v2437_v26 = vpop.f32.mrb[74].mxu1 }
0x1909   :  { %v5042_v57 = vadd.f32 %v2484_v34, %v2437_v26  ;;  %v4092_v31 = vpop.f32.mrb[75].mxu1 }
0x190e   :  { %v2532_v2 = vpop.f32.mrb[76].mxu1 }
0x190f   :  { %v2588_v33 = vmul.f32 0.35355338, %v2532_v2  ;;  %v4103_v58 = vpop.f32.mrb[77].mxu1 }
0x1910   :  { %v2535_v59 = vpop.f32.mrb[78].mxu1 }
0x1911   :  { %v4104_v60 = vpop.f32.mrb[79].mxu1  ;;  %v2590_v63 = vadd.f32 %v2588_v33, %v4617_v20 }
0x1913   :  { %v2592_v0 = vsel %vm361_vm2, %v2590_v63, -inf }
0x1914   :  { %2593 = vmax.xlane.f32.xlu0 %v2592_v0 }
0x1918   :  { %2608 = vadd.xlane.f32.xlu0 %v2607_v62 }
0x19a1   :  { %v2594_v5 = vpop.xlane.xlu0 %2593 }
0x19a2   :  { %v2598_v4 = vsub.f32 %v2590_v63, %v2594_v5 }
0x19a4   :  { %v2600_v61 = vmul.f32 1.442695, %v2598_v4 }
0x19a5   :  { %v2609_v7 = vpop.xlane.xlu0 %2608 }
0x19a6   :  { %4312 = vpow2.f32 %v2600_v61 }
0x19a7   :  { %4314 = vrcp.f32 %v2609_v7 }
0x19b0   :  { %v4313_v8 = vpop.eup %4312 }
0x19b1   :  { %v4315_v10 = vpop.eup %4314  ;;  %v2604_v11 = vsel %vm361_vm2, %v4313_v8, 0.0 }
0x19b2   :  { %v2613_v12 = vmul.f32 %v4315_v10, %v4311_v3  ;;  %2605 = vadd.xlane.f32.xlu0 %v2604_v11 }
0x19b4   :  { %v2615_v14 = vpack.c.bf16 %v2613_v12, %v2613_v12 }
0x19b6   :  { %4120 = vmatmul.mubr.msk.bf16.vlgmr.msra.gmra.mrb[80].mxu0 %vm361_vm2, %v2615_v14 }
0x19b7   :  { %4130 = vmatpush3.bf16.xpose.msra.mxu0 %v2772_v15  ;;  %4131 = vmatprep.mubr.msk.bf16.mxu0 %vm4371_vm1, %v4370_v16 }
0x19b8   :  { %4141 = vmatprep.subr.bf16.mxu0 %v4370_v16 }
0x19c8   :  { %2616 = vrot.lane.b32.xlu0 %v4912_v46, %s5292_s28 }
0x19cc   :  { %2764 = vrot.lane.b32.xlu0 %v4915_v40, %s5293_s10 }
0x1a3f   :  { %v2606_v17 = vpop.xlane.xlu0 %2605 }
0x1a40   :  { %4316 = vrcp.f32 %v2606_v17 }
0x1a43   :  { %v2617_v18 = vpop.permute.xlu0 %2616 }
0x1a44   :  { %v2622_v19 = vsel %vm495_vm3, %v2617_v18, 0 }
0x1a45   :  { %4112 = vmatpush3.bf16.msra.mxu1 %v2622_v19  ;;  %v3676_v19 = vld [vmem:[%s5290_s8 + $0x1c] sm:$0xf] }
0x1a46   :  { %4123 = vmatprep.subr.bf16.mxu1 %v4370_v16 }
0x1a47   :  { %v2765_v22 = vpop.permute.xlu0 %2764 }
0x1a48   :  { %4132 = vmatmul.mubr.msk.bf16.vlgmr.msra.gmra.mrb[84].mxu0 %vm361_vm2, %v2765_v22  ;;  %v2995_v22 = vsel %vm495_vm3, %v3676_v19, 0 }
0x1a49   :  { %4143 = vmatprep.mubr.msk.bf16.mxu0 %vm4371_vm1, %v4370_v16 }
0x1a4a   :  { %v4317_v23 = vpop.eup %4316 }
0x1a4b   :  { %v2612_v28 = vmul.f32 %v4317_v23, %v4313_v8 }
0x1a4d   :  { %v2614_v21 = vpack.c.bf16 %v2612_v28, %v2612_v28 }
0x1a4f   :  { %4114 = vmatmul.mubr.msk.bf16.vlgmr.msra.gmra.mrb[80].mxu1 %vm361_vm2, %v2614_v21 }
0x1a50   :  { %4125 = vmatprep.mubr.msk.bf16.mxu1 %vm4371_vm1, %v4370_v16  ;;  %4124 = vmatpush3.bf16.msra.mxu1 %v2719_v32 }
0x1a51   :  { %4135 = vmatprep.subr.bf16.mxu1 %v4370_v16 }
0x1a89   :  { %v2706_v40 = vpop.f32.mrb[80].mxu0 }
0x1a8a   :  { %v4121_v25 = vpop.f32.mrb[81].mxu0 }
0x1a8b   :  { %v2709_v27 = vpop.f32.mrb[82].mxu0 }
0x1a8c   :  { %v4122_v29 = vpop.f32.mrb[83].mxu0 }
0x1b1b   :  { %v2808_v35 = vpop.f32.mrb[84].mxu0 }
0x1b1c   :  { %v2864_v36 = vmul.f32 0.35355338, %v2808_v35  ;;  %v4133_v38 = vpop.f32.mrb[85].mxu0 }
0x1b1d   :  { %v2811_v51 = vpop.f32.mrb[86].mxu0 }
0x1b1e   :  { %v4134_v34 = vpop.f32.mrb[87].mxu0  ;;  %v2866_v41 = vadd.f32 %v2864_v36, %v4617_v20  ;;  %v2815_v20 = vpop.permute.xlu1 %2814  ;;  %v3679_v36 = vld [vmem:[%s5239_s11 + $0x1] ss:$0 sm:$0xff] }
0x1b20   :  { %v2868_v42 = vsel %vm361_vm2, %v2866_v41, -inf }
0x1b21   :  { %2869 = vmax.xlane.f32.xlu0 %v2868_v42 }
0x1b22   :  { %v2658_v44 = vpop.f32.mrb[80].mxu1 }
0x1b23   :  { %v2712_v45 = vpack.c.bf16 %v2706_v40, %v2658_v44  ;;  %v4115_v47 = vpop.f32.mrb[81].mxu1 }
0x1b24   :  { %v2661_v48 = vpop.f32.mrb[82].mxu1 }
0x1b25   :  { %v4116_v50 = vpop.f32.mrb[83].mxu1  ;;  %4126 = vmatmul.mubr.msk.bf16.vlgmr.msra.gmra.mrb[84].mxu1 %vm361_vm2, %v2712_v45 }
0x1b26   :  { %4136 = vmatpush3.bf16.xpose.msra.mxu1 %v2822_v49  ;;  %4137 = vmatprep.mubr.msk.bf16.mxu1 %vm4371_vm1, %v4370_v16 }
0x1b27   :  { %4147 = vmatprep.subr.bf16.mxu1 %v4370_v16 }
0x1b2d   :  { %4138 = vmatmul.mubr.msk.bf16.vlgmr.msra.gmra.mrb[88].mxu1 %vm361_vm2, %v2815_v20 }
0x1b2e   :  { %4149 = vmatprep.mubr.msk.bf16.mxu1 %vm4371_vm1, %v4370_v16 }
0x1bae   :  { %v2870_v52 = vpop.xlane.xlu0 %2869 }
0x1baf   :  { %v2874_v37 = vsub.f32 %v2866_v41, %v2870_v52 }
0x1bb1   :  { %v2876_v53 = vmul.f32 1.442695, %v2874_v37 }
0x1bb3   :  { %4318 = vpow2.f32 %v2876_v53 }
0x1bbd   :  { %v4319_v54 = vpop.eup %4318 }
0x1bbe   :  { %v2880_v39 = vsel %vm361_vm2, %v4319_v54, 0.0 }
0x1bbf   :  { %2881 = vadd.xlane.f32.xlu0 %v2880_v39 }
0x1bf8   :  { %v2755_v56 = vpop.f32.mrb[84].mxu1 }
0x1bf9   :  { %v2762_v26 = vadd.f32 %v2755_v56, %v5040_v55  ;;  %v4127_v31 = vpop.f32.mrb[85].mxu1 }
0x1bfa   :  { %v2758_v2 = vpop.f32.mrb[86].mxu1  ;;  %v4233_v31 = vld [vmem:[%s5242_s14 + $0x18] sm:$0xff]  }
0x1bfb   :  { %v2763_v33 = vadd.f32 %v2758_v2, %v5042_v57  ;;  %v4128_v58 = vpop.f32.mrb[87].mxu1 }
0x1c00   :  { %v2858_v59 = vpop.f32.mrb[88].mxu1 }
0x1c01   :  { %v2865_v60 = vmul.f32 0.35355338, %v2858_v59  ;;  %v4139_v63 = vpop.f32.mrb[89].mxu1 }
0x1c02   :  { %v2861_v0 = vpop.f32.mrb[90].mxu1 }
0x1c03   :  { %v4140_v3 = vpop.f32.mrb[91].mxu1  ;;  %v2867_v62 = vadd.f32 %v2865_v60, %v4619_v24 }
0x1c04   :  { %v3682_v3 = vld [vmem:[%s5240_s12 + $0x1] ss:$0 sm:$0xff] }
0x1c05   :  { %v2871_v5 = vsel %vm361_vm2, %v2867_v62, -inf }
0x1c06   :  { %2872 = vmax.xlane.f32.xlu1 %v2871_v5 }
0x1c17   :  { %2940 = vrot.lane.b32.xlu1 %v4917_v1, %s5293_s10 }
0x1c4c   :  { %v2882_v24 = vpop.xlane.xlu0 %2881 }
0x1c93   :  { %v2873_v4 = vpop.xlane.xlu1 %2872 }
0x1c94   :  { %v2875_v55 = vsub.f32 %v2867_v62, %v2873_v4 }
0x1c96   :  { %v2878_v61 = vmul.f32 1.442695, %v2875_v55 }
0x1c97   :  { %v2941_v7 = vpop.permute.xlu1 %2940 }
0x1c98   :  { %4320 = vpow2.f32 %v2878_v61  ;;  %v2946_v57 = vsel %vm495_vm3, %v2941_v7, 0  ;;  %v3683_v61 = vld [vmem:[%s5241_s13 + $0x1] ss:$0 sm:$0xff] }
0x1c99   :  { %4148 = vmatpush3.bf16.msra.mxu1 %v2946_v57  ;;  %4322 = vrcp.f32 %v2882_v24  ;;  %v4234_v24 = vld [vmem:[%s5244_s16 + $0x20] sm:$0xff]  }
0x1c9a   :  { %4159 = vmatprep.subr.bf16.mxu1 %v4370_v16 }
0x1ca2   :  { %v4321_v8 = vpop.eup %4320 }
0x1ca3   :  { %v2883_v10 = vsel %vm361_vm2, %v4321_v8, 0.0  ;;  %v4323_v1 = vpop.eup %4322 }
0x1ca4   :  { %2884 = vadd.xlane.f32.xlu0 %v2883_v10  ;;  %v2888_v12 = vmul.f32 %v4323_v1, %v4319_v54  ;;  %v4235_v1 = vld [vmem:[%s5244_s16 + $0x28] sm:$0xff]  }
0x1ca6   :  { %v2890_v15 = vpack.c.bf16 %v2888_v12, %v2888_v12  ;;  %v4237_v12 = vld [vmem:[%s5244_s16 + $0x38] sm:$0xff]  }
0x1cba   :  { %2892 = vrot.lane.b32.xlu0 %v4912_v46, %s5293_s10 }
0x1d31   :  { %v2885_v11 = vpop.xlane.xlu0 %2884 }
0x1d32   :  { %4324 = vrcp.f32 %v2885_v11  ;;  %v4236_v11 = vld [vmem:[%s5244_s16 + $0x30] sm:$0xff]  }
0x1d35   :  { %v2893_v13 = vpop.permute.xlu0 %2892 }
0x1d36   :  { %v2898_v14 = vsel %vm495_vm3, %v2893_v13, 0  ;;  %v3689_v13 = vld [vmem:[%s5243_s15 + $0x1] ss:$0 sm:$0xff] }
0x1d37   :  { %4142 = vmatpush3.bf16.msra.mxu0 %v2898_v14 }
0x1d38   :  { %4153 = vmatprep.subr.bf16.mxu0 %v4370_v16 }
0x1d3a   :  { %4144 = vmatmul.mubr.msk.bf16.vlgmr.msra.gmra.mrb[88].mxu0 %vm361_vm2, %v2890_v15 }
0x1d3b   :  { %4155 = vmatprep.mubr.msk.bf16.mxu0 %vm4371_vm1, %v4370_v16  ;;  %4154 = vmatpush3.bf16.msra.mxu0 %v2995_v22 }
0x1d3c   :  { %v4325_v17 = vpop.eup %4324  ;;  %4167 = vmatprep.subr.bf16.mxu0 %v4370_v16 }
0x1d3d   :  { %v2889_v46 = vmul.f32 %v4325_v17, %v4321_v8 }
0x1d3f   :  { %v2891_v18 = vpack.c.bf16 %v2889_v46, %v2889_v46 }
0x1d41   :  { %4150 = vmatmul.mubr.msk.bf16.vlgmr.msra.gmra.mrb[92].mxu1 %vm361_vm2, %v2891_v18 }
0x1d42   :  { %4163 = vmatprep.mubr.msk.bf16.mxu1 %vm4371_vm1, %v4370_v16 }
0x1e0d   :  { %v2934_v23 = vpop.f32.mrb[88].mxu0 }
0x1e0e   :  { %v4145_v28 = vpop.f32.mrb[89].mxu0 }
0x1e0f   :  { %v2937_v21 = vpop.f32.mrb[90].mxu0 }
0x1e10   :  { %v4146_v40 = vpop.f32.mrb[91].mxu0 }
0x1e14   :  { %v2982_v25 = vpop.f32.mrb[92].mxu1 }
0x1e15   :  { %v2988_v27 = vpack.c.bf16 %v2982_v25, %v2934_v23  ;;  %v4151_v29 = vpop.f32.mrb[93].mxu1 }
0x1e16   :  { %v2985_v30 = vpop.f32.mrb[94].mxu1 }
0x1e17   :  { %v4152_v32 = vpop.f32.mrb[95].mxu1  ;;  %4156 = vmatmul.mubr.msk.bf16.vlgmr.msra.gmra.mrb[92].mxu0 %vm361_vm2, %v2988_v27 }
0x1e18   :  { %4175 = vmatprep.mubr.msk.bf16.mxu0 %vm4371_vm1, %v4370_v16  ;;  %4168 = vmatpush3.bf16.msra.mxu0 %v4234_v24  ;;  %v3711_v24 = vld [vmem:[%s5247_s19 + $0x1] ss:$0 sm:$0xff] }
0x1e19   :  { %4169 = vmatprep.subr.bf16.mxu0 %v4370_v16 }
0x1e1c   :  { %4170 = vmatpush3.bf16.msra.mxu0 %v4235_v1 }
0x1e1d   :  { %4171 = vmatprep.subr.bf16.mxu0 %v4370_v16 }
0x1e20   :  { %4172 = vmatpush3.bf16.msra.mxu0 %v4236_v11 }
0x1e21   :  { %4173 = vmatprep.subr.bf16.mxu0 %v4370_v16 }
0x1e24   :  { %4174 = vmatpush3.bf16.msra.mxu0 %v4237_v12 }
0x1e25   :  { %4199 = vmatprep.subr.bf16.mxu0 %v4370_v16 }
0x1eea   :  { %v3031_v35 = vpop.f32.mrb[92].mxu0 }
0x1eeb   :  { %v3038_v38 = vadd.f32 %v3031_v35, %v2762_v26  ;;  %v4157_v51 = vpop.f32.mrb[93].mxu0 }
0x1eec   :  { %v3034_v34 = vpop.f32.mrb[94].mxu0 }
0x1eed   :  { %v3048_v41 = vadd.f32 %v3679_v36, %v3038_v38  ;;  %v3039_v42 = vadd.f32 %v3034_v34, %v2763_v33  ;;  %v4158_v43 = vpop.f32.mrb[95].mxu0 }
0x1eef   :  { %v3049_v44 = vadd.f32 %v3679_v36, %v3039_v42  ;;  %v3050_v45 = vadd.f32 %v3048_v41, %v4871_v6 }
0x1ef1   :  { %v3056_v47 = vsel %vm89_vm0, %v3050_v45, 0.0  ;;  %v3051_v48 = vadd.f32 %v3049_v44, %v4873_v9  ;;  %v4232_v9 = vld [vmem:[%s5242_s14 + $0x10] sm:$0xff]  }
0x1ef2   :  { %3057 = vadd.xlane.f32.xlu1 %v3056_v47  ;;  %4160 = vmatpush3.bf16.msra.mxu1 %v4232_v9 }
0x1ef3   :  { %v3059_v49 = vsel %vm89_vm0, %v3051_v48, 0.0  ;;  %4161 = vmatprep.subr.bf16.mxu1 %v4370_v16 }
0x1ef4   :  { %3060 = vadd.xlane.f32.xlu0 %v3059_v49 }
0x1ef6   :  { %4162 = vmatpush3.bf16.msra.mxu1 %v4233_v31 }
0x1ef7   :  { %4179 = vmatprep.subr.bf16.mxu1 %v4370_v16 }
0x1f7f   :  { %v3058_v50 = vpop.xlane.xlu1 %3057 }
0x1f80   :  { %v3062_v20 = vmul.f32 0.03125, %v3058_v50 }
0x1f81   :  { %v3061_v52 = vpop.xlane.xlu0 %3060 }
0x1f82   :  { %v3064_v37 = vsub.f32 %v3050_v45, %v3062_v20  ;;  %v3063_v53 = vmul.f32 0.03125, %v3061_v52  ;;  %v3702_v45 = vld [vmem:[%s5245_s17 + $0x1] ss:$0 sm:$0xff] }
0x1f84   :  { %v3065_v54 = vsub.f32 %v3051_v48, %v3063_v53  ;;  %v3066_v39 = vmul.f32 %v3064_v37, %v3064_v37 }
0x1f86   :  { %v3068_v56 = vsel %vm89_vm0, %v3066_v39, 0.0  ;;  %v3067_v26 = vmul.f32 %v3065_v54, %v3065_v54 }
0x1f87   :  { %3069 = vadd.xlane.f32.xlu0 %v3068_v56 }
0x1f88   :  { %v3071_v6 = vsel %vm89_vm0, %v3067_v26, 0.0 }
0x1f89   :  { %3072 = vadd.xlane.f32.xlu1 %v3071_v6 }
0x2014   :  { %v3070_v2 = vpop.xlane.xlu0 %3069 }
0x2015   :  { %v3074_v33 = vmul.f32 0.03125, %v3070_v2 }
0x2016   :  { %v3073_v58 = vpop.xlane.xlu1 %3072 }
0x2017   :  { %v3076_v59 = vadd.f32 1e-12, %v3074_v33  ;;  %v3075_v60 = vmul.f32 0.03125, %v3073_v58 }
0x2019   :  { %4326 = vrsqrt.f32 %v3076_v59  ;;  %v3077_v63 = vadd.f32 1e-12, %v3075_v60 }
0x201b   :  { %4328 = vrsqrt.f32 %v3077_v63  ;;  %v4238_v63 = vld [vmem:[%s5248_s20] sm:$0xff]  }
0x2023   :  { %v4327_v0 = vpop.eup %4326 }
0x2024   :  { %v3080_v62 = vmul.f32 %v4327_v0, %v3064_v37  ;;  %v4239_v0 = vld [vmem:[%s5248_s20 + $0x8] sm:$0xff]  }
0x2025   :  { %v4329_v5 = vpop.eup %4328 }
0x2026   :  { %v3088_v4 = vmul.f32 %v3682_v3, %v3080_v62  ;;  %v3081_v55 = vmul.f32 %v4329_v5, %v3065_v54 }
0x2028   :  { %v3089_v7 = vmul.f32 %v3682_v3, %v3081_v55  ;;  %v3096_v57 = vadd.f32 %v3683_v61, %v3088_v4 }
0x202a   :  { %v3097_v8 = vadd.f32 %v3683_v61, %v3089_v7 }
0x202c   :  { %v3098_v10 = vpack.c.bf16 %v3097_v8, %v3096_v57 }
0x202e   :  { %4164 = vmatmul.mubr.msk.bf16.vlgmr.msra.gmra.mrb[96].mxu1 %vm89_vm0, %v3098_v10 }
0x202f   :  { %4183 = vmatprep.mubr.msk.bf16.mxu1 %vm4371_vm1, %v4370_v16  ;;  %4180 = vmatpush3.bf16.msra.mxu1 %v4238_v63 }
0x2030   :  { %4181 = vmatprep.subr.bf16.mxu1 %v4370_v16 }
0x2033   :  { %4182 = vmatpush3.bf16.msra.mxu1 %v4239_v0 }
0x2034   :  { %4187 = vmatprep.subr.bf16.mxu1 %v4370_v16 }
0x2101   :  { %v3161_v14 = vpop.f32.mrb[96].mxu1 }
0x2102   :  { %v3162_v15 = vadd.f32 %v3689_v13, %v3161_v14  ;;  %v4165_v17 = vpop.f32.mrb[97].mxu1 }
0x2103   :  { %v3164_v46 = vpop.f32.mrb[98].mxu1 }
0x2104   :  { %v3168_v18 = vmul.f32 %v3162_v15, %v3162_v15  ;;  %v3165_v19 = vadd.f32 %v3689_v13, %v3164_v46  ;;  %v4166_v22 = vpop.f32.mrb[99].mxu1 }
0x2106   :  { %v3170_v23 = vmul.f32 %v3168_v18, %v3162_v15  ;;  %v3169_v28 = vmul.f32 %v3165_v19, %v3165_v19 }
0x2108   :  { %v3172_v21 = vmul.f32 0.044715, %v3170_v23  ;;  %v3171_v40 = vmul.f32 %v3169_v28, %v3165_v19  ;;  %v4240_v28 = vld [vmem:[%s5250_s22] sm:$0xff]  }
0x210a   :  { %v3174_v25 = vadd.f32 %v3172_v21, %v3162_v15  ;;  %v3173_v27 = vmul.f32 0.044715, %v3171_v40  ;;  %v4241_v21 = vld [vmem:[%s5250_s22 + $0x8] sm:$0xff]   ;;  %v4242_v40 = vld [vmem:[%s5250_s22 + $0x10] sm:$0xff]  }
0x210c   :  { %v3176_v29 = vmul.f32 0.7978846, %v3174_v25  ;;  %v3175_v30 = vadd.f32 %v3173_v27, %v3165_v19  ;;  %v4243_v25 = vld [vmem:[%s5250_s22 + $0x18] sm:$0xff]   ;;  %v3712_v27 = vld [vmem:[%s5249_s21] ss:$0 sm:$0xff] }
0x210e   :  { %4330 = vtanh.f32 %v3176_v29  ;;  %v3177_v32 = vmul.f32 0.7978846, %v3175_v30 }
0x2110   :  { %4332 = vtanh.f32 %v3177_v32 }
0x2118   :  { %v4331_v35 = vpop.eup %4330 }
0x2119   :  { %v3180_v36 = vadd.f32 1.0, %v4331_v35 }
0x211a   :  { %v4333_v38 = vpop.eup %4332 }
0x211b   :  { %v3182_v51 = vmul.f32 0.5, %v3180_v36  ;;  %v3181_v34 = vadd.f32 1.0, %v4333_v38 }
0x211d   :  { %v3183_v41 = vmul.f32 0.5, %v3181_v34  ;;  %v3184_v42 = vmul.f32 %v3182_v51, %v3162_v15  ;;  %v4244_v34 = vld [vmem:[%s5252_s24] sm:$0xff]  }
0x211f   :  { %v3185_v43 = vmul.f32 %v3183_v41, %v3165_v19  ;;  %v4245_v41 = vld [vmem:[%s5252_s24 + $0x8] sm:$0xff]  }
0x2121   :  { %v3186_v44 = vpack.c.bf16 %v3185_v43, %v3184_v42  ;;  %v3716_v42 = vld [vmem:[%s5251_s23] ss:$0 sm:$0xff]  ;;  %s4376_s23 = smov [#allocation2]  }
0x2122   :  { %s3567_s24 = sshll.u32 %s4376_s23, 4  ;;  %s3568_s24 = int_to_ptr.vmem [resolvable:$true] %s3567_s24 }
0x2123   :  { %4176 = vmatmul.mubr.msk.bf16.vlgmr.msra.gmra.mrb[96].mxu0 %vm1647_vm4, %v3186_v44  ;;  %p4351_p1 = scmp.lt.s32.totalorder %s3568_s24, %s3568_s24 }
0x2124   :  { %4203 = vmatprep.mubr.msk.bf16.mxu0 %vm4371_vm1, %v4370_v16  ;;  %4200 = vmatpush3.bf16.msra.mxu0 %v4244_v34 }
0x2125   :  { %4201 = vmatprep.subr.bf16.mxu0 %v4370_v16 }
0x2128   :  { %4202 = vmatpush3.bf16.msra.mxu0 %v4245_v41 }
0x21f6   :  { %v3265_v47 = vpop.f32.mrb[96].mxu0 }
0x21f7   :  { %v3266_v48 = vadd.f32 %v3702_v45, %v3265_v47  ;;  %v4177_v49 = vpop.f32.mrb[97].mxu0 }
0x21f8   :  { %v3268_v50 = vpop.f32.mrb[98].mxu0 }
0x21f9   :  { %v3269_v20 = vadd.f32 %v3702_v45, %v3268_v50  ;;  %v4178_v52 = vpop.f32.mrb[99].mxu0  ;;  %v3272_v37 = vadd.f32 %v3266_v48, %v3096_v57  ;;  %v3710_v57 = vld [vmem:[%s5246_s18 + $0x1] ss:$0 sm:$0xff] }
0x21fb   :  { %v3278_v53 = vsel %vm89_vm0, %v3272_v37, 0.0  ;;  %v3273_v54 = vadd.f32 %v3269_v20, %v3097_v8 }
0x21fc   :  { %3279 = vadd.xlane.f32.xlu1 %v3278_v53 }
0x21fd   :  { %v3281_v39 = vsel %vm89_vm0, %v3273_v54, 0.0 }
0x21fe   :  { %3282 = vadd.xlane.f32.xlu0 %v3281_v39 }
0x2289   :  { %v3280_v56 = vpop.xlane.xlu1 %3279 }
0x228a   :  { %v3284_v26 = vmul.f32 0.03125, %v3280_v56 }
0x228b   :  { %v3283_v6 = vpop.xlane.xlu0 %3282 }
0x228c   :  { %v3286_v9 = vsub.f32 %v3272_v37, %v3284_v26  ;;  %v3285_v31 = vmul.f32 0.03125, %v3283_v6 }
0x228e   :  { %v3287_v2 = vsub.f32 %v3273_v54, %v3285_v31  ;;  %v3288_v33 = vmul.f32 %v3286_v9, %v3286_v9 }
0x2290   :  { %v3290_v58 = vsel %vm89_vm0, %v3288_v33, 0.0  ;;  %v3289_v59 = vmul.f32 %v3287_v2, %v3287_v2 }
0x2291   :  { %3291 = vadd.xlane.f32.xlu1 %v3290_v58 }
0x2292   :  { %v3293_v60 = vsel %vm89_vm0, %v3289_v59, 0.0 }
0x2293   :  { %3294 = vadd.xlane.f32.xlu0 %v3293_v60 }
0x231e   :  { %v3292_v3 = vpop.xlane.xlu1 %3291 }
0x231f   :  { %v3296_v62 = vmul.f32 0.03125, %v3292_v3 }
0x2320   :  { %v3295_v5 = vpop.xlane.xlu0 %3294 }
0x2321   :  { %v3298_v4 = vadd.f32 1e-12, %v3296_v62  ;;  %v3297_v55 = vmul.f32 0.03125, %v3295_v5 }
0x2323   :  { %4334 = vrsqrt.f32 %v3298_v4  ;;  %v3299_v61 = vadd.f32 1e-12, %v3297_v55 }
0x2325   :  { %4336 = vrsqrt.f32 %v3299_v61 }
0x232d   :  { %v4335_v7 = vpop.eup %4334 }
0x232e   :  { %v3302_v8 = vmul.f32 %v4335_v7, %v3286_v9 }
0x232f   :  { %v4337_v10 = vpop.eup %4336 }
0x2330   :  { %v3310_v1 = vmul.f32 %v3710_v57, %v3302_v8  ;;  %v3303_v11 = vmul.f32 %v4337_v10, %v3287_v2 }
0x2332   :  { %v3318_v12 = vadd.f32 %v3711_v24, %v3310_v1  ;;  %v3311_v13 = vmul.f32 %v3710_v57, %v3303_v11 }
0x2334   :  { %v3319_v14 = vadd.f32 %v3711_v24, %v3311_v13  ;;  %v3320_v15 = vpack.c.bf16 %v3318_v12, %v3318_v12 }
0x2336   :  { %v3321_v17 = vpack.c.bf16 %v3319_v14, %v3319_v14  ;;  %v3335_v18 = vunpack.c.l.b16 %v3320_v15 }
0x2338   :  { %v3336_v46 = vunpack.c.l.b16 %v3321_v17 }
0x233a   :  { %v3337_v19 = vrot.slane %v3336_v46, 7 }
0x233c   :  { %v3339_v22 = vsel %vm3338_vm5, %v3337_v19, %v3335_v18 }
0x233d   :  { %v3340_v23 = vpack.c.b16 %v3339_v22, %v3339_v22 }
0x233f   :  { %4184 = vmatmul.mubr.msk.bf16.vlgmr.msra.gmra.mrb[100].mxu1 %vm89_vm0, %v3340_v23 }
0x2340   :  { %4195 = vmatprep.mubr.msk.bf16.mxu1 %vm4371_vm1, %v4370_v16  ;;  %4188 = vmatpush3.bf16.msra.mxu1 %v4240_v28 }
0x2341   :  { %4189 = vmatprep.subr.bf16.mxu1 %v4370_v16 }
0x2344   :  { %4190 = vmatpush3.bf16.msra.mxu1 %v4241_v21 }
0x2345   :  { %4191 = vmatprep.subr.bf16.mxu1 %v4370_v16 }
0x2348   :  { %4192 = vmatpush3.bf16.msra.mxu1 %v4242_v40 }
0x2349   :  { %4193 = vmatprep.subr.bf16.mxu1 %v4370_v16  ;;  %v3722_v16 = vld [vmem:[%s5253_s25] ss:$0 sm:$0xff]  ;;  %s4346_s25 = scalar_lea.vmem %s3568_s24, 32 }
0x234a   :  { %p4347_p0 = scmp.ne.s32.totalorder %s3568_s24, %s4346_s25  ;;  %p4352_p2 = scmp.lt.s32.totalorder %s4346_s25, %s4346_s25 }
0x234c   :  { %4194 = vmatpush3.bf16.msra.mxu1 %v4243_v25  ;;  %p4353_p3 = por %p4352_p2, %p4351_p1 }
0x234e   :  { %p4354_p4 = pnand %p4353_p3, %p4347_p0 }
0x2412   :  { %v3390_v29 = vpop.f32.mrb[100].mxu1 }
0x2413   :  { %v3391_v30 = vadd.f32 %v3712_v27, %v3390_v29  ;;  %v4185_v32 = vpop.f32.mrb[101].mxu1 }
0x2414   :  { %v3393_v35 = vpop.f32.mrb[102].mxu1 }
0x2415   :  { %4338 = vtanh.f32 %v3391_v30  ;;  %v4186_v36 = vpop.f32.mrb[103].mxu1 }
0x241f   :  { %v4339_v38 = vpop.eup %4338 }
0x2420   :  { %v3397_v51 = vpack.c.bf16 %v4339_v38, %v4339_v38 }
0x2422   :  { %4196 = vmatmul.mubr.msk.bf16.vlgmr.msra.gmra.mrb[104].mxu1 %vm1647_vm4, %v3397_v51 }
0x24f5   :  { %v3474_v43 = vpop.f32.mrb[104].mxu1 }
0x24f6   :  { %v3475_v44 = vadd.f32 %v3716_v42, %v3474_v43  ;;  %v4197_v45 = vpop.f32.mrb[105].mxu1 }
0x24f7   :  { %v3477_v47 = vpop.f32.mrb[106].mxu1 }
0x24f8   :  { %4340 = vtanh.f32 %v3475_v44  ;;  %v4198_v48 = vpop.f32.mrb[107].mxu1 }
0x2502   :  { %v4341_v49 = vpop.eup %4340 }
0x2503   :  { %v3481_v50 = vpack.c.bf16 %v4341_v49, %v4341_v49 }
0x2505   :  { %4204 = vmatmul.mubr.msk.bf16.vlgmr.msra.gmra.mrb[100].mxu0 %vm89_vm0, %v3481_v50 }
0x25d8   :  { %v3542_v20 = vpop.f32.mrb[100].mxu0 }
0x25d9   :  { %v3543_v52 = vadd.f32 %v3722_v16, %v3542_v20  ;;  %v4205_v37 = vpop.f32.mrb[101].mxu0 }
0x25da   :  { %v3545_v53 = vpop.f32.mrb[102].mxu0 }
0x25db   :  { %v4206_v54 = vpop.f32.mrb[103].mxu0  ;;  %v3549_v39 = vsel %vm3548_vm6, %v3543_v52, -inf }
0x25dc   :  { %3550 = vmax.xlane.f32.xlu0 %v3549_v39 }
0x2669   :  { %v3551_v56 = vpop.xlane.xlu0 %3550 }
0x266a   :  { %v3552_v26 = vsub.f32 %v3543_v52, %v3551_v56 }
0x266c   :  { %v3553_v6 = vmul.f32 1.442695, %v3552_v26 }
0x266e   :  { %4342 = vpow2.f32 %v3553_v6 }
0x2678   :  { %v4343_v9 = vpop.eup %4342 }
0x2679   :  { %v3555_v31 = vsel %vm3548_vm6, %v4343_v9, 0.0 }
0x267a   :  { %3556 = vadd.xlane.f32.xlu1 %v3555_v31 }
0x2707   :  { %v3557_v2 = vpop.xlane.xlu1 %3556 }
0x2708   :  { %4344 = vrcp.f32 %v3557_v2 }
0x2712   :  { %v4345_v33 = vpop.eup %4344 }
0x2713   :  { %v3559_v58 = vmul.f32 %v4345_v33, %v4343_v9 }
0x2715   :  { %3560 = vst.msk [vmem:[#allocation2] sm:$0x3] %vm3548_vm6, %v3559_v58 }
0x2716   :  { %4357 = shalt.err (!%p4354_p4)
}
0x2717   :  { %s4358_s0 = scalar_lea.hbm %s5254_s26, 32 }
0x2718   :  { %p4359_p5 = scmp.ne.s32.totalorder %s5254_s26, %s4358_s0  ;;  %p4362_p6 = scmp.lt.u32.totalorder %s4358_s0, %s5254_s26 }
0x271a   :  { %p4364_p7 = pnand %p4362_p6, %p4359_p5 }
0x271c   :  { %4367 = shalt.err (!%p4364_p7)
}
0x271d   :  { %3570 = dma.vmem_to_hbm [thread:$0]  %s3568_s24, 32, %s5254_s26, [#allocation3]  }
0x271e   :  { %4368 = dma.done.wait [#allocation3], 32  }
0x271f   :  { %4369 = vsyncadd [#allocation3], 4294967264 }
0x2720   :  { %3574 = vsyncpa [#allocation3], 1 }

</bundles_post_ra>
